<compile_context>
chip_gen: v7x
topology: tpu7x:2x2x1
jax: 0.10.0
libtpu: 0.0.40
codegen_flags: <defaults>
</compile_context>

<pallas_src>
from functools import partial

import jax
import jax.numpy as jnp
from jax.experimental import pallas as pl
from jax.experimental.pallas import tpu as pltpu

LANES = 128  # TPU lane width: all kernel outputs / K pads use it.


def _round_up(v, m):
    return (v + m - 1) // m * m


# ----------------------------------------------------------------------------
# Kernels
# ----------------------------------------------------------------------------
def _conv_relu_pool_kernel(cols_ref, w_ref, b_ref, o_ref):
    """Fused conv-as-GEMM + bias + ReLU + 2x2 max-pool.

    cols_ref: (4, TM, Kp) bf16 -- quarter q holds the im2col rows of the conv
              output position at offset (q//2, q%2) inside each 2x2 pooling
              window; rows within a quarter line up 1:1 with o_ref rows.
    w_ref:    (Kp, 128) bf16;  b_ref: (1, 128) f32;  o_ref: (TM, 128).
    """
    w = w_ref[...]
    b = b_ref[...]
    m = None
    for q in range(4):
        z = jnp.dot(cols_ref[q], w, preferred_element_type=jnp.float32)
        z = jnp.maximum(z + b, 0.0)
        m = z if m is None else jnp.maximum(m, z)
    o_ref[...] = m.astype(o_ref.dtype)


def _tail_kernel(cols_ref, w2_ref, b2_ref, wf1_ref, bf1_ref, wf2_ref, bf2_ref,
                 wf3_ref, bf3_ref, o_ref, *, np_batch, n_spatial):
    """Fused conv2 + bias + ReLU + 2x2 max-pool + fc1 + fc2 + fc3.

    Rows within a cols_ref quarter are ordered (spatial s, batch n) in blocks
    of `np_batch`, so the PyTorch NCHW flatten feeding fc1 becomes a sum of
    `n_spatial` small GEMMs against the pre-packed (n_spatial, 128, 128) fc1
    weight -- no in-kernel transpose / reshape.
    """
    w2 = w2_ref[...]
    b2 = b2_ref[...]
    m = None
    for q in range(4):
        z = jnp.dot(cols_ref[q], w2, preferred_element_type=jnp.float32)
        z = jnp.maximum(z + b2, 0.0)
        m = z if m is None else jnp.maximum(m, z)
    pooled = m.astype(jnp.bfloat16)              # (n_spatial*np_batch, 128)

    # fc1: sum over spatial positions of (np_batch, 128) @ (128, 128)
    acc = jnp.zeros((np_batch, LANES), jnp.float32)
    for s in range(n_spatial):
        acc = acc + jnp.dot(pooled[s * np_batch:(s + 1) * np_batch, :],
                            wf1_ref[s], preferred_element_type=jnp.float32)
    h1 = jnp.maximum(acc + bf1_ref[...], 0.0)

    h2 = jnp.dot(h1.astype(jnp.bfloat16), wf2_ref[...],
                 preferred_element_type=jnp.float32)
    h2 = jnp.maximum(h2 + bf2_ref[...], 0.0)

    out = jnp.dot(h2.astype(jnp.bfloat16), wf3_ref[...],
                  preferred_element_type=jnp.float32)
    o_ref[...] = out + bf3_ref[...]


# ----------------------------------------------------------------------------
# pallas_call wrappers
# ----------------------------------------------------------------------------
def _full_spec(shape):
    zeros = (0,) * len(shape)
    return pl.BlockSpec(shape, lambda i: zeros)


def conv_relu_pool(cols4, w, b, *, grid_steps, out_dtype=jnp.bfloat16):
    _, M, Kp = cols4.shape
    assert M % grid_steps == 0 and (M // grid_steps) % 8 == 0
    tm = M // grid_steps
    flops = 2 * 4 * M * Kp * LANES
    bytes_accessed = (cols4.size * 2 + w.size * 2 + b.size * 4
                      + M * LANES * jnp.dtype(out_dtype).itemsize)
    return pl.pallas_call(
        _conv_relu_pool_kernel,
        grid=(grid_steps,),
        in_specs=[
            pl.BlockSpec((4, tm, Kp), lambda i: (0, i, 0)),
            pl.BlockSpec((Kp, LANES), lambda i: (0, 0)),
            pl.BlockSpec((1, LANES), lambda i: (0, 0)),
        ],
        out_specs=pl.BlockSpec((tm, LANES), lambda i: (i, 0)),
        out_shape=jax.ShapeDtypeStruct((M, LANES), out_dtype),
        compiler_params=pltpu.CompilerParams(
            dimension_semantics=("parallel",),
            vmem_limit_bytes=32 * 1024 * 1024),
        cost_estimate=pl.CostEstimate(flops=flops, transcendentals=0,
                                      bytes_accessed=bytes_accessed),
    )(cols4, w, b)


def conv_pool_fc_tail(cols4, w2, b2, wf1, bf1, wf2, bf2, wf3, bf3, *, np_batch):
    _, M, Kp = cols4.shape
    n_spatial = M // np_batch
    flops = 2 * (4 * M * Kp * LANES
                 + n_spatial * np_batch * LANES * LANES
                 + 2 * np_batch * LANES * LANES)
    bytes_accessed = ((cols4.size + w2.size + wf1.size + wf2.size + wf3.size) * 2
                      + (b2.size + bf1.size + bf2.size + bf3.size) * 4
                      + np_batch * LANES * 4)
    kernel = partial(_tail_kernel, np_batch=np_batch, n_spatial=n_spatial)
    return pl.pallas_call(
        kernel,
        grid=(1,),
        in_specs=[
            _full_spec((4, M, Kp)),
            _full_spec(w2.shape), _full_spec(b2.shape),
            _full_spec(wf1.shape), _full_spec(bf1.shape),
            _full_spec(wf2.shape), _full_spec(bf2.shape),
            _full_spec(wf3.shape), _full_spec(bf3.shape),
        ],
        out_specs=_full_spec((np_batch, LANES)),
        out_shape=jax.ShapeDtypeStruct((np_batch, LANES), jnp.float32),
        compiler_params=pltpu.CompilerParams(
            dimension_semantics=("arbitrary",),
            vmem_limit_bytes=32 * 1024 * 1024),
        cost_estimate=pl.CostEstimate(flops=flops, transcendentals=0,
                                      bytes_accessed=bytes_accessed),
    )(cols4, w2, b2, wf1, bf1, wf2, bf2, wf3, bf3)


# ----------------------------------------------------------------------------
# Layout glue (XLA side): im2col with pool-friendly row ordering
# ----------------------------------------------------------------------------
def _im2col_pool_rows(x_nhwc, kh, kw, *, batch_major_rows):
    """im2col for a valid conv immediately followed by a 2x2/2 max-pool.

    Returns (cols, (PH, PW)) with cols shaped (4, PH*PW*NB, C*kh*kw): quarter
    q = 2*dy + dx holds the patch of conv-output position (2*oh+dy, 2*ow+dx).
    Feature columns are (c, i, j)-ordered = PyTorch weight.reshape(Cout, -1).
    Rows inside a quarter are (n, oh, ow) if batch_major_rows else (oh, ow, n).
    """
    NB, H, W, C = x_nhwc.shape
    OH, OW = H - kh + 1, W - kw + 1
    PH, PW = OH // 2, OW // 2
    wins = jnp.stack(
        [x_nhwc[:, i:i + OH, j:j + OW, :] for i in range(kh) for j in range(kw)],
        axis=-1)                                        # (NB, OH, OW, C, kh*kw)
    feats = wins.reshape(NB, OH, OW, C * kh * kw)
    feats = feats[:, :2 * PH, :2 * PW, :]
    feats = feats.reshape(NB, PH, 2, PW, 2, C * kh * kw)
    perm = (2, 4, 0, 1, 3, 5) if batch_major_rows else (2, 4, 1, 3, 0, 5)
    feats = feats.transpose(perm)
    return feats.reshape(4, PH * PW * NB, C * kh * kw), (PH, PW)


def _pad_k_bf16(cols):
    k = cols.shape[-1]
    kp = _round_up(k, LANES)
    return jnp.pad(cols, ((0, 0), (0, 0), (0, kp - k))).astype(jnp.bfloat16)


# ----------------------------------------------------------------------------
# Parameters
# ----------------------------------------------------------------------------
def init_params(key):
    ks = jax.random.split(key, 10)

    def rnd(k, shape, scale):
        return scale * jax.random.normal(k, shape, dtype=jnp.float32)

    return {
        "conv1_w": rnd(ks[0], (6, 3, 5, 5), 0.1),
        "conv1_b": rnd(ks[1], (6,), 0.1),
        "conv2_w": rnd(ks[2], (16, 6, 5, 5), 0.1),
        "conv2_b": rnd(ks[3], (16,), 0.1),
        "fc1_w":   rnd(ks[4], (120, 16 * 5 * 5), 0.05),
        "fc1_b":   rnd(ks[5], (120,), 0.05),
        "fc2_w":   rnd(ks[6], (84, 120), 0.05),
        "fc2_b":   rnd(ks[7], (84,), 0.05),
        "fc3_w":   rnd(ks[8], (10, 84), 0.05),
        "fc3_b":   rnd(ks[9], (10,), 0.05),
    }


def prepare_params(params):
    """One-time weight packing (hoisted out of the forward hot path):
    transpose + zero-pad to MXU-friendly shapes, cast to bf16, and fold the
    PyTorch NCHW flatten into the fc1 weight layout."""
    def pad2(a, rows, cols):
        return jnp.pad(a, ((0, rows - a.shape[0]), (0, cols - a.shape[1])))

    def pad_bias(b):
        return jnp.pad(b.reshape(1, -1),
                       ((0, 0), (0, LANES - b.shape[0]))).astype(jnp.float32)

    w1 = params["conv1_w"].reshape(6, -1).T            # (75, 6)   cols = (c,i,j)
    w2 = params["conv2_w"].reshape(16, -1).T           # (150, 16)

    c2, n_spatial = 16, 5 * 5
    wf1 = params["fc1_w"].reshape(120, c2, n_spatial)  # [f, c, s] (s = h*5 + w)
    wf1 = wf1.transpose(2, 1, 0)                       # [s, c, f]
    wf1 = jnp.pad(wf1, ((0, 0), (0, LANES - c2), (0, LANES - 120)))

    return {
        "w1": pad2(w1, _round_up(w1.shape[0], LANES), LANES).astype(jnp.bfloat16),
        "b1": pad_bias(params["conv1_b"]),
        "w2": pad2(w2, _round_up(w2.shape[0], LANES), LANES).astype(jnp.bfloat16),
        "b2": pad_bias(params["conv2_b"]),
        "wf1": wf1.astype(jnp.bfloat16),
        "bf1": pad_bias(params["fc1_b"]),
        "wf2": pad2(params["fc2_w"].T, LANES, LANES).astype(jnp.bfloat16),
        "bf2": pad_bias(params["fc2_b"]),
        "wf3": pad2(params["fc3_w"].T, LANES, LANES).astype(jnp.bfloat16),
        "bf3": pad_bias(params["fc3_b"]),
    }


# ----------------------------------------------------------------------------
# Forward
# ----------------------------------------------------------------------------
def lenet_forward(x_nchw, prep):
    """LeNet (CIFAR-10 config) forward; same semantics as the PyTorch module
    (bf16 GEMM operands, f32 accumulation)."""
    N = x_nchw.shape[0]
    NP = _round_up(max(N, 8), 8)          # pad batch so all row blocks are 8-aligned
    x = jnp.pad(x_nchw, ((0, NP - N), (0, 0), (0, 0), (0, 0)))
    x = jnp.transpose(x, (0, 2, 3, 1)).astype(jnp.float32)     # NHWC

    # Stage 1: conv1 (5x5, 3->6) + ReLU + 2x2 max-pool, one fused kernel.
    cols1, (p1h, p1w) = _im2col_pool_rows(x, 5, 5, batch_major_rows=True)
    cols1 = _pad_k_bf16(cols1)                                  # (4, NP*14*14, 128)
    m1 = cols1.shape[1]
    g1 = 4 if (m1 % 4 == 0 and (m1 // 4) % 8 == 0) else 1
    p1 = conv_relu_pool(cols1, prep["w1"], prep["b1"], grid_steps=g1)

    # Stage 2: conv2 (5x5, 6->16) + ReLU + pool + fc1 + fc2 + fc3, one kernel.
    p1 = p1.reshape(NP, p1h, p1w, LANES)[..., :6]               # (NP, 14, 14, 6)
    cols2, _ = _im2col_pool_rows(p1, 5, 5, batch_major_rows=False)
    cols2 = _pad_k_bf16(cols2)                                  # (4, 25*NP, 256)
    out = conv_pool_fc_tail(cols2, prep["w2"], prep["b2"],
                            prep["wf1"], prep["bf1"],
                            prep["wf2"], prep["bf2"],
                            prep["wf3"], prep["bf3"], np_batch=NP)
    return out[:N, :10]


if __name__ == "__main__":
    key = jax.random.PRNGKey(0)
    kx, kp = jax.random.split(key)
    # CIFAR-10 shaped input, small batch.
    x = jax.random.normal(kx, (2, 3, 32, 32), dtype=jnp.float32)
    params = init_params(kp)

    prep = prepare_params(params)          # weight packing done once, off hot path
    prep = jax.tree_util.tree_map(jax.device_put, prep)

    fwd = jax.jit(lenet_forward)
    out = jax.block_until_ready(fwd(x, prep))
    assert out.shape == (2, 10), out.shape
    print("KERNEL_OK")
</pallas_src>

<mosaic_0001>
module attributes {stable_mosaic.version = 11 : i64} {
  func.func @_conv_relu_pool_kernel(%arg0: i32, %arg1: memref<4x392x128xbf16, #tpu.memory_space<vmem>>, %arg2: memref<128x128xbf16, #tpu.memory_space<vmem>>, %arg3: memref<1x128xf32, #tpu.memory_space<vmem>>, %arg4: memref<392x128xbf16, #tpu.memory_space<vmem>>) attributes {dimension_semantics = [#tpu.dimension_semantics<parallel>], iteration_bounds = array<i64: 4>, scalar_prefetch = 0 : i64, scratch_operands = 0 : i64, tpu.core_type = #tpu.core_type<tc>, window_params = [{transform_indices = @transform_0, window_bounds = array<i64: 4, 392, 128>}, {pipeline_mode = #tpu.pipeline_mode<synchronous>, transform_indices = @transform_1, window_bounds = array<i64: 128, 128>}, {pipeline_mode = #tpu.pipeline_mode<synchronous>, transform_indices = @transform_2, window_bounds = array<i64: 1, 128>}, {transform_indices = @transform_3, window_bounds = array<i64: 392, 128>}]} {
    %c0 = arith.constant 0 : index
    %c0_0 = arith.constant 0 : index
    %0 = vector.load %arg2[%c0, %c0_0] : memref<128x128xbf16, #tpu.memory_space<vmem>>, vector<128x128xbf16>
    %c0_1 = arith.constant 0 : index
    %c0_2 = arith.constant 0 : index
    %1 = vector.load %arg3[%c0_1, %c0_2] : memref<1x128xf32, #tpu.memory_space<vmem>>, vector<1x128xf32>
    %c0_3 = arith.constant 0 : index
    %c0_4 = arith.constant 0 : index
    %c0_5 = arith.constant 0 : index
    %2 = vector.load %arg1[%c0_3, %c0_4, %c0_5] : memref<4x392x128xbf16, #tpu.memory_space<vmem>>, vector<1x392x128xbf16>
    %3 = vector.shape_cast %2 : vector<1x392x128xbf16> to vector<392x128xbf16>
    %cst = arith.constant dense<0.000000e+00> : vector<392x128xf32>
    %4 = tpu.matmul %3, %0, %cst {dimension_numbers = #tpu.dot_dimension_numbers<[1], [0], [0], [1], [0, 0, 1, 1], [], []>} : vector<392x128xbf16>, vector<128x128xbf16>, vector<392x128xf32> -> vector<392x128xf32>
    %5 = vector.broadcast %1 : vector<1x128xf32> to vector<392x128xf32>
    %6 = arith.addf %4, %5 : vector<392x128xf32>
    %cst_6 = arith.constant 0.000000e+00 : f32
    %7 = vector.broadcast %cst_6 : f32 to vector<392x128xf32>
    %8 = arith.maximumf %6, %7 : vector<392x128xf32>
    %c1 = arith.constant 1 : index
    %c0_7 = arith.constant 0 : index
    %c0_8 = arith.constant 0 : index
    %9 = vector.load %arg1[%c1, %c0_7, %c0_8] : memref<4x392x128xbf16, #tpu.memory_space<vmem>>, vector<1x392x128xbf16>
    %10 = vector.shape_cast %9 : vector<1x392x128xbf16> to vector<392x128xbf16>
    %cst_9 = arith.constant dense<0.000000e+00> : vector<392x128xf32>
    %11 = tpu.matmul %10, %0, %cst_9 {dimension_numbers = #tpu.dot_dimension_numbers<[1], [0], [0], [1], [0, 0, 1, 1], [], []>} : vector<392x128xbf16>, vector<128x128xbf16>, vector<392x128xf32> -> vector<392x128xf32>
    %12 = vector.broadcast %1 : vector<1x128xf32> to vector<392x128xf32>
    %13 = arith.addf %11, %12 : vector<392x128xf32>
    %cst_10 = arith.constant 0.000000e+00 : f32
    %14 = vector.broadcast %cst_10 : f32 to vector<392x128xf32>
    %15 = arith.maximumf %13, %14 : vector<392x128xf32>
    %16 = arith.maximumf %8, %15 : vector<392x128xf32>
    %c2 = arith.constant 2 : index
    %c0_11 = arith.constant 0 : index
    %c0_12 = arith.constant 0 : index
    %17 = vector.load %arg1[%c2, %c0_11, %c0_12] : memref<4x392x128xbf16, #tpu.memory_space<vmem>>, vector<1x392x128xbf16>
    %18 = vector.shape_cast %17 : vector<1x392x128xbf16> to vector<392x128xbf16>
    %cst_13 = arith.constant dense<0.000000e+00> : vector<392x128xf32>
    %19 = tpu.matmul %18, %0, %cst_13 {dimension_numbers = #tpu.dot_dimension_numbers<[1], [0], [0], [1], [0, 0, 1, 1], [], []>} : vector<392x128xbf16>, vector<128x128xbf16>, vector<392x128xf32> -> vector<392x128xf32>
    %20 = vector.broadcast %1 : vector<1x128xf32> to vector<392x128xf32>
    %21 = arith.addf %19, %20 : vector<392x128xf32>
    %cst_14 = arith.constant 0.000000e+00 : f32
    %22 = vector.broadcast %cst_14 : f32 to vector<392x128xf32>
    %23 = arith.maximumf %21, %22 : vector<392x128xf32>
    %24 = arith.maximumf %16, %23 : vector<392x128xf32>
    %c3 = arith.constant 3 : index
    %c0_15 = arith.constant 0 : index
    %c0_16 = arith.constant 0 : index
    %25 = vector.load %arg1[%c3, %c0_15, %c0_16] : memref<4x392x128xbf16, #tpu.memory_space<vmem>>, vector<1x392x128xbf16>
    %26 = vector.shape_cast %25 : vector<1x392x128xbf16> to vector<392x128xbf16>
    %cst_17 = arith.constant dense<0.000000e+00> : vector<392x128xf32>
    %27 = tpu.matmul %26, %0, %cst_17 {dimension_numbers = #tpu.dot_dimension_numbers<[1], [0], [0], [1], [0, 0, 1, 1], [], []>} : vector<392x128xbf16>, vector<128x128xbf16>, vector<392x128xf32> -> vector<392x128xf32>
    %28 = vector.broadcast %1 : vector<1x128xf32> to vector<392x128xf32>
    %29 = arith.addf %27, %28 : vector<392x128xf32>
    %cst_18 = arith.constant 0.000000e+00 : f32
    %30 = vector.broadcast %cst_18 : f32 to vector<392x128xf32>
    %31 = arith.maximumf %29, %30 : vector<392x128xf32>
    %32 = arith.maximumf %24, %31 : vector<392x128xf32>
    %33 = arith.truncf %32 : vector<392x128xf32> to vector<392x128xbf16>
    %c0_19 = arith.constant 0 : index
    %c0_20 = arith.constant 0 : index
    %34 = vector.load %arg4[%c0_19, %c0_20] : memref<392x128xbf16, #tpu.memory_space<vmem>>, vector<392x128xbf16>
    tpu.vector_store %arg4[%c0_19, %c0_20], %33 {strides = array<i32>} : memref<392x128xbf16, #tpu.memory_space<vmem>>, vector<392x128xbf16>,
    return
  }
  func.func @transform_0(%arg0: i32) -> (i32, i32, i32) {
    %c0_i32 = arith.constant 0 : i32
    %c0_i32_0 = arith.constant 0 : i32
    %c0_i32_1 = arith.constant 0 : i32
    return %c0_i32, %arg0, %c0_i32_0 : i32, i32, i32
  }
  func.func @transform_1(%arg0: i32) -> (i32, i32) {
    %c0_i32 = arith.constant 0 : i32
    %c0_i32_0 = arith.constant 0 : i32
    %c0_i32_1 = arith.constant 0 : i32
    return %c0_i32, %c0_i32_0 : i32, i32
  }
  func.func @transform_2(%arg0: i32) -> (i32, i32) {
    %c0_i32 = arith.constant 0 : i32
    %c0_i32_0 = arith.constant 0 : i32
    %c0_i32_1 = arith.constant 0 : i32
    return %c0_i32, %c0_i32_0 : i32, i32
  }
  func.func @transform_3(%arg0: i32) -> (i32, i32) {
    %c0_i32 = arith.constant 0 : i32
    %c0_i32_0 = arith.constant 0 : i32
    return %arg0, %c0_i32 : i32, i32
  }
}

module attributes {stable_mosaic.version = 11 : i64} {
  func.func @_tail_kernel(%arg0: i32, %arg1: memref<4x200x256xbf16, #tpu.memory_space<vmem>>, %arg2: memref<256x128xbf16, #tpu.memory_space<vmem>>, %arg3: memref<1x128xf32, #tpu.memory_space<vmem>>, %arg4: memref<25x128x128xbf16, #tpu.memory_space<vmem>>, %arg5: memref<1x128xf32, #tpu.memory_space<vmem>>, %arg6: memref<128x128xbf16, #tpu.memory_space<vmem>>, %arg7: memref<1x128xf32, #tpu.memory_space<vmem>>, %arg8: memref<128x128xbf16, #tpu.memory_space<vmem>>, %arg9: memref<1x128xf32, #tpu.memory_space<vmem>>, %arg10: memref<8x128xf32, #tpu.memory_space<vmem>>) attributes {dimension_semantics = [#tpu.dimension_semantics<arbitrary>], iteration_bounds = array<i64: 1>, scalar_prefetch = 0 : i64, scratch_operands = 0 : i64, tpu.core_type = #tpu.core_type<tc>, window_params = [{pipeline_mode = #tpu.pipeline_mode<synchronous>, transform_indices = @transform_0, window_bounds = array<i64: 4, 200, 256>}, {pipeline_mode = #tpu.pipeline_mode<synchronous>, transform_indices = @transform_1, window_bounds = array<i64: 256, 128>}, {pipeline_mode = #tpu.pipeline_mode<synchronous>, transform_indices = @transform_2, window_bounds = array<i64: 1, 128>}, {pipeline_mode = #tpu.pipeline_mode<synchronous>, transform_indices = @transform_3, window_bounds = array<i64: 25, 128, 128>}, {pipeline_mode = #tpu.pipeline_mode<synchronous>, transform_indices = @transform_4, window_bounds = array<i64: 1, 128>}, {pipeline_mode = #tpu.pipeline_mode<synchronous>, transform_indices = @transform_5, window_bounds = array<i64: 128, 128>}, {pipeline_mode = #tpu.pipeline_mode<synchronous>, transform_indices = @transform_6, window_bounds = array<i64: 1, 128>}, {pipeline_mode = #tpu.pipeline_mode<synchronous>, transform_indices = @transform_7, window_bounds = array<i64: 128, 128>}, {pipeline_mode = #tpu.pipeline_mode<synchronous>, transform_indices = @transform_8, window_bounds = array<i64: 1, 128>}, {pipeline_mode = #tpu.pipeline_mode<synchronous>, transform_indices = @transform_9, window_bounds = array<i64: 8, 128>}]} {
    %c0 = arith.constant 0 : index
    %c0_0 = arith.constant 0 : index
    %0 = vector.load %arg2[%c0, %c0_0] : memref<256x128xbf16, #tpu.memory_space<vmem>>, vector<256x128xbf16>
    %c0_1 = arith.constant 0 : index
    %c0_2 = arith.constant 0 : index
    %1 = vector.load %arg3[%c0_1, %c0_2] : memref<1x128xf32, #tpu.memory_space<vmem>>, vector<1x128xf32>
    %c0_3 = arith.constant 0 : index
    %c0_4 = arith.constant 0 : index
    %c0_5 = arith.constant 0 : index
    %2 = vector.load %arg1[%c0_3, %c0_4, %c0_5] : memref<4x200x256xbf16, #tpu.memory_space<vmem>>, vector<1x200x256xbf16>
    %3 = vector.shape_cast %2 : vector<1x200x256xbf16> to vector<200x256xbf16>
    %cst = arith.constant dense<0.000000e+00> : vector<200x128xf32>
    %4 = tpu.matmul %3, %0, %cst {dimension_numbers = #tpu.dot_dimension_numbers<[1], [0], [0], [1], [0, 0, 1, 1], [], []>} : vector<200x256xbf16>, vector<256x128xbf16>, vector<200x128xf32> -> vector<200x128xf32>
    %5 = vector.broadcast %1 : vector<1x128xf32> to vector<200x128xf32>
    %6 = arith.addf %4, %5 : vector<200x128xf32>
    %cst_6 = arith.constant 0.000000e+00 : f32
    %7 = vector.broadcast %cst_6 : f32 to vector<200x128xf32>
    %8 = arith.maximumf %6, %7 : vector<200x128xf32>
    %c1 = arith.constant 1 : index
    %c0_7 = arith.constant 0 : index
    %c0_8 = arith.constant 0 : index
    %9 = vector.load %arg1[%c1, %c0_7, %c0_8] : memref<4x200x256xbf16, #tpu.memory_space<vmem>>, vector<1x200x256xbf16>
    %10 = vector.shape_cast %9 : vector<1x200x256xbf16> to vector<200x256xbf16>
    %cst_9 = arith.constant dense<0.000000e+00> : vector<200x128xf32>
    %11 = tpu.matmul %10, %0, %cst_9 {dimension_numbers = #tpu.dot_dimension_numbers<[1], [0], [0], [1], [0, 0, 1, 1], [], []>} : vector<200x256xbf16>, vector<256x128xbf16>, vector<200x128xf32> -> vector<200x128xf32>
    %12 = vector.broadcast %1 : vector<1x128xf32> to vector<200x128xf32>
    %13 = arith.addf %11, %12 : vector<200x128xf32>
    %cst_10 = arith.constant 0.000000e+00 : f32
    %14 = vector.broadcast %cst_10 : f32 to vector<200x128xf32>
    %15 = arith.maximumf %13, %14 : vector<200x128xf32>
    %16 = arith.maximumf %8, %15 : vector<200x128xf32>
    %c2 = arith.constant 2 : index
    %c0_11 = arith.constant 0 : index
    %c0_12 = arith.constant 0 : index
    %17 = vector.load %arg1[%c2, %c0_11, %c0_12] : memref<4x200x256xbf16, #tpu.memory_space<vmem>>, vector<1x200x256xbf16>
    %18 = vector.shape_cast %17 : vector<1x200x256xbf16> to vector<200x256xbf16>
    %cst_13 = arith.constant dense<0.000000e+00> : vector<200x128xf32>
    %19 = tpu.matmul %18, %0, %cst_13 {dimension_numbers = #tpu.dot_dimension_numbers<[1], [0], [0], [1], [0, 0, 1, 1], [], []>} : vector<200x256xbf16>, vector<256x128xbf16>, vector<200x128xf32> -> vector<200x128xf32>
    %20 = vector.broadcast %1 : vector<1x128xf32> to vector<200x128xf32>
    %21 = arith.addf %19, %20 : vector<200x128xf32>
    %cst_14 = arith.constant 0.000000e+00 : f32
    %22 = vector.broadcast %cst_14 : f32 to vector<200x128xf32>
    %23 = arith.maximumf %21, %22 : vector<200x128xf32>
    %24 = arith.maximumf %16, %23 : vector<200x128xf32>
    %c3 = arith.constant 3 : index
    %c0_15 = arith.constant 0 : index
    %c0_16 = arith.constant 0 : index
    %25 = vector.load %arg1[%c3, %c0_15, %c0_16] : memref<4x200x256xbf16, #tpu.memory_space<vmem>>, vector<1x200x256xbf16>
    %26 = vector.shape_cast %25 : vector<1x200x256xbf16> to vector<200x256xbf16>
    %cst_17 = arith.constant dense<0.000000e+00> : vector<200x128xf32>
    %27 = tpu.matmul %26, %0, %cst_17 {dimension_numbers = #tpu.dot_dimension_numbers<[1], [0], [0], [1], [0, 0, 1, 1], [], []>} : vector<200x256xbf16>, vector<256x128xbf16>, vector<200x128xf32> -> vector<200x128xf32>
    %28 = vector.broadcast %1 : vector<1x128xf32> to vector<200x128xf32>
    %29 = arith.addf %27, %28 : vector<200x128xf32>
    %cst_18 = arith.constant 0.000000e+00 : f32
    %30 = vector.broadcast %cst_18 : f32 to vector<200x128xf32>
    %31 = arith.maximumf %29, %30 : vector<200x128xf32>
    %32 = arith.maximumf %24, %31 : vector<200x128xf32>
    %33 = arith.truncf %32 : vector<200x128xf32> to vector<200x128xbf16>
    %cst_19 = arith.constant 0.000000e+00 : f32
    %34 = vector.broadcast %cst_19 : f32 to vector<8x128xf32>
    %35 = vector.extract_strided_slice %33 {offsets = [0, 0], sizes = [8, 128], strides = [1, 1]} : vector<200x128xbf16> to vector<8x128xbf16>
    %c0_20 = arith.constant 0 : index
    %c0_21 = arith.constant 0 : index
    %c0_22 = arith.constant 0 : index
    %36 = vector.load %arg4[%c0_20, %c0_21, %c0_22] : memref<25x128x128xbf16, #tpu.memory_space<vmem>>, vector<1x128x128xbf16>
    %37 = vector.shape_cast %36 : vector<1x128x128xbf16> to vector<128x128xbf16>
    %cst_23 = arith.constant dense<0.000000e+00> : vector<8x128xf32>
    %38 = tpu.matmul %35, %37, %cst_23 {dimension_numbers = #tpu.dot_dimension_numbers<[1], [0], [0], [1], [0, 0, 1, 1], [], []>} : vector<8x128xbf16>, vector<128x128xbf16>, vector<8x128xf32> -> vector<8x128xf32>
    %39 = arith.addf %34, %38 : vector<8x128xf32>
    %40 = vector.extract_strided_slice %33 {offsets = [8, 0], sizes = [8, 128], strides = [1, 1]} : vector<200x128xbf16> to vector<8x128xbf16>
    %c1_24 = arith.constant 1 : index
    %c0_25 = arith.constant 0 : index
    %c0_26 = arith.constant 0 : index
    %41 = vector.load %arg4[%c1_24, %c0_25, %c0_26] : memref<25x128x128xbf16, #tpu.memory_space<vmem>>, vector<1x128x128xbf16>
    %42 = vector.shape_cast %41 : vector<1x128x128xbf16> to vector<128x128xbf16>
    %cst_27 = arith.constant dense<0.000000e+00> : vector<8x128xf32>
    %43 = tpu.matmul %40, %42, %cst_27 {dimension_numbers = #tpu.dot_dimension_numbers<[1], [0], [0], [1], [0, 0, 1, 1], [], []>} : vector<8x128xbf16>, vector<128x128xbf16>, vector<8x128xf32> -> vector<8x128xf32>
    %44 = arith.addf %39, %43 : vector<8x128xf32>
    %45 = vector.extract_strided_slice %33 {offsets = [16, 0], sizes = [8, 128], strides = [1, 1]} : vector<200x128xbf16> to vector<8x128xbf16>
    %c2_28 = arith.constant 2 : index
    %c0_29 = arith.constant 0 : index
    %c0_30 = arith.constant 0 : index
    %46 = vector.load %arg4[%c2_28, %c0_29, %c0_30] : memref<25x128x128xbf16, #tpu.memory_space<vmem>>, vector<1x128x128xbf16>
    %47 = vector.shape_cast %46 : vector<1x128x128xbf16> to vector<128x128xbf16>
    %cst_31 = arith.constant dense<0.000000e+00> : vector<8x128xf32>
    %48 = tpu.matmul %45, %47, %cst_31 {dimension_numbers = #tpu.dot_dimension_numbers<[1], [0], [0], [1], [0, 0, 1, 1], [], []>} : vector<8x128xbf16>, vector<128x128xbf16>, vector<8x128xf32> -> vector<8x128xf32>
    %49 = arith.addf %44, %48 : vector<8x128xf32>
    %50 = vector.extract_strided_slice %33 {offsets = [24, 0], sizes = [8, 128], strides = [1, 1]} : vector<200x128xbf16> to vector<8x128xbf16>
    %c3_32 = arith.constant 3 : index
    %c0_33 = arith.constant 0 : index
    %c0_34 = arith.constant 0 : index
    %51 = vector.load %arg4[%c3_32, %c0_33, %c0_34] : memref<25x128x128xbf16, #tpu.memory_space<vmem>>, vector<1x128x128xbf16>
    %52 = vector.shape_cast %51 : vector<1x128x128xbf16> to vector<128x128xbf16>
    %cst_35 = arith.constant dense<0.000000e+00> : vector<8x128xf32>
    %53 = tpu.matmul %50, %52, %cst_35 {dimension_numbers = #tpu.dot_dimension_numbers<[1], [0], [0], [1], [0, 0, 1, 1], [], []>} : vector<8x128xbf16>, vector<128x128xbf16>, vector<8x128xf32> -> vector<8x128xf32>
    %54 = arith.addf %49, %53 : vector<8x128xf32>
    %55 = vector.extract_strided_slice %33 {offsets = [32, 0], sizes = [8, 128], strides = [1, 1]} : vector<200x128xbf16> to vector<8x128xbf16>
    %c4 = arith.constant 4 : index
    %c0_36 = arith.constant 0 : index
    %c0_37 = arith.constant 0 : index
    %56 = vector.load %arg4[%c4, %c0_36, %c0_37] : memref<25x128x128xbf16, #tpu.memory_space<vmem>>, vector<1x128x128xbf16>
    %57 = vector.shape_cast %56 : vector<1x128x128xbf16> to vector<128x128xbf16>
    %cst_38 = arith.constant dense<0.000000e+00> : vector<8x128xf32>
    %58 = tpu.matmul %55, %57, %cst_38 {dimension_numbers = #tpu.dot_dimension_numbers<[1], [0], [0], [1], [0, 0, 1, 1], [], []>} : vector<8x128xbf16>, vector<128x128xbf16>, vector<8x128xf32> -> vector<8x128xf32>
    %59 = arith.addf %54, %58 : vector<8x128xf32>
    %60 = vector.extract_strided_slice %33 {offsets = [40, 0], sizes = [8, 128], strides = [1, 1]} : vector<200x128xbf16> to vector<8x128xbf16>
    %c5 = arith.constant 5 : index
    %c0_39 = arith.constant 0 : index
    %c0_40 = arith.constant 0 : index
    %61 = vector.load %arg4[%c5, %c0_39, %c0_40] : memref<25x128x128xbf16, #tpu.memory_space<vmem>>, vector<1x128x128xbf16>
    %62 = vector.shape_cast %61 : vector<1x128x128xbf16> to vector<128x128xbf16>
    %cst_41 = arith.constant dense<0.000000e+00> : vector<8x128xf32>
    %63 = tpu.matmul %60, %62, %cst_41 {dimension_numbers = #tpu.dot_dimension_numbers<[1], [0], [0], [1], [0, 0, 1, 1], [], []>} : vector<8x128xbf16>, vector<128x128xbf16>, vector<8x128xf32> -> vector<8x128xf32>
    %64 = arith.addf %59, %63 : vector<8x128xf32>
    %65 = vector.extract_strided_slice %33 {offsets = [48, 0], sizes = [8, 128], strides = [1, 1]} : vector<200x128xbf16> to vector<8x128xbf16>
    %c6 = arith.constant 6 : index
    %c0_42 = arith.constant 0 : index
    %c0_43 = arith.constant 0 : index
    %66 = vector.load %arg4[%c6, %c0_42, %c0_43] : memref<25x128x128xbf16, #tpu.memory_space<vmem>>, vector<1x128x128xbf16>
    %67 = vector.shape_cast %66 : vector<1x128x128xbf16> to vector<128x128xbf16>
    %cst_44 = arith.constant dense<0.000000e+00> : vector<8x128xf32>
    %68 = tpu.matmul %65, %67, %cst_44 {dimension_numbers = #tpu.dot_dimension_numbers<[1], [0], [0], [1], [0, 0, 1, 1], [], []>} : vector<8x128xbf16>, vector<128x128xbf16>, vector<8x128xf32> -> vector<8x128xf32>
    %69 = arith.addf %64, %68 : vector<8x128xf32>
    %70 = vector.extract_strided_slice %33 {offsets = [56, 0], sizes = [8, 128], strides = [1, 1]} : vector<200x128xbf16> to vector<8x128xbf16>
    %c7 = arith.constant 7 : index
    %c0_45 = arith.constant 0 : index
    %c0_46 = arith.constant 0 : index
    %71 = vector.load %arg4[%c7, %c0_45, %c0_46] : memref<25x128x128xbf16, #tpu.memory_space<vmem>>, vector<1x128x128xbf16>
    %72 = vector.shape_cast %71 : vector<1x128x128xbf16> to vector<128x128xbf16>
    %cst_47 = arith.constant dense<0.000000e+00> : vector<8x128xf32>
    %73 = tpu.matmul %70, %72, %cst_47 {dimension_numbers = #tpu.dot_dimension_numbers<[1], [0], [0], [1], [0, 0, 1, 1], [], []>} : vector<8x128xbf16>, vector<128x128xbf16>, vector<8x128xf32> -> vector<8x128xf32>
    %74 = arith.addf %69, %73 : vector<8x128xf32>
    %75 = vector.extract_strided_slice %33 {offsets = [64, 0], sizes = [8, 128], strides = [1, 1]} : vector<200x128xbf16> to vector<8x128xbf16>
    %c8 = arith.constant 8 : index
    %c0_48 = arith.constant 0 : index
    %c0_49 = arith.constant 0 : index
    %76 = vector.load %arg4[%c8, %c0_48, %c0_49] : memref<25x128x128xbf16, #tpu.memory_space<vmem>>, vector<1x128x128xbf16>
    %77 = vector.shape_cast %76 : vector<1x128x128xbf16> to vector<128x128xbf16>
    %cst_50 = arith.constant dense<0.000000e+00> : vector<8x128xf32>
    %78 = tpu.matmul %75, %77, %cst_50 {dimension_numbers = #tpu.dot_dimension_numbers<[1], [0], [0], [1], [0, 0, 1, 1], [], []>} : vector<8x128xbf16>, vector<128x128xbf16>, vector<8x128xf32> -> vector<8x128xf32>
    %79 = arith.addf %74, %78 : vector<8x128xf32>
    %80 = vector.extract_strided_slice %33 {offsets = [72, 0], sizes = [8, 128], strides = [1, 1]} : vector<200x128xbf16> to vector<8x128xbf16>
    %c9 = arith.constant 9 : index
    %c0_51 = arith.constant 0 : index
    %c0_52 = arith.constant 0 : index
    %81 = vector.load %arg4[%c9, %c0_51, %c0_52] : memref<25x128x128xbf16, #tpu.memory_space<vmem>>, vector<1x128x128xbf16>
    %82 = vector.shape_cast %81 : vector<1x128x128xbf16> to vector<128x128xbf16>
    %cst_53 = arith.constant dense<0.000000e+00> : vector<8x128xf32>
    %83 = tpu.matmul %80, %82, %cst_53 {dimension_numbers = #tpu.dot_dimension_numbers<[1], [0], [0], [1], [0, 0, 1, 1], [], []>} : vector<8x128xbf16>, vector<128x128xbf16>, vector<8x128xf32> -> vector<8x128xf32>
    %84 = arith.addf %79, %83 : vector<8x128xf32>
    %85 = vector.extract_strided_slice %33 {offsets = [80, 0], sizes = [8, 128], strides = [1, 1]} : vector<200x128xbf16> to vector<8x128xbf16>
    %c10 = arith.constant 10 : index
    %c0_54 = arith.constant 0 : index
    %c0_55 = arith.constant 0 : index
    %86 = vector.load %arg4[%c10, %c0_54, %c0_55] : memref<25x128x128xbf16, #tpu.memory_space<vmem>>, vector<1x128x128xbf16>
    %87 = vector.shape_cast %86 : vector<1x128x128xbf16> to vector<128x128xbf16>
    %cst_56 = arith.constant dense<0.000000e+00> : vector<8x128xf32>
    %88 = tpu.matmul %85, %87, %cst_56 {dimension_numbers = #tpu.dot_dimension_numbers<[1], [0], [0], [1], [0, 0, 1, 1], [], []>} : vector<8x128xbf16>, vector<128x128xbf16>, vector<8x128xf32> -> vector<8x128xf32>
    %89 = arith.addf %84, %88 : vector<8x128xf32>
    %90 = vector.extract_strided_slice %33 {offsets = [88, 0], sizes = [8, 128], strides = [1, 1]} : vector<200x128xbf16> to vector<8x128xbf16>
    %c11 = arith.constant 11 : index
    %c0_57 = arith.constant 0 : index
    %c0_58 = arith.constant 0 : index
    %91 = vector.load %arg4[%c11, %c0_57, %c0_58] : memref<25x128x128xbf16, #tpu.memory_space<vmem>>, vector<1x128x128xbf16>
    %92 = vector.shape_cast %91 : vector<1x128x128xbf16> to vector<128x128xbf16>
    %cst_59 = arith.constant dense<0.000000e+00> : vector<8x128xf32>
    %93 = tpu.matmul %90, %92, %cst_59 {dimension_numbers = #tpu.dot_dimension_numbers<[1], [0], [0], [1], [0, 0, 1, 1], [], []>} : vector<8x128xbf16>, vector<128x128xbf16>, vector<8x128xf32> -> vector<8x128xf32>
    %94 = arith.addf %89, %93 : vector<8x128xf32>
    %95 = vector.extract_strided_slice %33 {offsets = [96, 0], sizes = [8, 128], strides = [1, 1]} : vector<200x128xbf16> to vector<8x128xbf16>
    %c12 = arith.constant 12 : index
    %c0_60 = arith.constant 0 : index
    %c0_61 = arith.constant 0 : index
    %96 = vector.load %arg4[%c12, %c0_60, %c0_61] : memref<25x128x128xbf16, #tpu.memory_space<vmem>>, vector<1x128x128xbf16>
    %97 = vector.shape_cast %96 : vector<1x128x128xbf16> to vector<128x128xbf16>
    %cst_62 = arith.constant dense<0.000000e+00> : vector<8x128xf32>
    %98 = tpu.matmul %95, %97, %cst_62 {dimension_numbers = #tpu.dot_dimension_numbers<[1], [0], [0], [1], [0, 0, 1, 1], [], []>} : vector<8x128xbf16>, vector<128x128xbf16>, vector<8x128xf32> -> vector<8x128xf32>
    %99 = arith.addf %94, %98 : vector<8x128xf32>
    %100 = vector.extract_strided_slice %33 {offsets = [104, 0], sizes = [8, 128], strides = [1, 1]} : vector<200x128xbf16> to vector<8x128xbf16>
    %c13 = arith.constant 13 : index
    %c0_63 = arith.constant 0 : index
    %c0_64 = arith.constant 0 : index
    %101 = vector.load %arg4[%c13, %c0_63, %c0_64] : memref<25x128x128xbf16, #tpu.memory_space<vmem>>, vector<1x128x128xbf16>
    %102 = vector.shape_cast %101 : vector<1x128x128xbf16> to vector<128x128xbf16>
    %cst_65 = arith.constant dense<0.000000e+00> : vector<8x128xf32>
    %103 = tpu.matmul %100, %102, %cst_65 {dimension_numbers = #tpu.dot_dimension_numbers<[1], [0], [0], [1], [0, 0, 1, 1], [], []>} : vector<8x128xbf16>, vector<128x128xbf16>, vector<8x128xf32> -> vector<8x128xf32>
    %104 = arith.addf %99, %103 : vector<8x128xf32>
    %105 = vector.extract_strided_slice %33 {offsets = [112, 0], sizes = [8, 128], strides = [1, 1]} : vector<200x128xbf16> to vector<8x128xbf16>
    %c14 = arith.constant 14 : index
    %c0_66 = arith.constant 0 : index
    %c0_67 = arith.constant 0 : index
    %106 = vector.load %arg4[%c14, %c0_66, %c0_67] : memref<25x128x128xbf16, #tpu.memory_space<vmem>>, vector<1x128x128xbf16>
    %107 = vector.shape_cast %106 : vector<1x128x128xbf16> to vector<128x128xbf16>
    %cst_68 = arith.constant dense<0.000000e+00> : vector<8x128xf32>
    %108 = tpu.matmul %105, %107, %cst_68 {dimension_numbers = #tpu.dot_dimension_numbers<[1], [0], [0], [1], [0, 0, 1, 1], [], []>} : vector<8x128xbf16>, vector<128x128xbf16>, vector<8x128xf32> -> vector<8x128xf32>
    %109 = arith.addf %104, %108 : vector<8x128xf32>
    %110 = vector.extract_strided_slice %33 {offsets = [120, 0], sizes = [8, 128], strides = [1, 1]} : vector<200x128xbf16> to vector<8x128xbf16>
    %c15 = arith.constant 15 : index
    %c0_69 = arith.constant 0 : index
    %c0_70 = arith.constant 0 : index
    %111 = vector.load %arg4[%c15, %c0_69, %c0_70] : memref<25x128x128xbf16, #tpu.memory_space<vmem>>, vector<1x128x128xbf16>
    %112 = vector.shape_cast %111 : vector<1x128x128xbf16> to vector<128x128xbf16>
    %cst_71 = arith.constant dense<0.000000e+00> : vector<8x128xf32>
    %113 = tpu.matmul %110, %112, %cst_71 {dimension_numbers = #tpu.dot_dimension_numbers<[1], [0], [0], [1], [0, 0, 1, 1], [], []>} : vector<8x128xbf16>, vector<128x128xbf16>, vector<8x128xf32> -> vector<8x128xf32>
    %114 = arith.addf %109, %113 : vector<8x128xf32>
    %115 = vector.extract_strided_slice %33 {offsets = [128, 0], sizes = [8, 128], strides = [1, 1]} : vector<200x128xbf16> to vector<8x128xbf16>
    %c16 = arith.constant 16 : index
    %c0_72 = arith.constant 0 : index
    %c0_73 = arith.constant 0 : index
    %116 = vector.load %arg4[%c16, %c0_72, %c0_73] : memref<25x128x128xbf16, #tpu.memory_space<vmem>>, vector<1x128x128xbf16>
    %117 = vector.shape_cast %116 : vector<1x128x128xbf16> to vector<128x128xbf16>
    %cst_74 = arith.constant dense<0.000000e+00> : vector<8x128xf32>
    %118 = tpu.matmul %115, %117, %cst_74 {dimension_numbers = #tpu.dot_dimension_numbers<[1], [0], [0], [1], [0, 0, 1, 1], [], []>} : vector<8x128xbf16>, vector<128x128xbf16>, vector<8x128xf32> -> vector<8x128xf32>
    %119 = arith.addf %114, %118 : vector<8x128xf32>
    %120 = vector.extract_strided_slice %33 {offsets = [136, 0], sizes = [8, 128], strides = [1, 1]} : vector<200x128xbf16> to vector<8x128xbf16>
    %c17 = arith.constant 17 : index
    %c0_75 = arith.constant 0 : index
    %c0_76 = arith.constant 0 : index
    %121 = vector.load %arg4[%c17, %c0_75, %c0_76] : memref<25x128x128xbf16, #tpu.memory_space<vmem>>, vector<1x128x128xbf16>
    %122 = vector.shape_cast %121 : vector<1x128x128xbf16> to vector<128x128xbf16>
    %cst_77 = arith.constant dense<0.000000e+00> : vector<8x128xf32>
    %123 = tpu.matmul %120, %122, %cst_77 {dimension_numbers = #tpu.dot_dimension_numbers<[1], [0], [0], [1], [0, 0, 1, 1], [], []>} : vector<8x128xbf16>, vector<128x128xbf16>, vector<8x128xf32> -> vector<8x128xf32>
    %124 = arith.addf %119, %123 : vector<8x128xf32>
    %125 = vector.extract_strided_slice %33 {offsets = [144, 0], sizes = [8, 128], strides = [1, 1]} : vector<200x128xbf16> to vector<8x128xbf16>
    %c18 = arith.constant 18 : index
    %c0_78 = arith.constant 0 : index
    %c0_79 = arith.constant 0 : index
    %126 = vector.load %arg4[%c18, %c0_78, %c0_79] : memref<25x128x128xbf16, #tpu.memory_space<vmem>>, vector<1x128x128xbf16>
    %127 = vector.shape_cast %126 : vector<1x128x128xbf16> to vector<128x128xbf16>
    %cst_80 = arith.constant dense<0.000000e+00> : vector<8x128xf32>
    %128 = tpu.matmul %125, %127, %cst_80 {dimension_numbers = #tpu.dot_dimension_numbers<[1], [0], [0], [1], [0, 0, 1, 1], [], []>} : vector<8x128xbf16>, vector<128x128xbf16>, vector<8x128xf32> -> vector<8x128xf32>
    %129 = arith.addf %124, %128 : vector<8x128xf32>
    %130 = vector.extract_strided_slice %33 {offsets = [152, 0], sizes = [8, 128], strides = [1, 1]} : vector<200x128xbf16> to vector<8x128xbf16>
    %c19 = arith.constant 19 : index
    %c0_81 = arith.constant 0 : index
    %c0_82 = arith.constant 0 : index
    %131 = vector.load %arg4[%c19, %c0_81, %c0_82] : memref<25x128x128xbf16, #tpu.memory_space<vmem>>, vector<1x128x128xbf16>
    %132 = vector.shape_cast %131 : vector<1x128x128xbf16> to vector<128x128xbf16>
    %cst_83 = arith.constant dense<0.000000e+00> : vector<8x128xf32>
    %133 = tpu.matmul %130, %132, %cst_83 {dimension_numbers = #tpu.dot_dimension_numbers<[1], [0], [0], [1], [0, 0, 1, 1], [], []>} : vector<8x128xbf16>, vector<128x128xbf16>, vector<8x128xf32> -> vector<8x128xf32>
    %134 = arith.addf %129, %133 : vector<8x128xf32>
    %135 = vector.extract_strided_slice %33 {offsets = [160, 0], sizes = [8, 128], strides = [1, 1]} : vector<200x128xbf16> to vector<8x128xbf16>
    %c20 = arith.constant 20 : index
    %c0_84 = arith.constant 0 : index
    %c0_85 = arith.constant 0 : index
    %136 = vector.load %arg4[%c20, %c0_84, %c0_85] : memref<25x128x128xbf16, #tpu.memory_space<vmem>>, vector<1x128x128xbf16>
    %137 = vector.shape_cast %136 : vector<1x128x128xbf16> to vector<128x128xbf16>
    %cst_86 = arith.constant dense<0.000000e+00> : vector<8x128xf32>
    %138 = tpu.matmul %135, %137, %cst_86 {dimension_numbers = #tpu.dot_dimension_numbers<[1], [0], [0], [1], [0, 0, 1, 1], [], []>} : vector<8x128xbf16>, vector<128x128xbf16>, vector<8x128xf32> -> vector<8x128xf32>
    %139 = arith.addf %134, %138 : vector<8x128xf32>
    %140 = vector.extract_strided_slice %33 {offsets = [168, 0], sizes = [8, 128], strides = [1, 1]} : vector<200x128xbf16> to vector<8x128xbf16>
    %c21 = arith.constant 21 : index
    %c0_87 = arith.constant 0 : index
    %c0_88 = arith.constant 0 : index
    %141 = vector.load %arg4[%c21, %c0_87, %c0_88] : memref<25x128x128xbf16, #tpu.memory_space<vmem>>, vector<1x128x128xbf16>
    %142 = vector.shape_cast %141 : vector<1x128x128xbf16> to vector<128x128xbf16>
    %cst_89 = arith.constant dense<0.000000e+00> : vector<8x128xf32>
    %143 = tpu.matmul %140, %142, %cst_89 {dimension_numbers = #tpu.dot_dimension_numbers<[1], [0], [0], [1], [0, 0, 1, 1], [], []>} : vector<8x128xbf16>, vector<128x128xbf16>, vector<8x128xf32> -> vector<8x128xf32>
    %144 = arith.addf %139, %143 : vector<8x128xf32>
    %145 = vector.extract_strided_slice %33 {offsets = [176, 0], sizes = [8, 128], strides = [1, 1]} : vector<200x128xbf16> to vector<8x128xbf16>
    %c22 = arith.constant 22 : index
    %c0_90 = arith.constant 0 : index
    %c0_91 = arith.constant 0 : index
    %146 = vector.load %arg4[%c22, %c0_90, %c0_91] : memref<25x128x128xbf16, #tpu.memory_space<vmem>>, vector<1x128x128xbf16>
    %147 = vector.shape_cast %146 : vector<1x128x128xbf16> to vector<128x128xbf16>
    %cst_92 = arith.constant dense<0.000000e+00> : vector<8x128xf32>
    %148 = tpu.matmul %145, %147, %cst_92 {dimension_numbers = #tpu.dot_dimension_numbers<[1], [0], [0], [1], [0, 0, 1, 1], [], []>} : vector<8x128xbf16>, vector<128x128xbf16>, vector<8x128xf32> -> vector<8x128xf32>
    %149 = arith.addf %144, %148 : vector<8x128xf32>
    %150 = vector.extract_strided_slice %33 {offsets = [184, 0], sizes = [8, 128], strides = [1, 1]} : vector<200x128xbf16> to vector<8x128xbf16>
    %c23 = arith.constant 23 : index
    %c0_93 = arith.constant 0 : index
    %c0_94 = arith.constant 0 : index
    %151 = vector.load %arg4[%c23, %c0_93, %c0_94] : memref<25x128x128xbf16, #tpu.memory_space<vmem>>, vector<1x128x128xbf16>
    %152 = vector.shape_cast %151 : vector<1x128x128xbf16> to vector<128x128xbf16>
    %cst_95 = arith.constant dense<0.000000e+00> : vector<8x128xf32>
    %153 = tpu.matmul %150, %152, %cst_95 {dimension_numbers = #tpu.dot_dimension_numbers<[1], [0], [0], [1], [0, 0, 1, 1], [], []>} : vector<8x128xbf16>, vector<128x128xbf16>, vector<8x128xf32> -> vector<8x128xf32>
    %154 = arith.addf %149, %153 : vector<8x128xf32>
    %155 = vector.extract_strided_slice %33 {offsets = [192, 0], sizes = [8, 128], strides = [1, 1]} : vector<200x128xbf16> to vector<8x128xbf16>
    %c24 = arith.constant 24 : index
    %c0_96 = arith.constant 0 : index
    %c0_97 = arith.constant 0 : index
    %156 = vector.load %arg4[%c24, %c0_96, %c0_97] : memref<25x128x128xbf16, #tpu.memory_space<vmem>>, vector<1x128x128xbf16>
    %157 = vector.shape_cast %156 : vector<1x128x128xbf16> to vector<128x128xbf16>
    %cst_98 = arith.constant dense<0.000000e+00> : vector<8x128xf32>
    %158 = tpu.matmul %155, %157, %cst_98 {dimension_numbers = #tpu.dot_dimension_numbers<[1], [0], [0], [1], [0, 0, 1, 1], [], []>} : vector<8x128xbf16>, vector<128x128xbf16>, vector<8x128xf32> -> vector<8x128xf32>
    %159 = arith.addf %154, %158 : vector<8x128xf32>
    %c0_99 = arith.constant 0 : index
    %c0_100 = arith.constant 0 : index
    %160 = vector.load %arg5[%c0_99, %c0_100] : memref<1x128xf32, #tpu.memory_space<vmem>>, vector<1x128xf32>
    %161 = vector.broadcast %160 : vector<1x128xf32> to vector<8x128xf32>
    %162 = arith.addf %159, %161 : vector<8x128xf32>
    %cst_101 = arith.constant 0.000000e+00 : f32
    %163 = vector.broadcast %cst_101 : f32 to vector<8x128xf32>
    %164 = arith.maximumf %162, %163 : vector<8x128xf32>
    %165 = arith.truncf %164 : vector<8x128xf32> to vector<8x128xbf16>
    %c0_102 = arith.constant 0 : index
    %c0_103 = arith.constant 0 : index
    %166 = vector.load %arg6[%c0_102, %c0_103] : memref<128x128xbf16, #tpu.memory_space<vmem>>, vector<128x128xbf16>
    %cst_104 = arith.constant dense<0.000000e+00> : vector<8x128xf32>
    %167 = tpu.matmul %165, %166, %cst_104 {dimension_numbers = #tpu.dot_dimension_numbers<[1], [0], [0], [1], [0, 0, 1, 1], [], []>} : vector<8x128xbf16>, vector<128x128xbf16>, vector<8x128xf32> -> vector<8x128xf32>
    %c0_105 = arith.constant 0 : index
    %c0_106 = arith.constant 0 : index
    %168 = vector.load %arg7[%c0_105, %c0_106] : memref<1x128xf32, #tpu.memory_space<vmem>>, vector<1x128xf32>
    %169 = vector.broadcast %168 : vector<1x128xf32> to vector<8x128xf32>
    %170 = arith.addf %167, %169 : vector<8x128xf32>
    %cst_107 = arith.constant 0.000000e+00 : f32
    %171 = vector.broadcast %cst_107 : f32 to vector<8x128xf32>
    %172 = arith.maximumf %170, %171 : vector<8x128xf32>
    %173 = arith.truncf %172 : vector<8x128xf32> to vector<8x128xbf16>
    %c0_108 = arith.constant 0 : index
    %c0_109 = arith.constant 0 : index
    %174 = vector.load %arg8[%c0_108, %c0_109] : memref<128x128xbf16, #tpu.memory_space<vmem>>, vector<128x128xbf16>
    %cst_110 = arith.constant dense<0.000000e+00> : vector<8x128xf32>
    %175 = tpu.matmul %173, %174, %cst_110 {dimension_numbers = #tpu.dot_dimension_numbers<[1], [0], [0], [1], [0, 0, 1, 1], [], []>} : vector<8x128xbf16>, vector<128x128xbf16>, vector<8x128xf32> -> vector<8x128xf32>
    %c0_111 = arith.constant 0 : index
    %c0_112 = arith.constant 0 : index
    %176 = vector.load %arg9[%c0_111, %c0_112] : memref<1x128xf32, #tpu.memory_space<vmem>>, vector<1x128xf32>
    %177 = vector.broadcast %176 : vector<1x128xf32> to vector<8x128xf32>
    %178 = arith.addf %175, %177 : vector<8x128xf32>
    %c0_113 = arith.constant 0 : index
    %c0_114 = arith.constant 0 : index
    %179 = vector.load %arg10[%c0_113, %c0_114] : memref<8x128xf32, #tpu.memory_space<vmem>>, vector<8x128xf32>
    tpu.vector_store %arg10[%c0_113, %c0_114], %178 {strides = array<i32>} : memref<8x128xf32, #tpu.memory_space<vmem>>, vector<8x128xf32>,
    return
  }
  func.func @transform_0(%arg0: i32) -> (i32, i32, i32) {
    %c0_i32 = arith.constant 0 : i32
    %c0_i32_0 = arith.constant 0 : i32
    %c0_i32_1 = arith.constant 0 : i32
    %c0_i32_2 = arith.constant 0 : i32
    return %c0_i32, %c0_i32_0, %c0_i32_1 : i32, i32, i32
  }
  func.func @transform_1(%arg0: i32) -> (i32, i32) {
    %c0_i32 = arith.constant 0 : i32
    %c0_i32_0 = arith.constant 0 : i32
    %c0_i32_1 = arith.constant 0 : i32
    return %c0_i32, %c0_i32_0 : i32, i32
  }
  func.func @transform_2(%arg0: i32) -> (i32, i32) {
    %c0_i32 = arith.constant 0 : i32
    %c0_i32_0 = arith.constant 0 : i32
    %c0_i32_1 = arith.constant 0 : i32
    return %c0_i32, %c0_i32_0 : i32, i32
  }
  func.func @transform_3(%arg0: i32) -> (i32, i32, i32) {
    %c0_i32 = arith.constant 0 : i32
    %c0_i32_0 = arith.constant 0 : i32
    %c0_i32_1 = arith.constant 0 : i32
    %c0_i32_2 = arith.constant 0 : i32
    return %c0_i32, %c0_i32_0, %c0_i32_1 : i32, i32, i32
  }
  func.func @transform_4(%arg0: i32) -> (i32, i32) {
    %c0_i32 = arith.constant 0 : i32
    %c0_i32_0 = arith.constant 0 : i32
    %c0_i32_1 = arith.constant 0 : i32
    return %c0_i32, %c0_i32_0 : i32, i32
  }
  func.func @transform_5(%arg0: i32) -> (i32, i32) {
    %c0_i32 = arith.constant 0 : i32
    %c0_i32_0 = arith.constant 0 : i32
    %c0_i32_1 = arith.constant 0 : i32
    return %c0_i32, %c0_i32_0 : i32, i32
  }
  func.func @transform_6(%arg0: i32) -> (i32, i32) {
    %c0_i32 = arith.constant 0 : i32
    %c0_i32_0 = arith.constant 0 : i32
    %c0_i32_1 = arith.constant 0 : i32
    return %c0_i32, %c0_i32_0 : i32, i32
  }
  func.func @transform_7(%arg0: i32) -> (i32, i32) {
    %c0_i32 = arith.constant 0 : i32
    %c0_i32_0 = arith.constant 0 : i32
    %c0_i32_1 = arith.constant 0 : i32
    return %c0_i32, %c0_i32_0 : i32, i32
  }
  func.func @transform_8(%arg0: i32) -> (i32, i32) {
    %c0_i32 = arith.constant 0 : i32
    %c0_i32_0 = arith.constant 0 : i32
    %c0_i32_1 = arith.constant 0 : i32
    return %c0_i32, %c0_i32_0 : i32, i32
  }
  func.func @transform_9(%arg0: i32) -> (i32, i32) {
    %c0_i32 = arith.constant 0 : i32
    %c0_i32_0 = arith.constant 0 : i32
    %c0_i32_1 = arith.constant 0 : i32
    return %c0_i32, %c0_i32_0 : i32, i32
  }
}

</mosaic_0001>

<bundles_post_ra>
// kernel: lenet_forward.2
= control target key start
LH: loop header
LB: loop body
LE: loop exit
PB: predicated region body
PF: predicated region fallthrough
CT: control target
= control target key end

     0   :  { %s4724_s12 = smov 0   ;;  %s4726_s13 = smov 0   ;;  %s5723_s0 = inlined_call_operand.vmem [shape: bf16[4,1568,128], index: 0, kind: input, shape index: {}]   ;;  %s5724_s1 = inlined_call_operand.vmem [shape: bf16[128,128], index: 1, kind: input, shape index: {}]   ;;  %s5725_s2 = inlined_call_operand.vmem [shape: f32[1,128], index: 2, kind: input, shape index: {}]   ;;  %s5726_s3 = inlined_call_operand.vmem [shape: bf16[1568,128], index: 3, kind: output, shape index: {}]  }
   0x1   :  { %s4728_s14 = smov 0  }
   0x2 LB: > { %s3437_s15 = sadd.s32 4294967295, %s4700_s14   ;;  %s4741_s16 = sadd.s32 1, %s4700_s14   ;;  %s4700_s14 = sphi %s4728_s14, %s5739_s14   ;;  %s4696_s13 = sphi %s4726_s13, %s5738_s13   ;;  %s4692_s12 = sphi %s4724_s12, %s5737_s12  }
   0x3   : > { %s17_s17 = ssub.s32 %s4700_s14, %s4741_s16  ;;  %s20_s18 = sadd.s32 1, %s4696_s13 }
   0x4   : > { %p18_p0 = scmp.eq.s32.totalorder %s17_s17, 0  ;;  %p27_p1 = scmp.ne.s32.totalorder %s4696_s13, %s4692_s12 }
   0x5   : > { %p28_p2 = scmp.eq.s32.totalorder %s4700_s14, 0  ;;  %p3440_p4 = scmp.ge.s32.totalorder %s4700_s14, 4 }
   0x6   : > { %s4750_s19 = scalar_select %p18_p0, %s4696_s13, %s20_s18  }
   0x7   : > { %p29_p3 = por %p28_p2, %p27_p1  ;;  %127 = sbr.rel (%p3440_p4) target bundleno = 69 (0x45), region = 24 }
   0xe   : > { %130 = sbr.rel (!%p29_p3) target bundleno = 69 (0x45), region = 28  ;;  %s132_s20 = sand.u32 (%p29_p3), 1, %s4696_s13  }
   0xf   : > { %s3751_s21 = smul.u32 (%p29_p3), 196, %s4700_s14 }
  0x10   : > { %s4540_s22 = smul.u32 (%p29_p3), 784, %s132_s20 }
  0x11   : > { %s4758_s25 = scalar_lea.vmem (%p29_p3), %s5723_s0, %s3751_s21 }
  0x12   : > { %v153_v0 = vld [vmem:[%s4758_s25] sm:$0xff] (%p29_p3)   ;;  %v157_v1 = vld [vmem:[%s4758_s25 + $0x8] sm:$0xff] (%p29_p3)   ;;  %v161_v2 = vld [vmem:[%s4758_s25 + $0x10] sm:$0xff] (%p29_p3)   ;;  %s4763_s26 = scalar_lea.vmem (%p29_p3), [#allocation2], %s4540_s22 }
  0x13   : > { %154 = vst [vmem:[%s4763_s26] sm:$0xff] (%p29_p3), %v153_v0   ;;  %158 = vst [vmem:[%s4763_s26 + $0x8] sm:$0xff] (%p29_p3), %v157_v1   ;;  %v165_v3 = vld [vmem:[%s4758_s25 + $0x18] sm:$0xff] (%p29_p3)   ;;  %v169_v4 = vld [vmem:[%s4758_s25 + $0x20] sm:$0xff] (%p29_p3)  }
  0x14   : > { %162 = vst [vmem:[%s4763_s26 + $0x10] sm:$0xff] (%p29_p3), %v161_v2   ;;  %v173_v5 = vld [vmem:[%s4758_s25 + $0x28] sm:$0xff] (%p29_p3)   ;;  %166 = vst [vmem:[%s4763_s26 + $0x18] sm:$0xff] (%p29_p3), %v165_v3   ;;  %v177_v6 = vld [vmem:[%s4758_s25 + $0x30] sm:$0xff] (%p29_p3)  }
  0x15   : > { %170 = vst [vmem:[%s4763_s26 + $0x20] sm:$0xff] %v169_v4   ;;  %174 = vst [vmem:[%s4763_s26 + $0x28] sm:$0xff] %v173_v5   ;;  %v181_v7 = vld [vmem:[%s4758_s25 + $0x38] sm:$0xff]   ;;  %v185_v8 = vld [vmem:[%s4758_s25 + $0x40] sm:$0xff]  }
  0x16   : > { %178 = vst [vmem:[%s4763_s26 + $0x30] sm:$0xff] %v177_v6   ;;  %182 = vst [vmem:[%s4763_s26 + $0x38] sm:$0xff] %v181_v7   ;;  %v189_v9 = vld [vmem:[%s4758_s25 + $0x48] sm:$0xff]   ;;  %v193_v10 = vld [vmem:[%s4758_s25 + $0x50] sm:$0xff]  }
  0x17   : > { %186 = vst [vmem:[%s4763_s26 + $0x40] sm:$0xff] %v185_v8   ;;  %v197_v11 = vld [vmem:[%s4758_s25 + $0x58] sm:$0xff]   ;;  %190 = vst [vmem:[%s4763_s26 + $0x48] sm:$0xff] %v189_v9   ;;  %v201_v12 = vld [vmem:[%s4758_s25 + $0x60] sm:$0xff]  }
  0x18   : > { %194 = vst [vmem:[%s4763_s26 + $0x50] sm:$0xff] %v193_v10   ;;  %198 = vst [vmem:[%s4763_s26 + $0x58] sm:$0xff] %v197_v11   ;;  %v205_v13 = vld [vmem:[%s4758_s25 + $0x68] sm:$0xff]   ;;  %v209_v14 = vld [vmem:[%s4758_s25 + $0x70] sm:$0xff]  }
  0x19   : > { %202 = vst [vmem:[%s4763_s26 + $0x60] sm:$0xff] %v201_v12   ;;  %206 = vst [vmem:[%s4763_s26 + $0x68] sm:$0xff] %v205_v13   ;;  %v213_v15 = vld [vmem:[%s4758_s25 + $0x78] sm:$0xff]   ;;  %v217_v16 = vld [vmem:[%s4758_s25 + $0x80] sm:$0xff]  }
  0x1a   : > { %210 = vst [vmem:[%s4763_s26 + $0x70] sm:$0xff] %v209_v14   ;;  %v221_v17 = vld [vmem:[%s4758_s25 + $0x88] sm:$0xff]   ;;  %214 = vst [vmem:[%s4763_s26 + $0x78] sm:$0xff] %v213_v15   ;;  %v225_v18 = vld [vmem:[%s4758_s25 + $0x90] sm:$0xff]  }
  0x1b   : > { %218 = vst [vmem:[%s4763_s26 + $0x80] sm:$0xff] %v217_v16   ;;  %222 = vst [vmem:[%s4763_s26 + $0x88] sm:$0xff] %v221_v17   ;;  %v229_v19 = vld [vmem:[%s4758_s25 + $0x98] sm:$0xff]   ;;  %v233_v20 = vld [vmem:[%s4758_s25 + $0xa0] sm:$0xff]  }
  0x1c   : > { %226 = vst [vmem:[%s4763_s26 + $0x90] sm:$0xff] %v225_v18   ;;  %230 = vst [vmem:[%s4763_s26 + $0x98] sm:$0xff] %v229_v19   ;;  %v237_v21 = vld [vmem:[%s4758_s25 + $0xa8] sm:$0xff]   ;;  %v241_v22 = vld [vmem:[%s4758_s25 + $0xb0] sm:$0xff]  }
  0x1d   : > { %234 = vst [vmem:[%s4763_s26 + $0xa0] sm:$0xff] %v233_v20   ;;  %v245_v23 = vld [vmem:[%s4758_s25 + $0xb8] sm:$0xff]   ;;  %238 = vst [vmem:[%s4763_s26 + $0xa8] sm:$0xff] %v237_v21   ;;  %v249_v24 = vld [vmem:[%s4758_s25 + $0xc0] sm:$0xf] }
  0x1e   : > { %242 = vst [vmem:[%s4763_s26 + $0xb0] sm:$0xff] %v241_v22   ;;  %246 = vst [vmem:[%s4763_s26 + $0xb8] sm:$0xff] %v245_v23   ;;  %v251_v25 = vld [vmem:[%s4758_s25 + $0x310] sm:$0xff]   ;;  %v255_v26 = vld [vmem:[%s4758_s25 + $0x318] sm:$0xff]  }
  0x1f   : > { %250 = vst [vmem:[%s4763_s26 + $0xc0] sm:$0xf] %v249_v24  ;;  %252 = vst [vmem:[%s4763_s26 + $0xc4] sm:$0xff] %v251_v25   ;;  %v259_v27 = vld [vmem:[%s4758_s25 + $0x320] sm:$0xff]   ;;  %v263_v28 = vld [vmem:[%s4758_s25 + $0x328] sm:$0xff]  }
  0x20   : > { %256 = vst [vmem:[%s4763_s26 + $0xcc] sm:$0xff] %v255_v26   ;;  %v267_v29 = vld [vmem:[%s4758_s25 + $0x330] sm:$0xff]   ;;  %260 = vst [vmem:[%s4763_s26 + $0xd4] sm:$0xff] %v259_v27   ;;  %v271_v30 = vld [vmem:[%s4758_s25 + $0x338] sm:$0xff]  }
  0x21   : > { %264 = vst [vmem:[%s4763_s26 + $0xdc] sm:$0xff] %v263_v28   ;;  %268 = vst [vmem:[%s4763_s26 + $0xe4] sm:$0xff] %v267_v29   ;;  %v275_v31 = vld [vmem:[%s4758_s25 + $0x340] sm:$0xff]   ;;  %v279_v32 = vld [vmem:[%s4758_s25 + $0x348] sm:$0xff]  }
  0x22   : > { %272 = vst [vmem:[%s4763_s26 + $0xec] sm:$0xff] %v271_v30   ;;  %276 = vst [vmem:[%s4763_s26 + $0xf4] sm:$0xff] %v275_v31   ;;  %v283_v33 = vld [vmem:[%s4758_s25 + $0x350] sm:$0xff]   ;;  %v287_v34 = vld [vmem:[%s4758_s25 + $0x358] sm:$0xff]  }
  0x23   : > { %280 = vst [vmem:[%s4763_s26 + $0xfc] sm:$0xff] %v279_v32   ;;  %v291_v35 = vld [vmem:[%s4758_s25 + $0x360] sm:$0xff]   ;;  %284 = vst [vmem:[%s4763_s26 + $0x104] sm:$0xff] %v283_v33   ;;  %v295_v36 = vld [vmem:[%s4758_s25 + $0x368] sm:$0xff]  }
  0x24   : > { %288 = vst [vmem:[%s4763_s26 + $0x10c] sm:$0xff] %v287_v34   ;;  %292 = vst [vmem:[%s4763_s26 + $0x114] sm:$0xff] %v291_v35   ;;  %v299_v37 = vld [vmem:[%s4758_s25 + $0x370] sm:$0xff]   ;;  %v303_v38 = vld [vmem:[%s4758_s25 + $0x378] sm:$0xff]  }
  0x25   : > { %296 = vst [vmem:[%s4763_s26 + $0x11c] sm:$0xff] %v295_v36   ;;  %300 = vst [vmem:[%s4763_s26 + $0x124] sm:$0xff] %v299_v37   ;;  %v307_v39 = vld [vmem:[%s4758_s25 + $0x380] sm:$0xff]   ;;  %v311_v40 = vld [vmem:[%s4758_s25 + $0x388] sm:$0xff]  }
  0x26   : > { %304 = vst [vmem:[%s4763_s26 + $0x12c] sm:$0xff] %v303_v38   ;;  %v315_v41 = vld [vmem:[%s4758_s25 + $0x390] sm:$0xff]   ;;  %308 = vst [vmem:[%s4763_s26 + $0x134] sm:$0xff] %v307_v39   ;;  %v319_v42 = vld [vmem:[%s4758_s25 + $0x398] sm:$0xff]  }
  0x27   : > { %312 = vst [vmem:[%s4763_s26 + $0x13c] sm:$0xff] %v311_v40   ;;  %316 = vst [vmem:[%s4763_s26 + $0x144] sm:$0xff] %v315_v41   ;;  %v323_v43 = vld [vmem:[%s4758_s25 + $0x3a0] sm:$0xff]   ;;  %v327_v44 = vld [vmem:[%s4758_s25 + $0x3a8] sm:$0xff]  }
  0x28   : > { %320 = vst [vmem:[%s4763_s26 + $0x14c] sm:$0xff] %v319_v42   ;;  %324 = vst [vmem:[%s4763_s26 + $0x154] sm:$0xff] %v323_v43   ;;  %v331_v45 = vld [vmem:[%s4758_s25 + $0x3b0] sm:$0xff]   ;;  %v335_v46 = vld [vmem:[%s4758_s25 + $0x3b8] sm:$0xff]  }
  0x29   : > { %328 = vst [vmem:[%s4763_s26 + $0x15c] sm:$0xff] %v327_v44   ;;  %v339_v47 = vld [vmem:[%s4758_s25 + $0x3c0] sm:$0xff]   ;;  %332 = vst [vmem:[%s4763_s26 + $0x164] sm:$0xff] %v331_v45   ;;  %v343_v48 = vld [vmem:[%s4758_s25 + $0x3c8] sm:$0xff]  }
  0x2a   : > { %336 = vst [vmem:[%s4763_s26 + $0x16c] sm:$0xff] %v335_v46   ;;  %340 = vst [vmem:[%s4763_s26 + $0x174] sm:$0xff] %v339_v47   ;;  %v347_v49 = vld [vmem:[%s4758_s25 + $0x3d0] sm:$0xf]  ;;  %v349_v50 = vld [vmem:[%s4758_s25 + $0x620] sm:$0xff]  }
  0x2b   : > { %344 = vst [vmem:[%s4763_s26 + $0x17c] sm:$0xff] %v343_v48   ;;  %348 = vst [vmem:[%s4763_s26 + $0x184] sm:$0xf] %v347_v49  ;;  %v353_v51 = vld [vmem:[%s4758_s25 + $0x628] sm:$0xff]   ;;  %v357_v52 = vld [vmem:[%s4758_s25 + $0x630] sm:$0xff]  }
  0x2c   : > { %350 = vst [vmem:[%s4763_s26 + $0x188] sm:$0xff] %v349_v50   ;;  %v361_v53 = vld [vmem:[%s4758_s25 + $0x638] sm:$0xff]   ;;  %354 = vst [vmem:[%s4763_s26 + $0x190] sm:$0xff] %v353_v51   ;;  %v365_v54 = vld [vmem:[%s4758_s25 + $0x640] sm:$0xff]  }
  0x2d   : > { %358 = vst [vmem:[%s4763_s26 + $0x198] sm:$0xff] %v357_v52   ;;  %362 = vst [vmem:[%s4763_s26 + $0x1a0] sm:$0xff] %v361_v53   ;;  %v369_v55 = vld [vmem:[%s4758_s25 + $0x648] sm:$0xff]   ;;  %v373_v56 = vld [vmem:[%s4758_s25 + $0x650] sm:$0xff]  }
  0x2e   : > { %366 = vst [vmem:[%s4763_s26 + $0x1a8] sm:$0xff] %v365_v54   ;;  %370 = vst [vmem:[%s4763_s26 + $0x1b0] sm:$0xff] %v369_v55   ;;  %v377_v57 = vld [vmem:[%s4758_s25 + $0x658] sm:$0xff]   ;;  %v381_v58 = vld [vmem:[%s4758_s25 + $0x660] sm:$0xff]  }
  0x2f   : > { %374 = vst [vmem:[%s4763_s26 + $0x1b8] sm:$0xff] %v373_v56   ;;  %v385_v59 = vld [vmem:[%s4758_s25 + $0x668] sm:$0xff]   ;;  %378 = vst [vmem:[%s4763_s26 + $0x1c0] sm:$0xff] %v377_v57   ;;  %v389_v60 = vld [vmem:[%s4758_s25 + $0x670] sm:$0xff]  }
  0x30   : > { %382 = vst [vmem:[%s4763_s26 + $0x1c8] sm:$0xff] %v381_v58   ;;  %386 = vst [vmem:[%s4763_s26 + $0x1d0] sm:$0xff] %v385_v59   ;;  %v393_v61 = vld [vmem:[%s4758_s25 + $0x678] sm:$0xff]   ;;  %v397_v62 = vld [vmem:[%s4758_s25 + $0x680] sm:$0xff]  }
  0x31   : > { %390 = vst [vmem:[%s4763_s26 + $0x1d8] sm:$0xff] %v389_v60   ;;  %394 = vst [vmem:[%s4763_s26 + $0x1e0] sm:$0xff] %v393_v61   ;;  %v401_v63 = vld [vmem:[%s4758_s25 + $0x688] sm:$0xff]   ;;  %v405_v0 = vld [vmem:[%s4758_s25 + $0x690] sm:$0xff]  }
  0x32   : > { %398 = vst [vmem:[%s4763_s26 + $0x1e8] sm:$0xff] %v397_v62   ;;  %v409_v1 = vld [vmem:[%s4758_s25 + $0x698] sm:$0xff]   ;;  %402 = vst [vmem:[%s4763_s26 + $0x1f0] sm:$0xff] %v401_v63   ;;  %v413_v2 = vld [vmem:[%s4758_s25 + $0x6a0] sm:$0xff]  }
  0x33   : > { %406 = vst [vmem:[%s4763_s26 + $0x1f8] sm:$0xff] %v405_v0   ;;  %410 = vst [vmem:[%s4763_s26 + $0x200] sm:$0xff] %v409_v1   ;;  %v417_v3 = vld [vmem:[%s4758_s25 + $0x6a8] sm:$0xff]   ;;  %v421_v4 = vld [vmem:[%s4758_s25 + $0x6b0] sm:$0xff]  }
  0x34   : > { %414 = vst [vmem:[%s4763_s26 + $0x208] sm:$0xff] %v413_v2   ;;  %418 = vst [vmem:[%s4763_s26 + $0x210] sm:$0xff] %v417_v3   ;;  %v425_v5 = vld [vmem:[%s4758_s25 + $0x6b8] sm:$0xff]   ;;  %v429_v6 = vld [vmem:[%s4758_s25 + $0x6c0] sm:$0xff]  }
  0x35   : > { %422 = vst [vmem:[%s4763_s26 + $0x218] sm:$0xff] %v421_v4   ;;  %v433_v7 = vld [vmem:[%s4758_s25 + $0x6c8] sm:$0xff]   ;;  %426 = vst [vmem:[%s4763_s26 + $0x220] sm:$0xff] %v425_v5   ;;  %v437_v8 = vld [vmem:[%s4758_s25 + $0x6d0] sm:$0xff]  }
  0x36   : > { %430 = vst [vmem:[%s4763_s26 + $0x228] sm:$0xff] %v429_v6   ;;  %434 = vst [vmem:[%s4763_s26 + $0x230] sm:$0xff] %v433_v7   ;;  %v441_v9 = vld [vmem:[%s4758_s25 + $0x6d8] sm:$0xff]   ;;  %v445_v10 = vld [vmem:[%s4758_s25 + $0x6e0] sm:$0xf] }
  0x37   : > { %438 = vst [vmem:[%s4763_s26 + $0x238] sm:$0xff] %v437_v8   ;;  %442 = vst [vmem:[%s4763_s26 + $0x240] sm:$0xff] %v441_v9   ;;  %v447_v11 = vld [vmem:[%s4758_s25 + $0x930] sm:$0xff]   ;;  %v451_v12 = vld [vmem:[%s4758_s25 + $0x938] sm:$0xff]  }
  0x38   : > { %446 = vst [vmem:[%s4763_s26 + $0x248] sm:$0xf] %v445_v10  ;;  %v455_v13 = vld [vmem:[%s4758_s25 + $0x940] sm:$0xff]   ;;  %448 = vst [vmem:[%s4763_s26 + $0x24c] sm:$0xff] %v447_v11   ;;  %v459_v14 = vld [vmem:[%s4758_s25 + $0x948] sm:$0xff]  }
  0x39   : > { %452 = vst [vmem:[%s4763_s26 + $0x254] sm:$0xff] %v451_v12   ;;  %456 = vst [vmem:[%s4763_s26 + $0x25c] sm:$0xff] %v455_v13   ;;  %v463_v15 = vld [vmem:[%s4758_s25 + $0x950] sm:$0xff]   ;;  %v467_v16 = vld [vmem:[%s4758_s25 + $0x958] sm:$0xff]  }
  0x3a   : > { %460 = vst [vmem:[%s4763_s26 + $0x264] sm:$0xff] %v459_v14   ;;  %464 = vst [vmem:[%s4763_s26 + $0x26c] sm:$0xff] %v463_v15   ;;  %v471_v17 = vld [vmem:[%s4758_s25 + $0x960] sm:$0xff]   ;;  %v475_v18 = vld [vmem:[%s4758_s25 + $0x968] sm:$0xff]  }
  0x3b   : > { %468 = vst [vmem:[%s4763_s26 + $0x274] sm:$0xff] %v467_v16   ;;  %v479_v19 = vld [vmem:[%s4758_s25 + $0x970] sm:$0xff]   ;;  %472 = vst [vmem:[%s4763_s26 + $0x27c] sm:$0xff] %v471_v17   ;;  %v483_v20 = vld [vmem:[%s4758_s25 + $0x978] sm:$0xff]  }
  0x3c   : > { %476 = vst [vmem:[%s4763_s26 + $0x284] sm:$0xff] %v475_v18   ;;  %480 = vst [vmem:[%s4763_s26 + $0x28c] sm:$0xff] %v479_v19   ;;  %v487_v21 = vld [vmem:[%s4758_s25 + $0x980] sm:$0xff]   ;;  %v491_v22 = vld [vmem:[%s4758_s25 + $0x988] sm:$0xff]  }
  0x3d   : > { %484 = vst [vmem:[%s4763_s26 + $0x294] sm:$0xff] %v483_v20   ;;  %488 = vst [vmem:[%s4763_s26 + $0x29c] sm:$0xff] %v487_v21   ;;  %v495_v23 = vld [vmem:[%s4758_s25 + $0x990] sm:$0xff]   ;;  %v499_v24 = vld [vmem:[%s4758_s25 + $0x998] sm:$0xff]  }
  0x3e   : > { %492 = vst [vmem:[%s4763_s26 + $0x2a4] sm:$0xff] %v491_v22   ;;  %v503_v25 = vld [vmem:[%s4758_s25 + $0x9a0] sm:$0xff]   ;;  %496 = vst [vmem:[%s4763_s26 + $0x2ac] sm:$0xff] %v495_v23   ;;  %v507_v26 = vld [vmem:[%s4758_s25 + $0x9a8] sm:$0xff]  }
  0x3f   : > { %500 = vst [vmem:[%s4763_s26 + $0x2b4] sm:$0xff] %v499_v24   ;;  %504 = vst [vmem:[%s4763_s26 + $0x2bc] sm:$0xff] %v503_v25   ;;  %v511_v27 = vld [vmem:[%s4758_s25 + $0x9b0] sm:$0xff]   ;;  %v515_v28 = vld [vmem:[%s4758_s25 + $0x9b8] sm:$0xff]  }
  0x40   : > { %508 = vst [vmem:[%s4763_s26 + $0x2c4] sm:$0xff] %v507_v26   ;;  %512 = vst [vmem:[%s4763_s26 + $0x2cc] sm:$0xff] %v511_v27   ;;  %v519_v29 = vld [vmem:[%s4758_s25 + $0x9c0] sm:$0xff]   ;;  %v523_v30 = vld [vmem:[%s4758_s25 + $0x9c8] sm:$0xff]  }
  0x41   : > { %516 = vst [vmem:[%s4763_s26 + $0x2d4] sm:$0xff] %v515_v28   ;;  %v527_v31 = vld [vmem:[%s4758_s25 + $0x9d0] sm:$0xff]   ;;  %520 = vst [vmem:[%s4763_s26 + $0x2dc] sm:$0xff] %v519_v29   ;;  %v531_v32 = vld [vmem:[%s4758_s25 + $0x9d8] sm:$0xff]  }
  0x42   : > { %524 = vst [vmem:[%s4763_s26 + $0x2e4] sm:$0xff] %v523_v30   ;;  %528 = vst [vmem:[%s4763_s26 + $0x2ec] sm:$0xff] %v527_v31   ;;  %v535_v33 = vld [vmem:[%s4758_s25 + $0x9e0] sm:$0xff]   ;;  %v539_v34 = vld [vmem:[%s4758_s25 + $0x9e8] sm:$0xff]  }
  0x43   : > { %532 = vst [vmem:[%s4763_s26 + $0x2f4] sm:$0xff] %v531_v32   ;;  %536 = vst [vmem:[%s4763_s26 + $0x2fc] sm:$0xff] %v535_v33   ;;  %v543_v35 = vld [vmem:[%s4758_s25 + $0x9f0] sm:$0xf] }
  0x44   : > { %540 = vst [vmem:[%s4763_s26 + $0x304] sm:$0xff] %v539_v34   ;;  %544 = vst [vmem:[%s4763_s26 + $0x30c] sm:$0xf] %v543_v35 }
  0x45 PF: > { %p3442_p5 = scmp.ge.s32.totalorder %s4700_s14, 1  ;;  %p958_p6 = scmp.lt.s32.totalorder %s4700_s14, 5 }
  0x47   : > { %p959_p7 = pnand %p3442_p5, %p958_p6 }
  0x49   : > { %962 = sbr.rel (%p959_p7) target bundleno = 728 (0x2d8), region = 69 }
  0x50   : > { %v4568_v36 = vld [vmem:[%s5724_s1] sm:$0xff]   ;;  %v4702_v37 = vmov 0.0   ;;  %v4569_v38 = vld [vmem:[%s5724_s1 + $0x8] sm:$0xff]   ;;  %s965_s4 = sand.u32 1, %s4692_s12   ;;  %vm4703_vm0 = vmmov 0   ;;  %v4570_v39 = vld [vmem:[%s5724_s1 + $0x10] sm:$0xff]  }
  0x51   : > { %4076 = vmatprep.subr.bf16.mxu0 %v4702_v37  ;;  %4192 = vmatprep.subr.bf16.mxu1 %v4702_v37  ;;  %s4541_s5 = smul.u32 784, %s965_s4  ;;  %v4571_v40 = vld [vmem:[%s5724_s1 + $0x18] sm:$0xff]   ;;  %v4572_v41 = vld [vmem:[%s5724_s1 + $0x20] sm:$0xff]   ;;  %v4573_v42 = vld [vmem:[%s5724_s1 + $0x28] sm:$0xff]  }
  0x52   : > { %4077 = vmatpush3.bf16.msra.mxu0 %v4568_v36  ;;  %4193 = vmatpush3.bf16.msra.mxu1 %v4568_v36  ;;  %v4574_v43 = vld [vmem:[%s5724_s1 + $0x30] sm:$0xff]   ;;  %v4575_v44 = vld [vmem:[%s5724_s1 + $0x38] sm:$0xff]   ;;  %v5188_v35 = vld [vmem:[%s5725_s2] ss:$0 sm:$0xff]  ;;  %s989_s28 = smul.u32 49, %s3437_s15 }
  0x53   : > { %4078 = vmatprep.subr.bf16.mxu0 %v4702_v37  ;;  %4194 = vmatprep.subr.bf16.mxu1 %v4702_v37  ;;  %s4984_s8 = scalar_lea.vmem [#allocation2], %s4541_s5 }
  0x54   : > { %4092 = vmatprep.mubr.msk.bf16.mxu0 %vm4703_vm0, %v4702_v37  ;;  %4208 = vmatprep.mubr.msk.bf16.mxu1 %vm4703_vm0, %v4702_v37  ;;  %v4576_v45 = vld [vmem:[%s4984_s8] sm:$0xff]   ;;  %v4578_v47 = vld [vmem:[%s4984_s8 + $0x8] sm:$0xff]   ;;  %v4580_v49 = vld [vmem:[%s4984_s8 + $0x10] sm:$0xff]   ;;  %p990_p8 = scmp.lt.s32.totalorder %s989_s28, 195 }
  0x55   : > { %v4577_v46 = vld [vmem:[%s4984_s8 + $0xc4] sm:$0xff]   ;;  %v4579_v48 = vld [vmem:[%s4984_s8 + $0xcc] sm:$0xff]   ;;  %v4581_v50 = vld [vmem:[%s4984_s8 + $0xd4] sm:$0xff]  }
  0x56   : > { %4079 = vmatpush3.bf16.msra.mxu0 %v4569_v38  ;;  %4195 = vmatpush3.bf16.msra.mxu1 %v4569_v38  ;;  %v4582_v51 = vld [vmem:[%s4984_s8 + $0x18] sm:$0xff]   ;;  %v4584_v53 = vld [vmem:[%s4984_s8 + $0x20] sm:$0xff]   ;;  %v4586_v55 = vld [vmem:[%s4984_s8 + $0x28] sm:$0xff]   ;;  %s5741_s28 = smov (!%p990_p8, %s989_s28), 195 }
  0x57   : > { %4080 = vmatprep.subr.bf16.mxu0 %v4702_v37  ;;  %4196 = vmatprep.subr.bf16.mxu1 %v4702_v37  ;;  %v4583_v52 = vld [vmem:[%s4984_s8 + $0xdc] sm:$0xff]   ;;  %v4585_v54 = vld [vmem:[%s4984_s8 + $0xe4] sm:$0xff]   ;;  %v4587_v56 = vld [vmem:[%s4984_s8 + $0xec] sm:$0xff]   ;;  %s3443_s14 = sshll.u32 %s5741_s28, 2 }
  0x58   : > { %v4588_v57 = vld [vmem:[%s4984_s8 + $0x30] sm:$0xff]   ;;  %v4590_v59 = vld [vmem:[%s4984_s8 + $0x38] sm:$0xff]   ;;  %v4592_v61 = vld [vmem:[%s4984_s8 + $0x40] sm:$0xff]   ;;  %s5542_s30 = scalar_lea.vmem %s5726_s3, %s3443_s14 }
  0x59   : > { %v4589_v58 = vld [vmem:[%s4984_s8 + $0xf4] sm:$0xff]   ;;  %v4591_v60 = vld [vmem:[%s4984_s8 + $0xfc] sm:$0xff]   ;;  %v4593_v62 = vld [vmem:[%s4984_s8 + $0x104] sm:$0xff]  }
  0x5a   : > { %4081 = vmatpush3.bf16.msra.mxu0 %v4570_v39  ;;  %4197 = vmatpush3.bf16.msra.mxu1 %v4570_v39  ;;  %v4594_v63 = vld [vmem:[%s4984_s8 + $0x48] sm:$0xff]   ;;  %v4596_v1 = vld [vmem:[%s4984_s8 + $0x50] sm:$0xff]   ;;  %v4598_v3 = vld [vmem:[%s4984_s8 + $0x58] sm:$0xff]  }
  0x5b   : > { %4082 = vmatprep.subr.bf16.mxu0 %v4702_v37  ;;  %4198 = vmatprep.subr.bf16.mxu1 %v4702_v37  ;;  %v4595_v0 = vld [vmem:[%s4984_s8 + $0x10c] sm:$0xff]   ;;  %v4597_v2 = vld [vmem:[%s4984_s8 + $0x114] sm:$0xff]   ;;  %v4599_v4 = vld [vmem:[%s4984_s8 + $0x11c] sm:$0xff]  }
  0x5c   : > { %v4600_v5 = vld [vmem:[%s4984_s8 + $0x60] sm:$0xff]   ;;  %v4602_v7 = vld [vmem:[%s4984_s8 + $0x68] sm:$0xff]   ;;  %v4604_v9 = vld [vmem:[%s4984_s8 + $0x70] sm:$0xff]  }
  0x5d   : > { %v4601_v6 = vld [vmem:[%s4984_s8 + $0x124] sm:$0xff]   ;;  %v4603_v8 = vld [vmem:[%s4984_s8 + $0x12c] sm:$0xff]   ;;  %v4605_v10 = vld [vmem:[%s4984_s8 + $0x134] sm:$0xff]  }
  0x5e   : > { %4083 = vmatpush3.bf16.msra.mxu0 %v4571_v40  ;;  %4199 = vmatpush3.bf16.msra.mxu1 %v4571_v40  ;;  %v4606_v11 = vld [vmem:[%s4984_s8 + $0x78] sm:$0xff]   ;;  %v4608_v13 = vld [vmem:[%s4984_s8 + $0x80] sm:$0xff]   ;;  %v4610_v15 = vld [vmem:[%s4984_s8 + $0x88] sm:$0xff]  }
  0x5f   : > { %4084 = vmatprep.subr.bf16.mxu0 %v4702_v37  ;;  %4200 = vmatprep.subr.bf16.mxu1 %v4702_v37  ;;  %v4607_v12 = vld [vmem:[%s4984_s8 + $0x13c] sm:$0xff]   ;;  %v4609_v14 = vld [vmem:[%s4984_s8 + $0x144] sm:$0xff]   ;;  %v4611_v16 = vld [vmem:[%s4984_s8 + $0x14c] sm:$0xff]  }
  0x60   : > { %v4612_v17 = vld [vmem:[%s4984_s8 + $0x90] sm:$0xff]   ;;  %v4614_v19 = vld [vmem:[%s4984_s8 + $0x98] sm:$0xff]   ;;  %v4616_v21 = vld [vmem:[%s4984_s8 + $0xa0] sm:$0xff]  }
  0x61   : > { %v4613_v18 = vld [vmem:[%s4984_s8 + $0x154] sm:$0xff]   ;;  %v4615_v20 = vld [vmem:[%s4984_s8 + $0x15c] sm:$0xff]   ;;  %v4617_v22 = vld [vmem:[%s4984_s8 + $0x164] sm:$0xff]  }
  0x62   : > { %4085 = vmatpush3.bf16.msra.mxu0 %v4572_v41  ;;  %4201 = vmatpush3.bf16.msra.mxu1 %v4572_v41  ;;  %v4618_v23 = vld [vmem:[%s4984_s8 + $0xa8] sm:$0xff]   ;;  %v4620_v25 = vld [vmem:[%s4984_s8 + $0xb0] sm:$0xff]   ;;  %v4622_v27 = vld [vmem:[%s4984_s8 + $0xb8] sm:$0xff]  }
  0x63   : > { %4086 = vmatprep.subr.bf16.mxu0 %v4702_v37  ;;  %4202 = vmatprep.subr.bf16.mxu1 %v4702_v37  ;;  %v4619_v24 = vld [vmem:[%s4984_s8 + $0x16c] sm:$0xff]   ;;  %v4621_v26 = vld [vmem:[%s4984_s8 + $0x174] sm:$0xff]   ;;  %v4623_v28 = vld [vmem:[%s4984_s8 + $0x17c] sm:$0xff]  }
  0x64   : > { %v4624_v29 = vld [vmem:[%s4984_s8 + $0xc0] ss:$0 sps:$4 sm:$0xff]   ;;  %v4625_v30 = vld [vmem:[%s4984_s8 + $0x184] ss:$0 sps:$4 sm:$0xff]   ;;  %v4626_v31 = vld [vmem:[%s4984_s8 + $0x188] sm:$0xff]  }
  0x65   : > { %v4627_v32 = vld [vmem:[%s4984_s8 + $0x24c] sm:$0xff]   ;;  %v4629_v34 = vld [vmem:[%s4984_s8 + $0x254] sm:$0xff]  }
  0x66   : > { %4087 = vmatpush3.bf16.msra.mxu0 %v4573_v42  ;;  %4203 = vmatpush3.bf16.msra.mxu1 %v4573_v42  ;;  %v4628_v33 = vld [vmem:[%s4984_s8 + $0x190] sm:$0xff]  }
  0x67   : > { %4088 = vmatprep.subr.bf16.mxu0 %v4702_v37  ;;  %4204 = vmatprep.subr.bf16.mxu1 %v4702_v37 }
  0x6a   : > { %4089 = vmatpush3.bf16.msra.mxu0 %v4574_v43  ;;  %4205 = vmatpush3.bf16.msra.mxu1 %v4574_v43 }
  0x6b   : > { %4090 = vmatprep.subr.bf16.mxu0 %v4702_v37  ;;  %4206 = vmatprep.subr.bf16.mxu1 %v4702_v37 }
  0x6e   : > { %4091 = vmatpush3.bf16.msra.mxu0 %v4575_v44  ;;  %4207 = vmatpush3.bf16.msra.mxu1 %v4575_v44 }
  0x6f   : > { %4308 = vmatprep.subr.bf16.mxu0 %v4702_v37  ;;  %4424 = vmatprep.subr.bf16.mxu1 %v4702_v37 }
  0x71   : > { %4093 = vmatmul.mubr.bf16.vlgmr.msra.gmra.mrb[0].mxu0 %v4576_v45  ;;  %4209 = vmatmul.mubr.bf16.vlgmr.msra.gmra.mrb[0].mxu1 %v4577_v46 }
  0x72   : > { %4309 = vmatpush3.bf16.msra.mxu0 %v4568_v36  ;;  %4425 = vmatpush3.bf16.msra.mxu1 %v4568_v36 }
  0x73   : > { %4096 = vmatprep.mubr.msk.bf16.mxu0 %vm4703_vm0, %v4702_v37  ;;  %4212 = vmatprep.mubr.msk.bf16.mxu1 %vm4703_vm0, %v4702_v37 }
  0x74   : > { %4310 = vmatprep.subr.bf16.mxu0 %v4702_v37  ;;  %4426 = vmatprep.subr.bf16.mxu1 %v4702_v37 }
  0x76   : > { %4311 = vmatpush3.bf16.msra.mxu0 %v4569_v38  ;;  %4427 = vmatpush3.bf16.msra.mxu1 %v4569_v38 }
  0x77   : > { %4312 = vmatprep.subr.bf16.mxu0 %v4702_v37  ;;  %4428 = vmatprep.subr.bf16.mxu1 %v4702_v37 }
  0x79   : > { %4097 = vmatmul.mubr.bf16.gmra.mrb[4].mxu0 %v4578_v47  ;;  %4213 = vmatmul.mubr.bf16.gmra.mrb[4].mxu1 %v4579_v48 }
  0x7a   : > { %4100 = vmatprep.mubr.msk.bf16.mxu0 %vm4703_vm0, %v4702_v37  ;;  %4216 = vmatprep.mubr.msk.bf16.mxu1 %vm4703_vm0, %v4702_v37 }
  0x7b   : > { %4313 = vmatpush3.bf16.msra.mxu0 %v4570_v39  ;;  %4429 = vmatpush3.bf16.msra.mxu1 %v4570_v39 }
  0x7c   : > { %4314 = vmatprep.subr.bf16.mxu0 %v4702_v37  ;;  %4430 = vmatprep.subr.bf16.mxu1 %v4702_v37 }
  0x7f   : > { %4315 = vmatpush3.bf16.msra.mxu0 %v4571_v40  ;;  %4431 = vmatpush3.bf16.msra.mxu1 %v4571_v40 }
  0x80   : > { %4316 = vmatprep.subr.bf16.mxu0 %v4702_v37  ;;  %4432 = vmatprep.subr.bf16.mxu1 %v4702_v37 }
  0x81   : > { %4101 = vmatmul.mubr.bf16.gmra.mrb[8].mxu0 %v4580_v49  ;;  %4217 = vmatmul.mubr.bf16.gmra.mrb[8].mxu1 %v4581_v50 }
  0x82   : > { %4104 = vmatprep.mubr.msk.bf16.mxu0 %vm4703_vm0, %v4702_v37  ;;  %4220 = vmatprep.mubr.msk.bf16.mxu1 %vm4703_vm0, %v4702_v37 }
  0x83   : > { %4317 = vmatpush3.bf16.msra.mxu0 %v4572_v41  ;;  %4433 = vmatpush3.bf16.msra.mxu1 %v4572_v41 }
  0x84   : > { %4318 = vmatprep.subr.bf16.mxu0 %v4702_v37  ;;  %4434 = vmatprep.subr.bf16.mxu1 %v4702_v37 }
  0x87   : > { %4319 = vmatpush3.bf16.msra.mxu0 %v4573_v42  ;;  %4435 = vmatpush3.bf16.msra.mxu1 %v4573_v42 }
  0x88   : > { %4320 = vmatprep.subr.bf16.mxu0 %v4702_v37  ;;  %4436 = vmatprep.subr.bf16.mxu1 %v4702_v37 }
  0x89   : > { %4105 = vmatmul.mubr.bf16.gmra.mrb[12].mxu0 %v4582_v51  ;;  %4221 = vmatmul.mubr.bf16.gmra.mrb[12].mxu1 %v4583_v52 }
  0x8a   : > { %4108 = vmatprep.mubr.msk.bf16.mxu0 %vm4703_vm0, %v4702_v37  ;;  %4224 = vmatprep.mubr.msk.bf16.mxu1 %vm4703_vm0, %v4702_v37 }
  0x8b   : > { %4321 = vmatpush3.bf16.msra.mxu0 %v4574_v43  ;;  %4437 = vmatpush3.bf16.msra.mxu1 %v4574_v43  ;;  %v4630_v43 = vld [vmem:[%s4984_s8 + $0x198] sm:$0xff]  }
  0x8c   : > { %4322 = vmatprep.subr.bf16.mxu0 %v4702_v37  ;;  %4438 = vmatprep.subr.bf16.mxu1 %v4702_v37 }
  0x8f   : > { %4323 = vmatpush3.bf16.msra.mxu0 %v4575_v44  ;;  %4439 = vmatpush3.bf16.msra.mxu1 %v4575_v44  ;;  %v4631_v44 = vld [vmem:[%s4984_s8 + $0x25c] sm:$0xff]  }
  0x91   : > { %4109 = vmatmul.mubr.bf16.gmra.mrb[16].mxu0 %v4584_v53  ;;  %4225 = vmatmul.mubr.bf16.gmra.mrb[16].mxu1 %v4585_v54 }
  0x92   : > { %4112 = vmatprep.mubr.msk.bf16.mxu0 %vm4703_vm0, %v4702_v37  ;;  %4228 = vmatprep.mubr.msk.bf16.mxu1 %vm4703_vm0, %v4702_v37 }
  0x99   : > { %4113 = vmatmul.mubr.bf16.gmra.mrb[20].mxu0 %v4586_v55  ;;  %4229 = vmatmul.mubr.bf16.gmra.mrb[20].mxu1 %v4587_v56 }
  0x9a   : > { %4116 = vmatprep.mubr.msk.bf16.mxu0 %vm4703_vm0, %v4702_v37  ;;  %4232 = vmatprep.mubr.msk.bf16.mxu1 %vm4703_vm0, %v4702_v37 }
  0xa1   : > { %4117 = vmatmul.mubr.bf16.gmra.mrb[24].mxu0 %v4588_v57  ;;  %4233 = vmatmul.mubr.bf16.gmra.mrb[24].mxu1 %v4589_v58 }
  0xa2   : > { %4120 = vmatprep.mubr.msk.bf16.mxu0 %vm4703_vm0, %v4702_v37  ;;  %4236 = vmatprep.mubr.msk.bf16.mxu1 %vm4703_vm0, %v4702_v37 }
  0xa9   : > { %4121 = vmatmul.mubr.bf16.gmra.mrb[28].mxu0 %v4590_v59  ;;  %4237 = vmatmul.mubr.bf16.gmra.mrb[28].mxu1 %v4591_v60 }
  0xaa   : > { %4124 = vmatprep.mubr.msk.bf16.mxu0 %vm4703_vm0, %v4702_v37  ;;  %4240 = vmatprep.mubr.msk.bf16.mxu1 %vm4703_vm0, %v4702_v37 }
  0xb1   : > { %4125 = vmatmul.mubr.bf16.gmra.mrb[32].mxu0 %v4592_v61  ;;  %4241 = vmatmul.mubr.bf16.gmra.mrb[32].mxu1 %v4593_v62 }
  0xb2   : > { %4128 = vmatprep.mubr.msk.bf16.mxu0 %vm4703_vm0, %v4702_v37  ;;  %4244 = vmatprep.mubr.msk.bf16.mxu1 %vm4703_vm0, %v4702_v37 }
  0xb9   : > { %4129 = vmatmul.mubr.bf16.gmra.mrb[36].mxu0 %v4594_v63  ;;  %4245 = vmatmul.mubr.bf16.gmra.mrb[36].mxu1 %v4595_v0  ;;  %v4632_v63 = vld [vmem:[%s4984_s8 + $0x1a0] sm:$0xff]  }
  0xba   : > { %4132 = vmatprep.mubr.msk.bf16.mxu0 %vm4703_vm0, %v4702_v37  ;;  %4248 = vmatprep.mubr.msk.bf16.mxu1 %vm4703_vm0, %v4702_v37  ;;  %v4633_v0 = vld [vmem:[%s4984_s8 + $0x264] sm:$0xff]  }
  0xc1   : > { %4133 = vmatmul.mubr.bf16.gmra.mrb[40].mxu0 %v4596_v1  ;;  %4249 = vmatmul.mubr.bf16.gmra.mrb[40].mxu1 %v4597_v2 }
  0xc2   : > { %4136 = vmatprep.mubr.msk.bf16.mxu0 %vm4703_vm0, %v4702_v37  ;;  %4252 = vmatprep.mubr.msk.bf16.mxu1 %vm4703_vm0, %v4702_v37 }
  0xc9   : > { %4137 = vmatmul.mubr.bf16.gmra.mrb[44].mxu0 %v4598_v3  ;;  %4253 = vmatmul.mubr.bf16.gmra.mrb[44].mxu1 %v4599_v4 }
  0xca   : > { %4140 = vmatprep.mubr.msk.bf16.mxu0 %vm4703_vm0, %v4702_v37  ;;  %4256 = vmatprep.mubr.msk.bf16.mxu1 %vm4703_vm0, %v4702_v37 }
  0xd1   : > { %4141 = vmatmul.mubr.bf16.gmra.mrb[48].mxu0 %v4600_v5  ;;  %4257 = vmatmul.mubr.bf16.gmra.mrb[48].mxu1 %v4601_v6 }
  0xd2   : > { %4144 = vmatprep.mubr.msk.bf16.mxu0 %vm4703_vm0, %v4702_v37  ;;  %4260 = vmatprep.mubr.msk.bf16.mxu1 %vm4703_vm0, %v4702_v37 }
  0xd9   : > { %4145 = vmatmul.mubr.bf16.gmra.mrb[52].mxu0 %v4602_v7  ;;  %4261 = vmatmul.mubr.bf16.gmra.mrb[52].mxu1 %v4603_v8 }
  0xda   : > { %4148 = vmatprep.mubr.msk.bf16.mxu0 %vm4703_vm0, %v4702_v37  ;;  %4264 = vmatprep.mubr.msk.bf16.mxu1 %vm4703_vm0, %v4702_v37 }
  0xe1   : > { %4149 = vmatmul.mubr.bf16.gmra.mrb[56].mxu0 %v4604_v9  ;;  %4265 = vmatmul.mubr.bf16.gmra.mrb[56].mxu1 %v4605_v10 }
  0xe2   : > { %4152 = vmatprep.mubr.msk.bf16.mxu0 %vm4703_vm0, %v4702_v37  ;;  %4268 = vmatprep.mubr.msk.bf16.mxu1 %vm4703_vm0, %v4702_v37 }
  0xe9   : > { %4153 = vmatmul.mubr.bf16.gmra.mrb[60].mxu0 %v4606_v11  ;;  %4269 = vmatmul.mubr.bf16.gmra.mrb[60].mxu1 %v4607_v12 }
  0xea   : > { %4156 = vmatprep.mubr.msk.bf16.mxu0 %vm4703_vm0, %v4702_v37  ;;  %4272 = vmatprep.mubr.msk.bf16.mxu1 %vm4703_vm0, %v4702_v37 }
  0xf1   : > { %4157 = vmatmul.mubr.bf16.gmra.mrb[64].mxu0 %v4608_v13  ;;  %4273 = vmatmul.mubr.bf16.gmra.mrb[64].mxu1 %v4609_v14 }
  0xf2   : > { %4160 = vmatprep.mubr.msk.bf16.mxu0 %vm4703_vm0, %v4702_v37  ;;  %4276 = vmatprep.mubr.msk.bf16.mxu1 %vm4703_vm0, %v4702_v37 }
  0xf9   : > { %4161 = vmatmul.mubr.bf16.gmra.mrb[68].mxu0 %v4610_v15  ;;  %4277 = vmatmul.mubr.bf16.gmra.mrb[68].mxu1 %v4611_v16 }
  0xfa   : > { %4164 = vmatprep.mubr.msk.bf16.mxu0 %vm4703_vm0, %v4702_v37  ;;  %4280 = vmatprep.mubr.msk.bf16.mxu1 %vm4703_vm0, %v4702_v37 }
 0x101   : > { %4165 = vmatmul.mubr.bf16.gmra.mrb[72].mxu0 %v4612_v17  ;;  %4281 = vmatmul.mubr.bf16.gmra.mrb[72].mxu1 %v4613_v18 }
 0x102   : > { %4168 = vmatprep.mubr.msk.bf16.mxu0 %vm4703_vm0, %v4702_v37  ;;  %4284 = vmatprep.mubr.msk.bf16.mxu1 %vm4703_vm0, %v4702_v37 }
 0x109   : > { %4169 = vmatmul.mubr.bf16.gmra.mrb[76].mxu0 %v4614_v19  ;;  %4285 = vmatmul.mubr.bf16.gmra.mrb[76].mxu1 %v4615_v20  ;;  %v4634_v19 = vld [vmem:[%s4984_s8 + $0x1a8] sm:$0xff]  }
 0x10a   : > { %4172 = vmatprep.mubr.msk.bf16.mxu0 %vm4703_vm0, %v4702_v37  ;;  %4288 = vmatprep.mubr.msk.bf16.mxu1 %vm4703_vm0, %v4702_v37  ;;  %v4635_v20 = vld [vmem:[%s4984_s8 + $0x26c] sm:$0xff]  }
 0x111   : > { %4173 = vmatmul.mubr.bf16.gmra.mrb[80].mxu0 %v4616_v21  ;;  %4289 = vmatmul.mubr.bf16.gmra.mrb[80].mxu1 %v4617_v22 }
 0x112   : > { %4176 = vmatprep.mubr.msk.bf16.mxu0 %vm4703_vm0, %v4702_v37  ;;  %4292 = vmatprep.mubr.msk.bf16.mxu1 %vm4703_vm0, %v4702_v37 }
 0x119   : > { %4177 = vmatmul.mubr.bf16.gmra.mrb[84].mxu0 %v4618_v23  ;;  %4293 = vmatmul.mubr.bf16.gmra.mrb[84].mxu1 %v4619_v24 }
 0x11a   : > { %4180 = vmatprep.mubr.msk.bf16.mxu0 %vm4703_vm0, %v4702_v37  ;;  %4296 = vmatprep.mubr.msk.bf16.mxu1 %vm4703_vm0, %v4702_v37 }
 0x121   : > { %4181 = vmatmul.mubr.bf16.gmra.mrb[88].mxu0 %v4620_v25  ;;  %4297 = vmatmul.mubr.bf16.gmra.mrb[88].mxu1 %v4621_v26 }
 0x122   : > { %4184 = vmatprep.mubr.msk.bf16.mxu0 %vm4703_vm0, %v4702_v37  ;;  %4300 = vmatprep.mubr.msk.bf16.mxu1 %vm4703_vm0, %v4702_v37 }
 0x129   : > { %4185 = vmatmul.mubr.bf16.gmra.mrb[92].mxu0 %v4622_v27  ;;  %4301 = vmatmul.mubr.bf16.gmra.mrb[92].mxu1 %v4623_v28 }
 0x12a   : > { %4188 = vmatprep.mubr.msk.bf16.mxu0 %vm4703_vm0, %v4702_v37  ;;  %4304 = vmatprep.mubr.msk.bf16.mxu1 %vm4703_vm0, %v4702_v37 }
 0x131   : > { %4189 = vmatmul.mubr.bf16.gmra.mrb[96].mxu0 %v4624_v29  ;;  %4305 = vmatmul.mubr.bf16.gmra.mrb[96].mxu1 %v4625_v30 }
 0x132   : > { %4324 = vmatprep.mubr.msk.bf16.mxu0 %vm4703_vm0, %v4702_v37  ;;  %4440 = vmatprep.mubr.msk.bf16.mxu1 %vm4703_vm0, %v4702_v37 }
 0x139   : > { %4325 = vmatmul.mubr.bf16.vlgmr.msra.gmra.mrb[100].mxu0 %v4626_v31  ;;  %4441 = vmatmul.mubr.bf16.vlgmr.msra.gmra.mrb[100].mxu1 %v4627_v32 }
 0x13a   : > { %4328 = vmatprep.mubr.msk.bf16.mxu0 %vm4703_vm0, %v4702_v37  ;;  %4444 = vmatprep.mubr.msk.bf16.mxu1 %vm4703_vm0, %v4702_v37 }
 0x141   : > { %4329 = vmatmul.mubr.bf16.gmra.mrb[104].mxu0 %v4628_v33  ;;  %4445 = vmatmul.mubr.bf16.gmra.mrb[104].mxu1 %v4629_v34 }
 0x142   : > { %4332 = vmatprep.mubr.msk.bf16.mxu0 %vm4703_vm0, %v4702_v37  ;;  %4448 = vmatprep.mubr.msk.bf16.mxu1 %vm4703_vm0, %v4702_v37 }
 0x144   : > { %v1298_v36 = vpop.f32.mrb[0].mxu0  ;;  %v1777_v38 = vpop.f32.mrb[0].mxu1 }
 0x145   : > { %v1299_v39 = vadd.f32 %v5188_v35, %v1298_v36  ;;  %v1778_v40 = vadd.f32 %v5188_v35, %v1777_v38  ;;  %v4094_v41 = vpop.f32.mrb[1].mxu0  ;;  %v4210_v42 = vpop.f32.mrb[1].mxu1 }
 0x146   : > { %v1301_v45 = vpop.f32.mrb[2].mxu0  ;;  %v1780_v46 = vpop.f32.mrb[2].mxu1  ;;  %v4636_v41 = vld [vmem:[%s4984_s8 + $0x1b0] sm:$0xff]  }
 0x147   : > { %v1496_v47 = vmax.f32 %v1299_v39, 0.0  ;;  %v1975_v48 = vmax.f32 %v1778_v40, 0.0  ;;  %v1302_v49 = vadd.f32 %v5188_v35, %v1301_v45  ;;  %v1781_v50 = vadd.f32 %v5188_v35, %v1780_v46  ;;  %v4095_v51 = vpop.f32.mrb[3].mxu0  ;;  %v4211_v52 = vpop.f32.mrb[3].mxu1  ;;  %v4637_v42 = vld [vmem:[%s4984_s8 + $0x274] sm:$0xff]  }
 0x149   : > { %v5200_v53 = vmax.f32 %v1496_v47, %v1975_v48  ;;  %v1497_v54 = vmax.f32 %v1302_v49, 0.0  ;;  %v1976_v55 = vmax.f32 %v1781_v50, 0.0  ;;  %4333 = vmatmul.mubr.bf16.gmra.mrb[108].mxu0 %v4630_v43  ;;  %4449 = vmatmul.mubr.bf16.gmra.mrb[108].mxu1 %v4631_v44 }
 0x14a   : > { %4336 = vmatprep.mubr.msk.bf16.mxu0 %vm4703_vm0, %v4702_v37  ;;  %4452 = vmatprep.mubr.msk.bf16.mxu1 %vm4703_vm0, %v4702_v37 }
 0x14b   : > { %v5206_v56 = vmax.f32 %v1497_v54, %v1976_v55 }
 0x14c   : > { %v1306_v57 = vpop.f32.mrb[4].mxu0  ;;  %v1785_v58 = vpop.f32.mrb[4].mxu1 }
 0x14d   : > { %v1307_v59 = vadd.f32 %v5188_v35, %v1306_v57  ;;  %v1786_v60 = vadd.f32 %v5188_v35, %v1785_v58  ;;  %v4098_v61 = vpop.f32.mrb[5].mxu0  ;;  %v4214_v62 = vpop.f32.mrb[5].mxu1 }
 0x14e   : > { %v1309_v1 = vpop.f32.mrb[6].mxu0  ;;  %v1788_v2 = vpop.f32.mrb[6].mxu1 }
 0x14f   : > { %v1498_v3 = vmax.f32 %v1307_v59, 0.0  ;;  %v1977_v4 = vmax.f32 %v1786_v60, 0.0  ;;  %v1310_v5 = vadd.f32 %v5188_v35, %v1309_v1  ;;  %v1789_v6 = vadd.f32 %v5188_v35, %v1788_v2  ;;  %v4099_v7 = vpop.f32.mrb[7].mxu0  ;;  %v4215_v8 = vpop.f32.mrb[7].mxu1 }
 0x151   : > { %v5214_v9 = vmax.f32 %v1498_v3, %v1977_v4  ;;  %v1499_v10 = vmax.f32 %v1310_v5, 0.0  ;;  %v1978_v11 = vmax.f32 %v1789_v6, 0.0  ;;  %4337 = vmatmul.mubr.bf16.gmra.mrb[112].mxu0 %v4632_v63  ;;  %4453 = vmatmul.mubr.bf16.gmra.mrb[112].mxu1 %v4633_v0  ;;  %v4638_v63 = vld [vmem:[%s4984_s8 + $0x1b8] sm:$0xff]  }
 0x152   : > { %4340 = vmatprep.mubr.msk.bf16.mxu0 %vm4703_vm0, %v4702_v37  ;;  %4456 = vmatprep.mubr.msk.bf16.mxu1 %vm4703_vm0, %v4702_v37  ;;  %v4639_v0 = vld [vmem:[%s4984_s8 + $0x27c] sm:$0xff]  }
 0x153   : > { %v5220_v12 = vmax.f32 %v1499_v10, %v1978_v11 }
 0x154   : > { %v1314_v13 = vpop.f32.mrb[8].mxu0  ;;  %v1793_v14 = vpop.f32.mrb[8].mxu1 }
 0x155   : > { %v1315_v15 = vadd.f32 %v5188_v35, %v1314_v13  ;;  %v1794_v16 = vadd.f32 %v5188_v35, %v1793_v14  ;;  %v4102_v17 = vpop.f32.mrb[9].mxu0  ;;  %v4218_v18 = vpop.f32.mrb[9].mxu1 }
 0x156   : > { %v1317_v21 = vpop.f32.mrb[10].mxu0  ;;  %v1796_v22 = vpop.f32.mrb[10].mxu1 }
 0x157   : > { %v1500_v23 = vmax.f32 %v1315_v15, 0.0  ;;  %v1979_v24 = vmax.f32 %v1794_v16, 0.0  ;;  %v1318_v25 = vadd.f32 %v5188_v35, %v1317_v21  ;;  %v1797_v26 = vadd.f32 %v5188_v35, %v1796_v22  ;;  %v4103_v27 = vpop.f32.mrb[11].mxu0  ;;  %v4219_v28 = vpop.f32.mrb[11].mxu1  ;;  %v4640_v21 = vld [vmem:[%s4984_s8 + $0x1c0] sm:$0xff]  }
 0x158   : > { %v4641_v22 = vld [vmem:[%s4984_s8 + $0x284] sm:$0xff]  }
 0x159   : > { %v5228_v29 = vmax.f32 %v1500_v23, %v1979_v24  ;;  %v1501_v30 = vmax.f32 %v1318_v25, 0.0  ;;  %v1980_v31 = vmax.f32 %v1797_v26, 0.0  ;;  %4341 = vmatmul.mubr.bf16.gmra.mrb[116].mxu0 %v4634_v19  ;;  %4457 = vmatmul.mubr.bf16.gmra.mrb[116].mxu1 %v4635_v20 }
 0x15a   : > { %4344 = vmatprep.mubr.msk.bf16.mxu0 %vm4703_vm0, %v4702_v37  ;;  %4460 = vmatprep.mubr.msk.bf16.mxu1 %vm4703_vm0, %v4702_v37 }
 0x15b   : > { %v5234_v32 = vmax.f32 %v1501_v30, %v1980_v31 }
 0x15c   : > { %v1322_v33 = vpop.f32.mrb[12].mxu0  ;;  %v1801_v34 = vpop.f32.mrb[12].mxu1 }
 0x15d   : > { %v1323_v36 = vadd.f32 %v5188_v35, %v1322_v33  ;;  %v1802_v38 = vadd.f32 %v5188_v35, %v1801_v34  ;;  %v4106_v39 = vpop.f32.mrb[13].mxu0  ;;  %v4222_v40 = vpop.f32.mrb[13].mxu1 }
 0x15e   : > { %v1325_v43 = vpop.f32.mrb[14].mxu0  ;;  %v1804_v44 = vpop.f32.mrb[14].mxu1 }
 0x15f   : > { %v1502_v45 = vmax.f32 %v1323_v36, 0.0  ;;  %v1981_v46 = vmax.f32 %v1802_v38, 0.0  ;;  %v1326_v47 = vadd.f32 %v5188_v35, %v1325_v43  ;;  %v1805_v48 = vadd.f32 %v5188_v35, %v1804_v44  ;;  %v4107_v49 = vpop.f32.mrb[15].mxu0  ;;  %v4223_v50 = vpop.f32.mrb[15].mxu1 }
 0x161   : > { %v5242_v51 = vmax.f32 %v1502_v45, %v1981_v46  ;;  %v1503_v52 = vmax.f32 %v1326_v47, 0.0  ;;  %v1982_v54 = vmax.f32 %v1805_v48, 0.0  ;;  %4345 = vmatmul.mubr.bf16.gmra.mrb[120].mxu0 %v4636_v41  ;;  %4461 = vmatmul.mubr.bf16.gmra.mrb[120].mxu1 %v4637_v42  ;;  %v4642_v45 = vld [vmem:[%s4984_s8 + $0x1c8] sm:$0xff]  }
 0x162   : > { %4348 = vmatprep.mubr.msk.bf16.mxu0 %vm4703_vm0, %v4702_v37  ;;  %4464 = vmatprep.mubr.msk.bf16.mxu1 %vm4703_vm0, %v4702_v37  ;;  %v4643_v46 = vld [vmem:[%s4984_s8 + $0x28c] sm:$0xff]  }
 0x163   : > { %v5248_v55 = vmax.f32 %v1503_v52, %v1982_v54 }
 0x164   : > { %v1330_v57 = vpop.f32.mrb[16].mxu0  ;;  %v1809_v58 = vpop.f32.mrb[16].mxu1 }
 0x165   : > { %v1331_v59 = vadd.f32 %v5188_v35, %v1330_v57  ;;  %v1810_v60 = vadd.f32 %v5188_v35, %v1809_v58  ;;  %v4110_v61 = vpop.f32.mrb[17].mxu0  ;;  %v4226_v62 = vpop.f32.mrb[17].mxu1 }
 0x166   : > { %v1333_v1 = vpop.f32.mrb[18].mxu0  ;;  %v1812_v2 = vpop.f32.mrb[18].mxu1 }
 0x167   : > { %v1504_v3 = vmax.f32 %v1331_v59, 0.0  ;;  %v1983_v4 = vmax.f32 %v1810_v60, 0.0  ;;  %v1334_v5 = vadd.f32 %v5188_v35, %v1333_v1  ;;  %v1813_v6 = vadd.f32 %v5188_v35, %v1812_v2  ;;  %v4111_v7 = vpop.f32.mrb[19].mxu0  ;;  %v4227_v8 = vpop.f32.mrb[19].mxu1 }
 0x169   : > { %v5256_v10 = vmax.f32 %v1504_v3, %v1983_v4  ;;  %v1505_v11 = vmax.f32 %v1334_v5, 0.0  ;;  %v1984_v13 = vmax.f32 %v1813_v6, 0.0  ;;  %4349 = vmatmul.mubr.bf16.gmra.mrb[124].mxu0 %v4638_v63  ;;  %4465 = vmatmul.mubr.bf16.gmra.mrb[124].mxu1 %v4639_v0  ;;  %v4644_v5 = vld [vmem:[%s4984_s8 + $0x1d0] sm:$0xff]  }
 0x16a   : > { %4352 = vmatprep.mubr.msk.bf16.mxu0 %vm4703_vm0, %v4702_v37  ;;  %4468 = vmatprep.mubr.msk.bf16.mxu1 %vm4703_vm0, %v4702_v37  ;;  %v4645_v6 = vld [vmem:[%s4984_s8 + $0x294] sm:$0xff]  }
 0x16b   : > { %v5262_v14 = vmax.f32 %v1505_v11, %v1984_v13 }
 0x16c   : > { %v1338_v15 = vpop.f32.mrb[20].mxu0  ;;  %v1817_v16 = vpop.f32.mrb[20].mxu1 }
 0x16d   : > { %v1339_v17 = vadd.f32 %v5188_v35, %v1338_v15  ;;  %v1818_v18 = vadd.f32 %v5188_v35, %v1817_v16  ;;  %v4114_v19 = vpop.f32.mrb[21].mxu0  ;;  %v4230_v20 = vpop.f32.mrb[21].mxu1 }
 0x16e   : > { %v1341_v23 = vpop.f32.mrb[22].mxu0  ;;  %v1820_v24 = vpop.f32.mrb[22].mxu1 }
 0x16f   : > { %v1506_v25 = vmax.f32 %v1339_v17, 0.0  ;;  %v1985_v26 = vmax.f32 %v1818_v18, 0.0  ;;  %v1342_v27 = vadd.f32 %v5188_v35, %v1341_v23  ;;  %v1821_v28 = vadd.f32 %v5188_v35, %v1820_v24  ;;  %v4115_v30 = vpop.f32.mrb[23].mxu0  ;;  %v4231_v31 = vpop.f32.mrb[23].mxu1 }
 0x170   : > { %v4646_v30 = vld [vmem:[%s4984_s8 + $0x1d8] sm:$0xff]  }
 0x171   : > { %v5270_v33 = vmax.f32 %v1506_v25, %v1985_v26  ;;  %v1507_v34 = vmax.f32 %v1342_v27, 0.0  ;;  %v1986_v36 = vmax.f32 %v1821_v28, 0.0  ;;  %4353 = vmatmul.mubr.bf16.gmra.mrb[128].mxu0 %v4640_v21  ;;  %4469 = vmatmul.mubr.bf16.gmra.mrb[128].mxu1 %v4641_v22  ;;  %v4647_v31 = vld [vmem:[%s4984_s8 + $0x29c] sm:$0xff]  }
 0x172   : > { %4356 = vmatprep.mubr.msk.bf16.mxu0 %vm4703_vm0, %v4702_v37  ;;  %4472 = vmatprep.mubr.msk.bf16.mxu1 %vm4703_vm0, %v4702_v37 }
 0x173   : > { %v5276_v38 = vmax.f32 %v1507_v34, %v1986_v36 }
 0x174   : > { %v1346_v39 = vpop.f32.mrb[24].mxu0  ;;  %v1825_v40 = vpop.f32.mrb[24].mxu1 }
 0x175   : > { %v1347_v41 = vadd.f32 %v5188_v35, %v1346_v39  ;;  %v1826_v42 = vadd.f32 %v5188_v35, %v1825_v40  ;;  %v4118_v43 = vpop.f32.mrb[25].mxu0  ;;  %v4234_v44 = vpop.f32.mrb[25].mxu1 }
 0x176   : > { %v1349_v47 = vpop.f32.mrb[26].mxu0  ;;  %v1828_v48 = vpop.f32.mrb[26].mxu1 }
 0x177   : > { %v1508_v49 = vmax.f32 %v1347_v41, 0.0  ;;  %v1987_v50 = vmax.f32 %v1826_v42, 0.0  ;;  %v1350_v52 = vadd.f32 %v5188_v35, %v1349_v47  ;;  %v1829_v54 = vadd.f32 %v5188_v35, %v1828_v48  ;;  %v4119_v57 = vpop.f32.mrb[27].mxu0  ;;  %v4235_v58 = vpop.f32.mrb[27].mxu1 }
 0x179   : > { %v5284_v59 = vmax.f32 %v1508_v49, %v1987_v50  ;;  %v1509_v60 = vmax.f32 %v1350_v52, 0.0  ;;  %v1988_v61 = vmax.f32 %v1829_v54, 0.0  ;;  %4357 = vmatmul.mubr.bf16.gmra.mrb[132].mxu0 %v4642_v45  ;;  %4473 = vmatmul.mubr.bf16.gmra.mrb[132].mxu1 %v4643_v46 }
 0x17a   : > { %4360 = vmatprep.mubr.msk.bf16.mxu0 %vm4703_vm0, %v4702_v37  ;;  %4476 = vmatprep.mubr.msk.bf16.mxu1 %vm4703_vm0, %v4702_v37 }
 0x17b   : > { %v5290_v62 = vmax.f32 %v1509_v60, %v1988_v61  ;;  %v4648_v60 = vld [vmem:[%s4984_s8 + $0x1e0] sm:$0xff]  }
 0x17c   : > { %v1354_v63 = vpop.f32.mrb[28].mxu0  ;;  %v1833_v0 = vpop.f32.mrb[28].mxu1  ;;  %v4649_v61 = vld [vmem:[%s4984_s8 + $0x2a4] sm:$0xff]  }
 0x17d   : > { %v1355_v1 = vadd.f32 %v5188_v35, %v1354_v63  ;;  %v1834_v2 = vadd.f32 %v5188_v35, %v1833_v0  ;;  %v4122_v3 = vpop.f32.mrb[29].mxu0  ;;  %v4238_v4 = vpop.f32.mrb[29].mxu1 }
 0x17e   : > { %v1357_v7 = vpop.f32.mrb[30].mxu0  ;;  %v1836_v8 = vpop.f32.mrb[30].mxu1 }
 0x17f   : > { %v1510_v11 = vmax.f32 %v1355_v1, 0.0  ;;  %v1989_v13 = vmax.f32 %v1834_v2, 0.0  ;;  %v1358_v15 = vadd.f32 %v5188_v35, %v1357_v7  ;;  %v1837_v16 = vadd.f32 %v5188_v35, %v1836_v8  ;;  %v4123_v17 = vpop.f32.mrb[31].mxu0  ;;  %v4239_v18 = vpop.f32.mrb[31].mxu1 }
 0x181   : > { %v5298_v19 = vmax.f32 %v1510_v11, %v1989_v13  ;;  %v1511_v20 = vmax.f32 %v1358_v15, 0.0  ;;  %v1990_v21 = vmax.f32 %v1837_v16, 0.0  ;;  %4361 = vmatmul.mubr.bf16.gmra.mrb[136].mxu0 %v4644_v5  ;;  %4477 = vmatmul.mubr.bf16.gmra.mrb[136].mxu1 %v4645_v6 }
 0x182   : > { %4364 = vmatprep.mubr.msk.bf16.mxu0 %vm4703_vm0, %v4702_v37  ;;  %4480 = vmatprep.mubr.msk.bf16.mxu1 %vm4703_vm0, %v4702_v37 }
 0x183   : > { %v5304_v22 = vmax.f32 %v1511_v20, %v1990_v21 }
 0x184   : > { %v1362_v23 = vpop.f32.mrb[32].mxu0  ;;  %v1841_v24 = vpop.f32.mrb[32].mxu1 }
 0x185   : > { %v1363_v25 = vadd.f32 %v5188_v35, %v1362_v23  ;;  %v1842_v26 = vadd.f32 %v5188_v35, %v1841_v24  ;;  %v4126_v27 = vpop.f32.mrb[33].mxu0  ;;  %v4242_v28 = vpop.f32.mrb[33].mxu1  ;;  %v4650_v23 = vld [vmem:[%s4984_s8 + $0x1e8] sm:$0xff]  }
 0x186   : > { %v1365_v34 = vpop.f32.mrb[34].mxu0  ;;  %v1844_v36 = vpop.f32.mrb[34].mxu1  ;;  %v4651_v24 = vld [vmem:[%s4984_s8 + $0x2ac] sm:$0xff]  }
 0x187   : > { %v1512_v39 = vmax.f32 %v1363_v25, 0.0  ;;  %v1991_v40 = vmax.f32 %v1842_v26, 0.0  ;;  %v1366_v41 = vadd.f32 %v5188_v35, %v1365_v34  ;;  %v1845_v42 = vadd.f32 %v5188_v35, %v1844_v36  ;;  %v4127_v43 = vpop.f32.mrb[35].mxu0  ;;  %v4243_v44 = vpop.f32.mrb[35].mxu1 }
 0x189   : > { %v5312_v45 = vmax.f32 %v1512_v39, %v1991_v40  ;;  %v1513_v46 = vmax.f32 %v1366_v41, 0.0  ;;  %v1992_v47 = vmax.f32 %v1845_v42, 0.0  ;;  %4365 = vmatmul.mubr.bf16.gmra.mrb[140].mxu0 %v4646_v30  ;;  %4481 = vmatmul.mubr.bf16.gmra.mrb[140].mxu1 %v4647_v31 }
 0x18a   : > { %4368 = vmatprep.mubr.msk.bf16.mxu0 %vm4703_vm0, %v4702_v37  ;;  %4484 = vmatprep.mubr.msk.bf16.mxu1 %vm4703_vm0, %v4702_v37 }
 0x18b   : > { %v5318_v48 = vmax.f32 %v1513_v46, %v1992_v47 }
 0x18c   : > { %v1370_v49 = vpop.f32.mrb[36].mxu0  ;;  %v1849_v50 = vpop.f32.mrb[36].mxu1 }
 0x18d   : > { %v1371_v52 = vadd.f32 %v5188_v35, %v1370_v49  ;;  %v1850_v54 = vadd.f32 %v5188_v35, %v1849_v50  ;;  %v4130_v57 = vpop.f32.mrb[37].mxu0  ;;  %v4246_v58 = vpop.f32.mrb[37].mxu1 }
 0x18e   : > { %v1373_v63 = vpop.f32.mrb[38].mxu0  ;;  %v1852_v0 = vpop.f32.mrb[38].mxu1 }
 0x18f   : > { %v1514_v1 = vmax.f32 %v1371_v52, 0.0  ;;  %v1993_v2 = vmax.f32 %v1850_v54, 0.0  ;;  %v1374_v3 = vadd.f32 %v5188_v35, %v1373_v63  ;;  %v1853_v4 = vadd.f32 %v5188_v35, %v1852_v0  ;;  %v4131_v5 = vpop.f32.mrb[39].mxu0  ;;  %v4247_v6 = vpop.f32.mrb[39].mxu1  ;;  %v4652_v52 = vld [vmem:[%s4984_s8 + $0x1f0] sm:$0xff]  }
 0x190   : > { %v4653_v54 = vld [vmem:[%s4984_s8 + $0x2b4] sm:$0xff]  }
 0x191   : > { %v5326_v7 = vmax.f32 %v1514_v1, %v1993_v2  ;;  %v1515_v8 = vmax.f32 %v1374_v3, 0.0  ;;  %v1994_v11 = vmax.f32 %v1853_v4, 0.0  ;;  %4369 = vmatmul.mubr.bf16.gmra.mrb[144].mxu0 %v4648_v60  ;;  %4485 = vmatmul.mubr.bf16.gmra.mrb[144].mxu1 %v4649_v61 }
 0x192   : > { %4372 = vmatprep.mubr.msk.bf16.mxu0 %vm4703_vm0, %v4702_v37  ;;  %4488 = vmatprep.mubr.msk.bf16.mxu1 %vm4703_vm0, %v4702_v37 }
 0x193   : > { %v5332_v13 = vmax.f32 %v1515_v8, %v1994_v11 }
 0x194   : > { %v1378_v15 = vpop.f32.mrb[40].mxu0  ;;  %v1857_v16 = vpop.f32.mrb[40].mxu1 }
 0x195   : > { %v1379_v17 = vadd.f32 %v5188_v35, %v1378_v15  ;;  %v1858_v18 = vadd.f32 %v5188_v35, %v1857_v16  ;;  %v4134_v20 = vpop.f32.mrb[41].mxu0  ;;  %v4250_v21 = vpop.f32.mrb[41].mxu1 }
 0x196   : > { %v1381_v25 = vpop.f32.mrb[42].mxu0  ;;  %v1860_v26 = vpop.f32.mrb[42].mxu1  ;;  %v4654_v20 = vld [vmem:[%s4984_s8 + $0x1f8] sm:$0xff]  }
 0x197   : > { %v1516_v27 = vmax.f32 %v1379_v17, 0.0  ;;  %v1995_v28 = vmax.f32 %v1858_v18, 0.0  ;;  %v1382_v30 = vadd.f32 %v5188_v35, %v1381_v25  ;;  %v1861_v31 = vadd.f32 %v5188_v35, %v1860_v26  ;;  %v4135_v34 = vpop.f32.mrb[43].mxu0  ;;  %v4251_v36 = vpop.f32.mrb[43].mxu1  ;;  %v4655_v21 = vld [vmem:[%s4984_s8 + $0x2bc] sm:$0xff]  }
 0x199   : > { %v5340_v39 = vmax.f32 %v1516_v27, %v1995_v28  ;;  %v1517_v40 = vmax.f32 %v1382_v30, 0.0  ;;  %v1996_v41 = vmax.f32 %v1861_v31, 0.0  ;;  %4373 = vmatmul.mubr.bf16.gmra.mrb[148].mxu0 %v4650_v23  ;;  %4489 = vmatmul.mubr.bf16.gmra.mrb[148].mxu1 %v4651_v24 }
 0x19a   : > { %4376 = vmatprep.mubr.msk.bf16.mxu0 %vm4703_vm0, %v4702_v37  ;;  %4492 = vmatprep.mubr.msk.bf16.mxu1 %vm4703_vm0, %v4702_v37 }
 0x19b   : > { %v5346_v42 = vmax.f32 %v1517_v40, %v1996_v41 }
 0x19c   : > { %v1386_v43 = vpop.f32.mrb[44].mxu0  ;;  %v1865_v44 = vpop.f32.mrb[44].mxu1 }
 0x19d   : > { %v1387_v46 = vadd.f32 %v5188_v35, %v1386_v43  ;;  %v1866_v47 = vadd.f32 %v5188_v35, %v1865_v44  ;;  %v4138_v49 = vpop.f32.mrb[45].mxu0  ;;  %v4254_v50 = vpop.f32.mrb[45].mxu1 }
 0x19e   : > { %v1389_v57 = vpop.f32.mrb[46].mxu0  ;;  %v1868_v58 = vpop.f32.mrb[46].mxu1 }
 0x19f   : > { %v1518_v60 = vmax.f32 %v1387_v46, 0.0  ;;  %v1997_v61 = vmax.f32 %v1866_v47, 0.0  ;;  %v1390_v63 = vadd.f32 %v5188_v35, %v1389_v57  ;;  %v1869_v0 = vadd.f32 %v5188_v35, %v1868_v58  ;;  %v4139_v1 = vpop.f32.mrb[47].mxu0  ;;  %v4255_v2 = vpop.f32.mrb[47].mxu1 }
 0x1a1   : > { %v5354_v3 = vmax.f32 %v1518_v60, %v1997_v61  ;;  %v1519_v4 = vmax.f32 %v1390_v63, 0.0  ;;  %v1998_v5 = vmax.f32 %v1869_v0, 0.0  ;;  %4377 = vmatmul.mubr.bf16.gmra.mrb[152].mxu0 %v4652_v52  ;;  %4493 = vmatmul.mubr.bf16.gmra.mrb[152].mxu1 %v4653_v54  ;;  %v4656_v52 = vld [vmem:[%s4984_s8 + $0x200] sm:$0xff]  }
 0x1a2   : > { %4380 = vmatprep.mubr.msk.bf16.mxu0 %vm4703_vm0, %v4702_v37  ;;  %4496 = vmatprep.mubr.msk.bf16.mxu1 %vm4703_vm0, %v4702_v37  ;;  %v4657_v54 = vld [vmem:[%s4984_s8 + $0x2c4] sm:$0xff]  }
 0x1a3   : > { %v5360_v6 = vmax.f32 %v1519_v4, %v1998_v5 }
 0x1a4   : > { %v1394_v8 = vpop.f32.mrb[48].mxu0  ;;  %v1873_v11 = vpop.f32.mrb[48].mxu1 }
 0x1a5   : > { %v1395_v15 = vadd.f32 %v5188_v35, %v1394_v8  ;;  %v1874_v16 = vadd.f32 %v5188_v35, %v1873_v11  ;;  %v4142_v17 = vpop.f32.mrb[49].mxu0  ;;  %v4258_v18 = vpop.f32.mrb[49].mxu1 }
 0x1a6   : > { %v1397_v23 = vpop.f32.mrb[50].mxu0  ;;  %v1876_v24 = vpop.f32.mrb[50].mxu1 }
 0x1a7   : > { %v1520_v25 = vmax.f32 %v1395_v15, 0.0  ;;  %v1999_v26 = vmax.f32 %v1874_v16, 0.0  ;;  %v1398_v27 = vadd.f32 %v5188_v35, %v1397_v23  ;;  %v1877_v28 = vadd.f32 %v5188_v35, %v1876_v24  ;;  %v4143_v30 = vpop.f32.mrb[51].mxu0  ;;  %v4259_v31 = vpop.f32.mrb[51].mxu1  ;;  %v4658_v23 = vld [vmem:[%s4984_s8 + $0x208] sm:$0xff]  }
 0x1a8   : > { %v4659_v24 = vld [vmem:[%s4984_s8 + $0x2cc] sm:$0xff]  }
 0x1a9   : > { %v5368_v34 = vmax.f32 %v1520_v25, %v1999_v26  ;;  %v1521_v36 = vmax.f32 %v1398_v27, 0.0  ;;  %v2000_v40 = vmax.f32 %v1877_v28, 0.0  ;;  %4381 = vmatmul.mubr.bf16.gmra.mrb[156].mxu0 %v4654_v20  ;;  %4497 = vmatmul.mubr.bf16.gmra.mrb[156].mxu1 %v4655_v21 }
 0x1aa   : > { %4384 = vmatprep.mubr.msk.bf16.mxu0 %vm4703_vm0, %v4702_v37  ;;  %4500 = vmatprep.mubr.msk.bf16.mxu1 %vm4703_vm0, %v4702_v37 }
 0x1ab   : > { %v5374_v41 = vmax.f32 %v1521_v36, %v2000_v40 }
 0x1ac   : > { %v1402_v43 = vpop.f32.mrb[52].mxu0  ;;  %v1881_v44 = vpop.f32.mrb[52].mxu1 }
 0x1ad   : > { %v1403_v46 = vadd.f32 %v5188_v35, %v1402_v43  ;;  %v1882_v47 = vadd.f32 %v5188_v35, %v1881_v44  ;;  %v4146_v49 = vpop.f32.mrb[53].mxu0  ;;  %v4262_v50 = vpop.f32.mrb[53].mxu1 }
 0x1ae   : > { %v1405_v57 = vpop.f32.mrb[54].mxu0  ;;  %v1884_v58 = vpop.f32.mrb[54].mxu1 }
 0x1af   : > { %v1522_v60 = vmax.f32 %v1403_v46, 0.0  ;;  %v2001_v61 = vmax.f32 %v1882_v47, 0.0  ;;  %v1406_v63 = vadd.f32 %v5188_v35, %v1405_v57  ;;  %v1885_v0 = vadd.f32 %v5188_v35, %v1884_v58  ;;  %v4147_v1 = vpop.f32.mrb[55].mxu0  ;;  %v4263_v2 = vpop.f32.mrb[55].mxu1 }
 0x1b1   : > { %v5382_v4 = vmax.f32 %v1522_v60, %v2001_v61  ;;  %v1523_v5 = vmax.f32 %v1406_v63, 0.0  ;;  %v2002_v8 = vmax.f32 %v1885_v0, 0.0  ;;  %4385 = vmatmul.mubr.bf16.gmra.mrb[160].mxu0 %v4656_v52  ;;  %4501 = vmatmul.mubr.bf16.gmra.mrb[160].mxu1 %v4657_v54  ;;  %v4660_v60 = vld [vmem:[%s4984_s8 + $0x210] sm:$0xff]  }
 0x1b2   : > { %4388 = vmatprep.mubr.msk.bf16.mxu0 %vm4703_vm0, %v4702_v37  ;;  %4504 = vmatprep.mubr.msk.bf16.mxu1 %vm4703_vm0, %v4702_v37  ;;  %v4661_v61 = vld [vmem:[%s4984_s8 + $0x2d4] sm:$0xff]  }
 0x1b3   : > { %v5388_v11 = vmax.f32 %v1523_v5, %v2002_v8 }
 0x1b4   : > { %v1410_v15 = vpop.f32.mrb[56].mxu0  ;;  %v1889_v16 = vpop.f32.mrb[56].mxu1 }
 0x1b5   : > { %v1411_v17 = vadd.f32 %v5188_v35, %v1410_v15  ;;  %v1890_v18 = vadd.f32 %v5188_v35, %v1889_v16  ;;  %v4150_v20 = vpop.f32.mrb[57].mxu0  ;;  %v4266_v21 = vpop.f32.mrb[57].mxu1 }
 0x1b6   : > { %v1413_v25 = vpop.f32.mrb[58].mxu0  ;;  %v1892_v26 = vpop.f32.mrb[58].mxu1 }
 0x1b7   : > { %v1524_v27 = vmax.f32 %v1411_v17, 0.0  ;;  %v2003_v28 = vmax.f32 %v1890_v18, 0.0  ;;  %v1414_v30 = vadd.f32 %v5188_v35, %v1413_v25  ;;  %v1893_v31 = vadd.f32 %v5188_v35, %v1892_v26  ;;  %v4151_v36 = vpop.f32.mrb[59].mxu0  ;;  %v4267_v40 = vpop.f32.mrb[59].mxu1 }
 0x1b9   : > { %v5396_v43 = vmax.f32 %v1524_v27, %v2003_v28  ;;  %v1525_v44 = vmax.f32 %v1414_v30, 0.0  ;;  %v2004_v46 = vmax.f32 %v1893_v31, 0.0  ;;  %4389 = vmatmul.mubr.bf16.gmra.mrb[164].mxu0 %v4658_v23  ;;  %4505 = vmatmul.mubr.bf16.gmra.mrb[164].mxu1 %v4659_v24  ;;  %v4662_v30 = vld [vmem:[%s4984_s8 + $0x218] sm:$0xff]  }
 0x1ba   : > { %4392 = vmatprep.mubr.msk.bf16.mxu0 %vm4703_vm0, %v4702_v37  ;;  %4508 = vmatprep.mubr.msk.bf16.mxu1 %vm4703_vm0, %v4702_v37  ;;  %v4663_v31 = vld [vmem:[%s4984_s8 + $0x2dc] sm:$0xff]  }
 0x1bb   : > { %v5402_v47 = vmax.f32 %v1525_v44, %v2004_v46 }
 0x1bc   : > { %v1418_v49 = vpop.f32.mrb[60].mxu0  ;;  %v1897_v50 = vpop.f32.mrb[60].mxu1 }
 0x1bd   : > { %v1419_v52 = vadd.f32 %v5188_v35, %v1418_v49  ;;  %v1898_v54 = vadd.f32 %v5188_v35, %v1897_v50  ;;  %v4154_v57 = vpop.f32.mrb[61].mxu0  ;;  %v4270_v58 = vpop.f32.mrb[61].mxu1 }
 0x1be   : > { %v1421_v63 = vpop.f32.mrb[62].mxu0  ;;  %v1900_v0 = vpop.f32.mrb[62].mxu1 }
 0x1bf   : > { %v1526_v1 = vmax.f32 %v1419_v52, 0.0  ;;  %v2005_v2 = vmax.f32 %v1898_v54, 0.0  ;;  %v1422_v5 = vadd.f32 %v5188_v35, %v1421_v63  ;;  %v1901_v8 = vadd.f32 %v5188_v35, %v1900_v0  ;;  %v4155_v15 = vpop.f32.mrb[63].mxu0  ;;  %v4271_v16 = vpop.f32.mrb[63].mxu1 }
 0x1c0   : > { %v4664_v15 = vld [vmem:[%s4984_s8 + $0x220] sm:$0xff]  }
 0x1c1   : > { %v5410_v17 = vmax.f32 %v1526_v1, %v2005_v2  ;;  %v1527_v18 = vmax.f32 %v1422_v5, 0.0  ;;  %v2006_v20 = vmax.f32 %v1901_v8, 0.0  ;;  %4393 = vmatmul.mubr.bf16.gmra.mrb[168].mxu0 %v4660_v60  ;;  %4509 = vmatmul.mubr.bf16.gmra.mrb[168].mxu1 %v4661_v61  ;;  %v4665_v16 = vld [vmem:[%s4984_s8 + $0x2e4] sm:$0xff]  }
 0x1c2   : > { %4396 = vmatprep.mubr.msk.bf16.mxu0 %vm4703_vm0, %v4702_v37  ;;  %4512 = vmatprep.mubr.msk.bf16.mxu1 %vm4703_vm0, %v4702_v37 }
 0x1c3   : > { %v5416_v21 = vmax.f32 %v1527_v18, %v2006_v20 }
 0x1c4   : > { %v1426_v23 = vpop.f32.mrb[64].mxu0  ;;  %v1905_v24 = vpop.f32.mrb[64].mxu1 }
 0x1c5   : > { %v1427_v25 = vadd.f32 %v5188_v35, %v1426_v23  ;;  %v1906_v26 = vadd.f32 %v5188_v35, %v1905_v24  ;;  %v4158_v27 = vpop.f32.mrb[65].mxu0  ;;  %v4274_v28 = vpop.f32.mrb[65].mxu1 }
 0x1c6   : > { %v1429_v36 = vpop.f32.mrb[66].mxu0  ;;  %v1908_v40 = vpop.f32.mrb[66].mxu1 }
 0x1c7   : > { %v1528_v44 = vmax.f32 %v1427_v25, 0.0  ;;  %v2007_v46 = vmax.f32 %v1906_v26, 0.0  ;;  %v1430_v49 = vadd.f32 %v5188_v35, %v1429_v36  ;;  %v1909_v50 = vadd.f32 %v5188_v35, %v1908_v40  ;;  %v4159_v52 = vpop.f32.mrb[67].mxu0  ;;  %v4275_v54 = vpop.f32.mrb[67].mxu1 }
 0x1c9   : > { %v5424_v57 = vmax.f32 %v1528_v44, %v2007_v46  ;;  %v1529_v58 = vmax.f32 %v1430_v49, 0.0  ;;  %v2008_v60 = vmax.f32 %v1909_v50, 0.0  ;;  %4397 = vmatmul.mubr.bf16.gmra.mrb[172].mxu0 %v4662_v30  ;;  %4513 = vmatmul.mubr.bf16.gmra.mrb[172].mxu1 %v4663_v31 }
 0x1ca   : > { %4400 = vmatprep.mubr.msk.bf16.mxu0 %vm4703_vm0, %v4702_v37  ;;  %4516 = vmatprep.mubr.msk.bf16.mxu1 %vm4703_vm0, %v4702_v37 }
 0x1cb   : > { %v5430_v61 = vmax.f32 %v1529_v58, %v2008_v60  ;;  %v4666_v58 = vld [vmem:[%s4984_s8 + $0x228] sm:$0xff]  }
 0x1cc   : > { %v1434_v63 = vpop.f32.mrb[68].mxu0  ;;  %v1913_v0 = vpop.f32.mrb[68].mxu1  ;;  %v4667_v60 = vld [vmem:[%s4984_s8 + $0x2ec] sm:$0xff]  }
 0x1cd   : > { %v1435_v1 = vadd.f32 %v5188_v35, %v1434_v63  ;;  %v1914_v2 = vadd.f32 %v5188_v35, %v1913_v0  ;;  %v4162_v5 = vpop.f32.mrb[69].mxu0  ;;  %v4278_v8 = vpop.f32.mrb[69].mxu1 }
 0x1ce   : > { %v1437_v18 = vpop.f32.mrb[70].mxu0  ;;  %v1916_v20 = vpop.f32.mrb[70].mxu1 }
 0x1cf   : > { %v1530_v23 = vmax.f32 %v1435_v1, 0.0  ;;  %v2009_v24 = vmax.f32 %v1914_v2, 0.0  ;;  %v1438_v25 = vadd.f32 %v5188_v35, %v1437_v18  ;;  %v1917_v26 = vadd.f32 %v5188_v35, %v1916_v20  ;;  %v4163_v27 = vpop.f32.mrb[71].mxu0  ;;  %v4279_v28 = vpop.f32.mrb[71].mxu1 }
 0x1d1   : > { %v5438_v30 = vmax.f32 %v1530_v23, %v2009_v24  ;;  %v1531_v31 = vmax.f32 %v1438_v25, 0.0  ;;  %v2010_v36 = vmax.f32 %v1917_v26, 0.0  ;;  %4401 = vmatmul.mubr.bf16.gmra.mrb[176].mxu0 %v4664_v15  ;;  %4517 = vmatmul.mubr.bf16.gmra.mrb[176].mxu1 %v4665_v16 }
 0x1d2   : > { %4404 = vmatprep.mubr.msk.bf16.mxu0 %vm4703_vm0, %v4702_v37  ;;  %4520 = vmatprep.mubr.msk.bf16.mxu1 %vm4703_vm0, %v4702_v37 }
 0x1d3   : > { %v5444_v40 = vmax.f32 %v1531_v31, %v2010_v36 }
 0x1d4   : > { %v1442_v44 = vpop.f32.mrb[72].mxu0  ;;  %v1921_v46 = vpop.f32.mrb[72].mxu1 }
 0x1d5   : > { %v1443_v49 = vadd.f32 %v5188_v35, %v1442_v44  ;;  %v1922_v50 = vadd.f32 %v5188_v35, %v1921_v46  ;;  %v4166_v52 = vpop.f32.mrb[73].mxu0  ;;  %v4282_v54 = vpop.f32.mrb[73].mxu1  ;;  %v4668_v44 = vld [vmem:[%s4984_s8 + $0x230] sm:$0xff]  }
 0x1d6   : > { %v1445_v63 = vpop.f32.mrb[74].mxu0  ;;  %v1924_v0 = vpop.f32.mrb[74].mxu1  ;;  %v4669_v46 = vld [vmem:[%s4984_s8 + $0x2f4] sm:$0xff]  }
 0x1d7   : > { %v1532_v1 = vmax.f32 %v1443_v49, 0.0  ;;  %v2011_v2 = vmax.f32 %v1922_v50, 0.0  ;;  %v1446_v5 = vadd.f32 %v5188_v35, %v1445_v63  ;;  %v1925_v8 = vadd.f32 %v5188_v35, %v1924_v0  ;;  %v4167_v15 = vpop.f32.mrb[75].mxu0  ;;  %v4283_v16 = vpop.f32.mrb[75].mxu1 }
 0x1d9   : > { %v5452_v18 = vmax.f32 %v1532_v1, %v2011_v2  ;;  %v1533_v20 = vmax.f32 %v1446_v5, 0.0  ;;  %v2012_v23 = vmax.f32 %v1925_v8, 0.0  ;;  %4405 = vmatmul.mubr.bf16.gmra.mrb[180].mxu0 %v4666_v58  ;;  %4521 = vmatmul.mubr.bf16.gmra.mrb[180].mxu1 %v4667_v60 }
 0x1da   : > { %4408 = vmatprep.mubr.msk.bf16.mxu0 %vm4703_vm0, %v4702_v37  ;;  %4524 = vmatprep.mubr.msk.bf16.mxu1 %vm4703_vm0, %v4702_v37 }
 0x1db   : > { %v5458_v24 = vmax.f32 %v1533_v20, %v2012_v23 }
 0x1dc   : > { %v1450_v25 = vpop.f32.mrb[76].mxu0  ;;  %v1929_v26 = vpop.f32.mrb[76].mxu1 }
 0x1dd   : > { %v1451_v27 = vadd.f32 %v5188_v35, %v1450_v25  ;;  %v1930_v28 = vadd.f32 %v5188_v35, %v1929_v26  ;;  %v4170_v31 = vpop.f32.mrb[77].mxu0  ;;  %v4286_v36 = vpop.f32.mrb[77].mxu1 }
 0x1de   : > { %v1453_v49 = vpop.f32.mrb[78].mxu0  ;;  %v1932_v50 = vpop.f32.mrb[78].mxu1 }
 0x1df   : > { %v1534_v52 = vmax.f32 %v1451_v27, 0.0  ;;  %v2013_v54 = vmax.f32 %v1930_v28, 0.0  ;;  %v1454_v58 = vadd.f32 %v5188_v35, %v1453_v49  ;;  %v1933_v60 = vadd.f32 %v5188_v35, %v1932_v50  ;;  %v4171_v63 = vpop.f32.mrb[79].mxu0  ;;  %v4287_v0 = vpop.f32.mrb[79].mxu1  ;;  %v4670_v27 = vld [vmem:[%s4984_s8 + $0x238] sm:$0xff]  }
 0x1e0   : > { %v4671_v28 = vld [vmem:[%s4984_s8 + $0x2fc] sm:$0xff]  }
 0x1e1   : > { %v5466_v1 = vmax.f32 %v1534_v52, %v2013_v54  ;;  %v1535_v2 = vmax.f32 %v1454_v58, 0.0  ;;  %v2014_v5 = vmax.f32 %v1933_v60, 0.0  ;;  %4409 = vmatmul.mubr.bf16.gmra.mrb[184].mxu0 %v4668_v44  ;;  %4525 = vmatmul.mubr.bf16.gmra.mrb[184].mxu1 %v4669_v46 }
 0x1e2   : > { %4412 = vmatprep.mubr.msk.bf16.mxu0 %vm4703_vm0, %v4702_v37  ;;  %4528 = vmatprep.mubr.msk.bf16.mxu1 %vm4703_vm0, %v4702_v37 }
 0x1e3   : > { %v5472_v8 = vmax.f32 %v1535_v2, %v2014_v5 }
 0x1e4   : > { %v1458_v15 = vpop.f32.mrb[80].mxu0  ;;  %v1937_v16 = vpop.f32.mrb[80].mxu1 }
 0x1e5   : > { %v1459_v20 = vadd.f32 %v5188_v35, %v1458_v15  ;;  %v1938_v23 = vadd.f32 %v5188_v35, %v1937_v16  ;;  %v4174_v25 = vpop.f32.mrb[81].mxu0  ;;  %v4290_v26 = vpop.f32.mrb[81].mxu1 }
 0x1e6   : > { %v1461_v31 = vpop.f32.mrb[82].mxu0  ;;  %v1940_v36 = vpop.f32.mrb[82].mxu1  ;;  %v4672_v25 = vld [vmem:[%s4984_s8 + $0x240] sm:$0xff]  }
 0x1e7   : > { %v1536_v44 = vmax.f32 %v1459_v20, 0.0  ;;  %v2015_v46 = vmax.f32 %v1938_v23, 0.0  ;;  %v1462_v49 = vadd.f32 %v5188_v35, %v1461_v31  ;;  %v1941_v50 = vadd.f32 %v5188_v35, %v1940_v36  ;;  %v4175_v52 = vpop.f32.mrb[83].mxu0  ;;  %v4291_v54 = vpop.f32.mrb[83].mxu1  ;;  %v4673_v26 = vld [vmem:[%s4984_s8 + $0x304] sm:$0xff]  }
 0x1e9   : > { %v5480_v58 = vmax.f32 %v1536_v44, %v2015_v46  ;;  %v1537_v60 = vmax.f32 %v1462_v49, 0.0  ;;  %v2016_v63 = vmax.f32 %v1941_v50, 0.0  ;;  %4413 = vmatmul.mubr.bf16.gmra.mrb[188].mxu0 %v4670_v27  ;;  %4529 = vmatmul.mubr.bf16.gmra.mrb[188].mxu1 %v4671_v28  ;;  %v5495_v44 = vld [vmem:[%s5725_s2] ss:$0 sm:$0xff] }
 0x1ea   : > { %4416 = vmatprep.mubr.msk.bf16.mxu0 %vm4703_vm0, %v4702_v37  ;;  %4532 = vmatprep.mubr.msk.bf16.mxu1 %vm4703_vm0, %v4702_v37 }
 0x1eb   : > { %v5486_v0 = vmax.f32 %v1537_v60, %v2016_v63 }
 0x1ec   : > { %v1466_v2 = vpop.f32.mrb[84].mxu0  ;;  %v1945_v5 = vpop.f32.mrb[84].mxu1 }
 0x1ed   : > { %v1467_v15 = vadd.f32 %v5188_v35, %v1466_v2  ;;  %v1946_v16 = vadd.f32 %v5188_v35, %v1945_v5  ;;  %v4178_v20 = vpop.f32.mrb[85].mxu0  ;;  %v4294_v23 = vpop.f32.mrb[85].mxu1 }
 0x1ee   : > { %v1469_v27 = vpop.f32.mrb[86].mxu0  ;;  %v1948_v28 = vpop.f32.mrb[86].mxu1 }
 0x1ef   : > { %v1538_v31 = vmax.f32 %v1467_v15, 0.0  ;;  %v2017_v36 = vmax.f32 %v1946_v16, 0.0  ;;  %v1470_v46 = vadd.f32 %v5495_v44, %v1469_v27  ;;  %v1949_v49 = vadd.f32 %v5495_v44, %v1948_v28  ;;  %v4179_v50 = vpop.f32.mrb[87].mxu0  ;;  %v4295_v35 = vpop.f32.mrb[87].mxu1  ;;  %v4674_v27 = vld [vmem:[%s4984_s8 + $0x248] ss:$0 sps:$4 sm:$0xff]  }
 0x1f0   : > { %v4675_v28 = vld [vmem:[%s4984_s8 + $0x30c] ss:$0 sps:$4 sm:$0xff]  }
 0x1f1   : > { %v5499_v52 = vmax.f32 %v1538_v31, %v2017_v36  ;;  %v1539_v54 = vmax.f32 %v1470_v46, 0.0  ;;  %v2018_v60 = vmax.f32 %v1949_v49, 0.0  ;;  %4417 = vmatmul.mubr.bf16.gmra.mrb[192].mxu0 %v4672_v25  ;;  %4533 = vmatmul.mubr.bf16.gmra.mrb[192].mxu1 %v4673_v26 }
 0x1f2   : > { %4420 = vmatprep.mubr.msk.bf16.mxu0 %vm4703_vm0, %v4702_v37  ;;  %4536 = vmatprep.mubr.msk.bf16.mxu1 %vm4703_vm0, %v4702_v37 }
 0x1f3   : > { %v5505_v63 = vmax.f32 %v1539_v54, %v2018_v60 }
 0x1f4   : > { %v1474_v2 = vpop.f32.mrb[88].mxu0  ;;  %v1953_v5 = vpop.f32.mrb[88].mxu1 }
 0x1f5   : > { %5727 = vst [vmem:[#allocation3_spill] sm:$0xff] %v5505_v63  ;;  %v1475_v15 = vadd.f32 %v5495_v44, %v1474_v2  ;;  %v1954_v16 = vadd.f32 %v5495_v44, %v1953_v5  ;;  %v4182_v20 = vpop.f32.mrb[89].mxu0  ;;  %v4298_v23 = vpop.f32.mrb[89].mxu1 }
 0x1f6   : > { %v1477_v25 = vpop.f32.mrb[90].mxu0  ;;  %v1956_v26 = vpop.f32.mrb[90].mxu1 }
 0x1f7   : > { %v1540_v31 = vmax.f32 %v1475_v15, 0.0  ;;  %v2019_v36 = vmax.f32 %v1954_v16, 0.0  ;;  %v1478_v46 = vadd.f32 %v5495_v44, %v1477_v25  ;;  %v1957_v37 = vadd.f32 %v5495_v44, %v1956_v26  ;;  %v4183_v49 = vpop.f32.mrb[91].mxu0  ;;  %v4299_v50 = vpop.f32.mrb[91].mxu1 }
 0x1f9   : > { %v5513_v35 = vmax.f32 %v1540_v31, %v2019_v36  ;;  %v1541_v54 = vmax.f32 %v1478_v46, 0.0  ;;  %v2020_v60 = vmax.f32 %v1957_v37, 0.0  ;;  %4421 = vmatmul.mubr.bf16.gmra.mrb[196].mxu0 %v4674_v27  ;;  %4537 = vmatmul.mubr.bf16.gmra.mrb[196].mxu1 %v4675_v28 }
 0x1fb   : > { %v5515_v2 = vmax.f32 %v1541_v54, %v2020_v60 }
 0x1fc   : > { %v1482_v5 = vpop.f32.mrb[92].mxu0  ;;  %v1961_v20 = vpop.f32.mrb[92].mxu1 }
 0x1fd   : > { %5728 = vst [vmem:[#allocation4_spill] sm:$0xff] %v5515_v2  ;;  %v1483_v23 = vadd.f32 %v5495_v44, %v1482_v5  ;;  %v1962_v15 = vadd.f32 %v5495_v44, %v1961_v20  ;;  %v4186_v16 = vpop.f32.mrb[93].mxu0  ;;  %v4302_v25 = vpop.f32.mrb[93].mxu1 }
 0x1fe   : > { %v1485_v63 = vpop.f32.mrb[94].mxu0  ;;  %v1964_v26 = vpop.f32.mrb[94].mxu1 }
 0x1ff   : > { %v1542_v49 = vmax.f32 %v1483_v23, 0.0  ;;  %v2021_v50 = vmax.f32 %v1962_v15, 0.0  ;;  %v1486_v31 = vadd.f32 %v5495_v44, %v1485_v63  ;;  %v1965_v36 = vadd.f32 %v5495_v44, %v1964_v26  ;;  %v4187_v27 = vpop.f32.mrb[95].mxu0  ;;  %v4303_v28 = vpop.f32.mrb[95].mxu1 }
 0x201   : > { %v5521_v46 = vmax.f32 %v1542_v49, %v2021_v50  ;;  %v1543_v37 = vmax.f32 %v1486_v31, 0.0  ;;  %v2022_v54 = vmax.f32 %v1965_v36, 0.0 }
 0x203   : > { %5729 = vst [vmem:[#allocation5_spill] sm:$0xff] %v5521_v46  ;;  %v5523_v60 = vmax.f32 %v1543_v37, %v2022_v54 }
 0x204   : > { %v1490_v5 = vpop.f32.mrb[96].mxu0  ;;  %v1969_v20 = vpop.f32.mrb[96].mxu1 }
 0x205   : > { %5730 = vst [vmem:[#allocation6_spill] sm:$0xff] %v5523_v60  ;;  %v1491_v16 = vadd.f32 %v5495_v44, %v1490_v5  ;;  %v1970_v23 = vadd.f32 %v5495_v44, %v1969_v20  ;;  %v4190_v15 = vpop.f32.mrb[97].mxu0  ;;  %v4306_v25 = vpop.f32.mrb[97].mxu1 }
 0x206   : > { %v1493_v63 = vpop.f32.mrb[98].mxu0  ;;  %v1972_v2 = vpop.f32.mrb[98].mxu1 }
 0x207   : > { %v1544_v26 = vmax.f32 %v1491_v16, 0.0  ;;  %v2023_v27 = vmax.f32 %v1970_v23, 0.0  ;;  %v4191_v28 = vpop.f32.mrb[99].mxu0  ;;  %v4307_v49 = vpop.f32.mrb[99].mxu1 }
 0x209   : > { %v5529_v50 = vmax.f32 %v1544_v26, %v2023_v27 }
 0x20b   : > { %5731 = vst [vmem:[#allocation7_spill] sm:$0xff] %v5529_v50 }
 0x20c   : > { %v2305_v31 = vpop.f32.mrb[100].mxu0  ;;  %v2833_v36 = vpop.f32.mrb[100].mxu1 }
 0x20d   : > { %v2306_v37 = vadd.f32 %v5495_v44, %v2305_v31  ;;  %v2834_v54 = vadd.f32 %v5495_v44, %v2833_v36  ;;  %v4326_v5 = vpop.f32.mrb[101].mxu0  ;;  %v4442_v20 = vpop.f32.mrb[101].mxu1 }
 0x20e   : > { %v2308_v15 = vpop.f32.mrb[102].mxu0  ;;  %v2836_v25 = vpop.f32.mrb[102].mxu1 }
 0x20f   : > { %v2503_v2 = vmax.f32 %v2306_v37, 0.0  ;;  %v3031_v16 = vmax.f32 %v2834_v54, 0.0  ;;  %v2309_v23 = vadd.f32 %v5495_v44, %v2308_v15  ;;  %v2837_v63 = vadd.f32 %v5495_v44, %v2836_v25  ;;  %v4327_v26 = vpop.f32.mrb[103].mxu0  ;;  %v4443_v27 = vpop.f32.mrb[103].mxu1 }
 0x211   : > { %v2552_v28 = vmax.f32 %v5200_v53, %v2503_v2  ;;  %v2504_v49 = vmax.f32 %v2309_v23, 0.0  ;;  %v3032_v36 = vmax.f32 %v2837_v63, 0.0 }
 0x213   : > { %v3080_v50 = vmax.f32 %v2552_v28, %v3031_v16  ;;  %v2553_v31 = vmax.f32 %v5206_v56, %v2504_v49 }
 0x214   : > { %v2313_v5 = vpop.f32.mrb[104].mxu0  ;;  %v2841_v20 = vpop.f32.mrb[104].mxu1 }
 0x215   : > { %v3081_v60 = vmax.f32 %v2553_v31, %v3032_v36  ;;  %v2314_v37 = vadd.f32 %v5495_v44, %v2313_v5  ;;  %v2842_v54 = vadd.f32 %v5495_v44, %v2841_v20  ;;  %v4330_v15 = vpop.f32.mrb[105].mxu0  ;;  %v4446_v46 = vpop.f32.mrb[105].mxu1 }
 0x216   : > { %v2316_v53 = vpop.f32.mrb[106].mxu0  ;;  %v2844_v25 = vpop.f32.mrb[106].mxu1 }
 0x217   : > { %v3804_v56 = vpack.c.bf16 %v3081_v60, %v3080_v50  ;;  %v2505_v2 = vmax.f32 %v2314_v37, 0.0  ;;  %v3033_v16 = vmax.f32 %v2842_v54, 0.0  ;;  %v2317_v23 = vadd.f32 %v5495_v44, %v2316_v53  ;;  %v4331_v63 = vpop.f32.mrb[107].mxu0  ;;  %v4447_v26 = vpop.f32.mrb[107].mxu1 }
 0x218   : > { %v2845_v27 = vadd.f32 %v5495_v44, %v2844_v25 }
 0x219   : > { %3805 = vst [vmem:[%s5542_s30] sm:$0xff] %v3804_v56   ;;  %v2554_v46 = vmax.f32 %v5214_v9, %v2505_v2  ;;  %v2506_v28 = vmax.f32 %v2317_v23, 0.0 }
 0x21a   : > { %v3034_v36 = vmax.f32 %v2845_v27, 0.0 }
 0x21b   : > { %v3082_v49 = vmax.f32 %v2554_v46, %v3033_v16  ;;  %v2555_v31 = vmax.f32 %v5220_v12, %v2506_v28 }
 0x21c   : > { %v2321_v5 = vpop.f32.mrb[108].mxu0  ;;  %v2849_v20 = vpop.f32.mrb[108].mxu1 }
 0x21d   : > { %v3083_v60 = vmax.f32 %v2555_v31, %v3034_v36  ;;  %v2322_v50 = vadd.f32 %v5495_v44, %v2321_v5  ;;  %v2850_v37 = vadd.f32 %v5495_v44, %v2849_v20  ;;  %v4334_v54 = vpop.f32.mrb[109].mxu0  ;;  %v4450_v15 = vpop.f32.mrb[109].mxu1 }
 0x21e   : > { %v2324_v53 = vpop.f32.mrb[110].mxu0  ;;  %v2852_v25 = vpop.f32.mrb[110].mxu1 }
 0x21f   : > { %v3809_v56 = vpack.c.bf16 %v3083_v60, %v3082_v49  ;;  %v2507_v63 = vmax.f32 %v2322_v50, 0.0  ;;  %v3035_v9 = vmax.f32 %v2850_v37, 0.0  ;;  %v2325_v2 = vadd.f32 %v5495_v44, %v2324_v53  ;;  %v4335_v16 = vpop.f32.mrb[111].mxu0  ;;  %v4451_v12 = vpop.f32.mrb[111].mxu1 }
 0x220   : > { %v2853_v23 = vadd.f32 %v5495_v44, %v2852_v25 }
 0x221   : > { %3921 = vst [vmem:[%s5542_s30 + $0x8] sm:$0xff] %v3809_v56   ;;  %v2556_v26 = vmax.f32 %v5228_v29, %v2507_v63  ;;  %v2508_v27 = vmax.f32 %v2325_v2, 0.0 }
 0x222   : > { %v3036_v31 = vmax.f32 %v2853_v23, 0.0 }
 0x223   : > { %v3084_v46 = vmax.f32 %v2556_v26, %v3035_v9  ;;  %v2557_v28 = vmax.f32 %v5234_v32, %v2508_v27 }
 0x224   : > { %v2329_v36 = vpop.f32.mrb[112].mxu0  ;;  %v2857_v5 = vpop.f32.mrb[112].mxu1 }
 0x225   : > { %v3085_v49 = vmax.f32 %v2557_v28, %v3036_v31  ;;  %v2330_v20 = vadd.f32 %v5495_v44, %v2329_v36  ;;  %v2858_v60 = vadd.f32 %v5495_v44, %v2857_v5  ;;  %v4338_v50 = vpop.f32.mrb[113].mxu0  ;;  %v4454_v37 = vpop.f32.mrb[113].mxu1 }
 0x226   : > { %v2332_v54 = vpop.f32.mrb[114].mxu0  ;;  %v2860_v15 = vpop.f32.mrb[114].mxu1 }
 0x227   : > { %v3814_v53 = vpack.c.bf16 %v3085_v49, %v3084_v46  ;;  %v2509_v25 = vmax.f32 %v2330_v20, 0.0  ;;  %v3037_v29 = vmax.f32 %v2858_v60, 0.0  ;;  %v2333_v56 = vadd.f32 %v5495_v44, %v2332_v54  ;;  %v4339_v63 = vpop.f32.mrb[115].mxu0  ;;  %v4455_v32 = vpop.f32.mrb[115].mxu1 }
 0x228   : > { %v2861_v9 = vadd.f32 %v5495_v44, %v2860_v15 }
 0x229   : > { %3922 = vst [vmem:[%s5542_s30 + $0x10] sm:$0xff] %v3814_v53   ;;  %v2558_v2 = vmax.f32 %v5242_v51, %v2509_v25  ;;  %v2510_v16 = vmax.f32 %v2333_v56, 0.0 }
 0x22a   : > { %v3038_v26 = vmax.f32 %v2861_v9, 0.0 }
 0x22b   : > { %v3086_v12 = vmax.f32 %v2558_v2, %v3037_v29  ;;  %v2559_v23 = vmax.f32 %v5248_v55, %v2510_v16 }
 0x22c   : > { %v2337_v27 = vpop.f32.mrb[116].mxu0  ;;  %v2865_v28 = vpop.f32.mrb[116].mxu1 }
 0x22d   : > { %v3087_v46 = vmax.f32 %v2559_v23, %v3038_v26  ;;  %v2338_v31 = vadd.f32 %v5495_v44, %v2337_v27  ;;  %v2866_v36 = vadd.f32 %v5495_v44, %v2865_v28  ;;  %v4342_v5 = vpop.f32.mrb[117].mxu0  ;;  %v4458_v49 = vpop.f32.mrb[117].mxu1 }
 0x22e   : > { %v2340_v20 = vpop.f32.mrb[118].mxu0  ;;  %v2868_v60 = vpop.f32.mrb[118].mxu1 }
 0x22f   : > { %v3819_v50 = vpack.c.bf16 %v3087_v46, %v3086_v12  ;;  %v2511_v37 = vmax.f32 %v2338_v31, 0.0  ;;  %v3039_v51 = vmax.f32 %v2866_v36, 0.0  ;;  %v2341_v54 = vadd.f32 %v5495_v44, %v2340_v20  ;;  %v4343_v15 = vpop.f32.mrb[119].mxu0  ;;  %v4459_v55 = vpop.f32.mrb[119].mxu1 }
 0x230   : > { %v2869_v53 = vadd.f32 %v5495_v44, %v2868_v60 }
 0x231   : > { %3923 = vst [vmem:[%s5542_s30 + $0x18] sm:$0xff] %v3819_v50   ;;  %v2560_v25 = vmax.f32 %v5256_v10, %v2511_v37  ;;  %v2512_v29 = vmax.f32 %v2341_v54, 0.0 }
 0x232   : > { %v3040_v32 = vmax.f32 %v2869_v53, 0.0 }
 0x233   : > { %v3088_v56 = vmax.f32 %v2560_v25, %v3039_v51  ;;  %v2561_v63 = vmax.f32 %v5262_v14, %v2512_v29 }
 0x234   : > { %v2345_v9 = vpop.f32.mrb[120].mxu0  ;;  %v2873_v2 = vpop.f32.mrb[120].mxu1 }
 0x235   : > { %v3089_v16 = vmax.f32 %v2561_v63, %v3040_v32  ;;  %v2346_v12 = vadd.f32 %v5495_v44, %v2345_v9  ;;  %v2874_v23 = vadd.f32 %v5495_v44, %v2873_v2  ;;  %v4346_v26 = vpop.f32.mrb[121].mxu0  ;;  %v4462_v27 = vpop.f32.mrb[121].mxu1 }
 0x236   : > { %v2348_v28 = vpop.f32.mrb[122].mxu0  ;;  %v2876_v46 = vpop.f32.mrb[122].mxu1 }
 0x237   : > { %v3824_v31 = vpack.c.bf16 %v3089_v16, %v3088_v56  ;;  %v2513_v36 = vmax.f32 %v2346_v12, 0.0  ;;  %v3041_v10 = vmax.f32 %v2874_v23, 0.0  ;;  %v2349_v5 = vadd.f32 %v5495_v44, %v2348_v28  ;;  %v4347_v49 = vpop.f32.mrb[123].mxu0  ;;  %v4463_v14 = vpop.f32.mrb[123].mxu1 }
 0x238   : > { %v2877_v20 = vadd.f32 %v5495_v44, %v2876_v46 }
 0x239   : > { %3924 = vst [vmem:[%s5542_s30 + $0x20] sm:$0xff] %v3824_v31   ;;  %v2562_v60 = vmax.f32 %v5270_v33, %v2513_v36  ;;  %v2514_v50 = vmax.f32 %v2349_v5, 0.0 }
 0x23a   : > { %v3042_v54 = vmax.f32 %v2877_v20, 0.0 }
 0x23b   : > { %v3090_v37 = vmax.f32 %v2562_v60, %v3041_v10  ;;  %v2563_v51 = vmax.f32 %v5276_v38, %v2514_v50 }
 0x23c   : > { %v2353_v15 = vpop.f32.mrb[124].mxu0  ;;  %v2881_v55 = vpop.f32.mrb[124].mxu1 }
 0x23d   : > { %v3091_v53 = vmax.f32 %v2563_v51, %v3042_v54  ;;  %v2354_v25 = vadd.f32 %v5495_v44, %v2353_v15  ;;  %v2882_v29 = vadd.f32 %v5495_v44, %v2881_v55  ;;  %v4350_v56 = vpop.f32.mrb[125].mxu0  ;;  %v4466_v63 = vpop.f32.mrb[125].mxu1 }
 0x23e   : > { %v2356_v32 = vpop.f32.mrb[126].mxu0  ;;  %v2884_v9 = vpop.f32.mrb[126].mxu1 }
 0x23f   : > { %v3829_v2 = vpack.c.bf16 %v3091_v53, %v3090_v37  ;;  %v2515_v16 = vmax.f32 %v2354_v25, 0.0  ;;  %v3043_v33 = vmax.f32 %v2882_v29, 0.0  ;;  %v2357_v12 = vadd.f32 %v5495_v44, %v2356_v32  ;;  %v4351_v23 = vpop.f32.mrb[127].mxu0  ;;  %v4467_v38 = vpop.f32.mrb[127].mxu1 }
 0x240   : > { %v2885_v26 = vadd.f32 %v5495_v44, %v2884_v9 }
 0x241   : > { %3925 = vst [vmem:[%s5542_s30 + $0x28] sm:$0xff] %v3829_v2   ;;  %v2564_v27 = vmax.f32 %v5284_v59, %v2515_v16  ;;  %v2516_v28 = vmax.f32 %v2357_v12, 0.0 }
 0x242   : > { %v3044_v36 = vmax.f32 %v2885_v26, 0.0 }
 0x243   : > { %v3092_v46 = vmax.f32 %v2564_v27, %v3043_v33  ;;  %v2565_v31 = vmax.f32 %v5290_v62, %v2516_v28 }
 0x244   : > { %v2361_v10 = vpop.f32.mrb[128].mxu0  ;;  %v2889_v5 = vpop.f32.mrb[128].mxu1 }
 0x245   : > { %v3093_v49 = vmax.f32 %v2565_v31, %v3044_v36  ;;  %v2362_v14 = vadd.f32 %v5495_v44, %v2361_v10  ;;  %v2890_v20 = vadd.f32 %v5495_v44, %v2889_v5  ;;  %v4354_v60 = vpop.f32.mrb[129].mxu0  ;;  %v4470_v50 = vpop.f32.mrb[129].mxu1 }
 0x246   : > { %v2364_v37 = vpop.f32.mrb[130].mxu0  ;;  %v2892_v51 = vpop.f32.mrb[130].mxu1 }
 0x247   : > { %v3834_v54 = vpack.c.bf16 %v3093_v49, %v3092_v46  ;;  %v2517_v15 = vmax.f32 %v2362_v14, 0.0  ;;  %v3045_v59 = vmax.f32 %v2890_v20, 0.0  ;;  %v2365_v55 = vadd.f32 %v5495_v44, %v2364_v37  ;;  %v4355_v53 = vpop.f32.mrb[131].mxu0  ;;  %v4471_v62 = vpop.f32.mrb[131].mxu1 }
 0x248   : > { %v2893_v25 = vadd.f32 %v5495_v44, %v2892_v51 }
 0x249   : > { %3926 = vst [vmem:[%s5542_s30 + $0x30] sm:$0xff] %v3834_v54   ;;  %v2566_v29 = vmax.f32 %v5298_v19, %v2517_v15  ;;  %v2518_v56 = vmax.f32 %v2365_v55, 0.0 }
 0x24a   : > { %v3046_v9 = vmax.f32 %v2893_v25, 0.0 }
 0x24b   : > { %v3094_v63 = vmax.f32 %v2566_v29, %v3045_v59  ;;  %v2567_v32 = vmax.f32 %v5304_v22, %v2518_v56 }
 0x24c   : > { %v2369_v2 = vpop.f32.mrb[132].mxu0  ;;  %v2897_v16 = vpop.f32.mrb[132].mxu1 }
 0x24d   : > { %v3095_v33 = vmax.f32 %v2567_v32, %v3046_v9  ;;  %v2370_v12 = vadd.f32 %v5495_v44, %v2369_v2  ;;  %v2898_v23 = vadd.f32 %v5495_v44, %v2897_v16  ;;  %v4358_v38 = vpop.f32.mrb[133].mxu0  ;;  %v4474_v26 = vpop.f32.mrb[133].mxu1 }
 0x24e   : > { %v2372_v27 = vpop.f32.mrb[134].mxu0  ;;  %v2900_v28 = vpop.f32.mrb[134].mxu1 }
 0x24f   : > { %v3839_v46 = vpack.c.bf16 %v3095_v33, %v3094_v63  ;;  %v2519_v31 = vmax.f32 %v2370_v12, 0.0  ;;  %v3047_v19 = vmax.f32 %v2898_v23, 0.0  ;;  %v2373_v36 = vadd.f32 %v5495_v44, %v2372_v27  ;;  %v4359_v10 = vpop.f32.mrb[135].mxu0  ;;  %v4475_v22 = vpop.f32.mrb[135].mxu1 }
 0x250   : > { %v2901_v5 = vadd.f32 %v5495_v44, %v2900_v28 }
 0x251   : > { %3927 = vst [vmem:[%s5542_s30 + $0x38] sm:$0xff] %v3839_v46   ;;  %v2568_v49 = vmax.f32 %v5312_v45, %v2519_v31  ;;  %v2520_v14 = vmax.f32 %v2373_v36, 0.0 }
 0x252   : > { %v3048_v50 = vmax.f32 %v2901_v5, 0.0 }
 0x253   : > { %v3096_v20 = vmax.f32 %v2568_v49, %v3047_v19  ;;  %v2569_v60 = vmax.f32 %v5318_v48, %v2520_v14 }
 0x254   : > { %v2377_v37 = vpop.f32.mrb[136].mxu0  ;;  %v2905_v51 = vpop.f32.mrb[136].mxu1 }
 0x255   : > { %v3097_v54 = vmax.f32 %v2569_v60, %v3048_v50  ;;  %v2378_v15 = vadd.f32 %v5495_v44, %v2377_v37  ;;  %v2906_v59 = vadd.f32 %v5495_v44, %v2905_v51  ;;  %v4362_v55 = vpop.f32.mrb[137].mxu0  ;;  %v4478_v53 = vpop.f32.mrb[137].mxu1 }
 0x256   : > { %v2380_v62 = vpop.f32.mrb[138].mxu0  ;;  %v2908_v25 = vpop.f32.mrb[138].mxu1 }
 0x257   : > { %v3844_v29 = vpack.c.bf16 %v3097_v54, %v3096_v20  ;;  %v2521_v56 = vmax.f32 %v2378_v15, 0.0  ;;  %v3049_v45 = vmax.f32 %v2906_v59, 0.0  ;;  %v2381_v63 = vadd.f32 %v5495_v44, %v2380_v62  ;;  %v4363_v32 = vpop.f32.mrb[139].mxu0  ;;  %v4479_v48 = vpop.f32.mrb[139].mxu1 }
 0x258   : > { %v2909_v9 = vadd.f32 %v5495_v44, %v2908_v25 }
 0x259   : > { %3928 = vst [vmem:[%s5542_s30 + $0x40] sm:$0xff] %v3844_v29   ;;  %v2570_v2 = vmax.f32 %v5326_v7, %v2521_v56  ;;  %v2522_v16 = vmax.f32 %v2381_v63, 0.0 }
 0x25a   : > { %v3050_v23 = vmax.f32 %v2909_v9, 0.0 }
 0x25b   : > { %v3098_v33 = vmax.f32 %v2570_v2, %v3049_v45  ;;  %v2571_v12 = vmax.f32 %v5332_v13, %v2522_v16 }
 0x25c   : > { %v2385_v38 = vpop.f32.mrb[140].mxu0  ;;  %v2913_v26 = vpop.f32.mrb[140].mxu1 }
 0x25d   : > { %v3099_v27 = vmax.f32 %v2571_v12, %v3050_v23  ;;  %v2386_v28 = vadd.f32 %v5495_v44, %v2385_v38  ;;  %v2914_v46 = vadd.f32 %v5495_v44, %v2913_v26  ;;  %v4366_v31 = vpop.f32.mrb[141].mxu0  ;;  %v4482_v19 = vpop.f32.mrb[141].mxu1 }
 0x25e   : > { %v2388_v36 = vpop.f32.mrb[142].mxu0  ;;  %v2916_v10 = vpop.f32.mrb[142].mxu1 }
 0x25f   : > { %v3849_v22 = vpack.c.bf16 %v3099_v27, %v3098_v33  ;;  %v2523_v5 = vmax.f32 %v2386_v28, 0.0  ;;  %v3051_v7 = vmax.f32 %v2914_v46, 0.0  ;;  %v2389_v49 = vadd.f32 %v5495_v44, %v2388_v36  ;;  %v4367_v14 = vpop.f32.mrb[143].mxu0  ;;  %v4483_v13 = vpop.f32.mrb[143].mxu1 }
 0x260   : > { %v2917_v20 = vadd.f32 %v5495_v44, %v2916_v10 }
 0x261   : > { %3929 = vst [vmem:[%s5542_s30 + $0x48] sm:$0xff] %v3849_v22   ;;  %v2572_v60 = vmax.f32 %v5340_v39, %v2523_v5  ;;  %v2524_v50 = vmax.f32 %v2389_v49, 0.0 }
 0x262   : > { %v3052_v54 = vmax.f32 %v2917_v20, 0.0 }
 0x263   : > { %v3100_v37 = vmax.f32 %v2572_v60, %v3051_v7  ;;  %v2573_v51 = vmax.f32 %v5346_v42, %v2524_v50 }
 0x264   : > { %v2393_v15 = vpop.f32.mrb[144].mxu0  ;;  %v2921_v59 = vpop.f32.mrb[144].mxu1 }
 0x265   : > { %v3101_v55 = vmax.f32 %v2573_v51, %v3052_v54  ;;  %v2394_v53 = vadd.f32 %v5495_v44, %v2393_v15  ;;  %v2922_v62 = vadd.f32 %v5495_v44, %v2921_v59  ;;  %v4370_v25 = vpop.f32.mrb[145].mxu0  ;;  %v4486_v29 = vpop.f32.mrb[145].mxu1 }
 0x266   : > { %v2396_v56 = vpop.f32.mrb[146].mxu0  ;;  %v2924_v45 = vpop.f32.mrb[146].mxu1 }
 0x267   : > { %v3854_v63 = vpack.c.bf16 %v3101_v55, %v3100_v37  ;;  %v2525_v32 = vmax.f32 %v2394_v53, 0.0  ;;  %v3053_v39 = vmax.f32 %v2922_v62, 0.0  ;;  %v2397_v48 = vadd.f32 %v5495_v44, %v2396_v56  ;;  %v4371_v9 = vpop.f32.mrb[147].mxu0  ;;  %v4487_v42 = vpop.f32.mrb[147].mxu1 }
 0x268   : > { %v2925_v2 = vadd.f32 %v5495_v44, %v2924_v45 }
 0x269   : > { %3930 = vst [vmem:[%s5542_s30 + $0x50] sm:$0xff] %v3854_v63   ;;  %v2574_v16 = vmax.f32 %v5354_v3, %v2525_v32  ;;  %v2526_v33 = vmax.f32 %v2397_v48, 0.0 }
 0x26a   : > { %v3054_v38 = vmax.f32 %v2925_v2, 0.0 }
 0x26b   : > { %v3102_v12 = vmax.f32 %v2574_v16, %v3053_v39  ;;  %v2575_v23 = vmax.f32 %v5360_v6, %v2526_v33 }
 0x26c   : > { %v2401_v26 = vpop.f32.mrb[148].mxu0  ;;  %v2929_v27 = vpop.f32.mrb[148].mxu1 }
 0x26d   : > { %v3103_v28 = vmax.f32 %v2575_v23, %v3054_v38  ;;  %v2402_v46 = vadd.f32 %v5495_v44, %v2401_v26  ;;  %v2930_v31 = vadd.f32 %v5495_v44, %v2929_v27  ;;  %v4374_v19 = vpop.f32.mrb[149].mxu0  ;;  %v4490_v36 = vpop.f32.mrb[149].mxu1 }
 0x26e   : > { %v2404_v10 = vpop.f32.mrb[150].mxu0  ;;  %v2932_v22 = vpop.f32.mrb[150].mxu1 }
 0x26f   : > { %v3859_v5 = vpack.c.bf16 %v3103_v28, %v3102_v12  ;;  %v2527_v7 = vmax.f32 %v2402_v46, 0.0  ;;  %v3055_v3 = vmax.f32 %v2930_v31, 0.0  ;;  %v2405_v49 = vadd.f32 %v5495_v44, %v2404_v10  ;;  %v4375_v14 = vpop.f32.mrb[151].mxu0  ;;  %v4491_v6 = vpop.f32.mrb[151].mxu1 }
 0x270   : > { %v2933_v13 = vadd.f32 %v5495_v44, %v2932_v22 }
 0x271   : > { %3931 = vst [vmem:[%s5542_s30 + $0x58] sm:$0xff] %v3859_v5   ;;  %v2576_v20 = vmax.f32 %v5368_v34, %v2527_v7  ;;  %v2528_v60 = vmax.f32 %v2405_v49, 0.0 }
 0x272   : > { %v3056_v51 = vmax.f32 %v2933_v13, 0.0 }
 0x273   : > { %v3104_v50 = vmax.f32 %v2576_v20, %v3055_v3  ;;  %v2577_v37 = vmax.f32 %v5374_v41, %v2528_v60 }
 0x274   : > { %v2409_v54 = vpop.f32.mrb[152].mxu0  ;;  %v2937_v15 = vpop.f32.mrb[152].mxu1 }
 0x275   : > { %v3105_v59 = vmax.f32 %v2577_v37, %v3056_v51  ;;  %v2410_v55 = vadd.f32 %v5495_v44, %v2409_v54  ;;  %v2938_v53 = vadd.f32 %v5495_v44, %v2937_v15  ;;  %v4378_v62 = vpop.f32.mrb[153].mxu0  ;;  %v4494_v25 = vpop.f32.mrb[153].mxu1 }
 0x276   : > { %v2412_v29 = vpop.f32.mrb[154].mxu0  ;;  %v2940_v56 = vpop.f32.mrb[154].mxu1 }
 0x277   : > { %v3864_v45 = vpack.c.bf16 %v3105_v59, %v3104_v50  ;;  %v2529_v63 = vmax.f32 %v2410_v55, 0.0  ;;  %v3057_v34 = vmax.f32 %v2938_v53, 0.0  ;;  %v2413_v32 = vadd.f32 %v5495_v44, %v2412_v29  ;;  %v4379_v39 = vpop.f32.mrb[155].mxu0  ;;  %v4495_v41 = vpop.f32.mrb[155].mxu1 }
 0x278   : > { %v2941_v48 = vadd.f32 %v5495_v44, %v2940_v56 }
 0x279   : > { %3932 = vst [vmem:[%s5542_s30 + $0x60] sm:$0xff] %v3864_v45   ;;  %v2578_v9 = vmax.f32 %v5382_v4, %v2529_v63  ;;  %v2530_v42 = vmax.f32 %v2413_v32, 0.0 }
 0x27a   : > { %v3058_v33 = vmax.f32 %v2941_v48, 0.0 }
 0x27b   : > { %v3106_v2 = vmax.f32 %v2578_v9, %v3057_v34  ;;  %v2579_v16 = vmax.f32 %v5388_v11, %v2530_v42 }
 0x27c   : > { %v2417_v12 = vpop.f32.mrb[156].mxu0  ;;  %v2945_v23 = vpop.f32.mrb[156].mxu1 }
 0x27d   : > { %v3107_v38 = vmax.f32 %v2579_v16, %v3058_v33  ;;  %v2418_v26 = vadd.f32 %v5495_v44, %v2417_v12  ;;  %v2946_v27 = vadd.f32 %v5495_v44, %v2945_v23  ;;  %v4382_v28 = vpop.f32.mrb[157].mxu0  ;;  %v4498_v46 = vpop.f32.mrb[157].mxu1 }
 0x27e   : > { %v2420_v31 = vpop.f32.mrb[158].mxu0  ;;  %v2948_v19 = vpop.f32.mrb[158].mxu1 }
 0x27f   : > { %v3869_v36 = vpack.c.bf16 %v3107_v38, %v3106_v2  ;;  %v2531_v10 = vmax.f32 %v2418_v26, 0.0  ;;  %v3059_v4 = vmax.f32 %v2946_v27, 0.0  ;;  %v2421_v22 = vadd.f32 %v5495_v44, %v2420_v31  ;;  %v4383_v5 = vpop.f32.mrb[159].mxu0  ;;  %v4499_v11 = vpop.f32.mrb[159].mxu1 }
 0x280   : > { %v2949_v7 = vadd.f32 %v5495_v44, %v2948_v19 }
 0x281   : > { %3933 = vst [vmem:[%s5542_s30 + $0x68] sm:$0xff] %v3869_v36   ;;  %v2580_v3 = vmax.f32 %v5396_v43, %v2531_v10  ;;  %v2532_v49 = vmax.f32 %v2421_v22, 0.0 }
 0x282   : > { %v3060_v13 = vmax.f32 %v2949_v7, 0.0 }
 0x283   : > { %v3108_v14 = vmax.f32 %v2580_v3, %v3059_v4  ;;  %v2581_v6 = vmax.f32 %v5402_v47, %v2532_v49 }
 0x284   : > { %v2425_v20 = vpop.f32.mrb[160].mxu0  ;;  %v2953_v60 = vpop.f32.mrb[160].mxu1 }
 0x285   : > { %v3109_v50 = vmax.f32 %v2581_v6, %v3060_v13  ;;  %v2426_v37 = vadd.f32 %v5495_v44, %v2425_v20  ;;  %v2954_v51 = vadd.f32 %v5495_v44, %v2953_v60  ;;  %v4386_v54 = vpop.f32.mrb[161].mxu0  ;;  %v4502_v15 = vpop.f32.mrb[161].mxu1 }
 0x286   : > { %v2428_v59 = vpop.f32.mrb[162].mxu0  ;;  %v2956_v55 = vpop.f32.mrb[162].mxu1 }
 0x287   : > { %v3874_v53 = vpack.c.bf16 %v3109_v50, %v3108_v14  ;;  %v2533_v62 = vmax.f32 %v2426_v37, 0.0  ;;  %v3061_v43 = vmax.f32 %v2954_v51, 0.0  ;;  %v2429_v25 = vadd.f32 %v5495_v44, %v2428_v59  ;;  %v4387_v29 = vpop.f32.mrb[163].mxu0  ;;  %v4503_v47 = vpop.f32.mrb[163].mxu1 }
 0x288   : > { %v2957_v56 = vadd.f32 %v5495_v44, %v2956_v55 }
 0x289   : > { %3934 = vst [vmem:[%s5542_s30 + $0x70] sm:$0xff] %v3874_v53   ;;  %v2582_v45 = vmax.f32 %v5410_v17, %v2533_v62  ;;  %v2534_v63 = vmax.f32 %v2429_v25, 0.0 }
 0x28a   : > { %v3062_v39 = vmax.f32 %v2957_v56, 0.0 }
 0x28b   : > { %v3110_v34 = vmax.f32 %v2582_v45, %v3061_v43  ;;  %v2583_v32 = vmax.f32 %v5416_v21, %v2534_v63 }
 0x28c   : > { %v2433_v41 = vpop.f32.mrb[164].mxu0  ;;  %v2961_v48 = vpop.f32.mrb[164].mxu1 }
 0x28d   : > { %v3111_v9 = vmax.f32 %v2583_v32, %v3062_v39  ;;  %v2434_v42 = vadd.f32 %v5495_v44, %v2433_v41  ;;  %v2962_v2 = vadd.f32 %v5495_v44, %v2961_v48  ;;  %v4390_v16 = vpop.f32.mrb[165].mxu0  ;;  %v4506_v33 = vpop.f32.mrb[165].mxu1 }
 0x28e   : > { %v2436_v12 = vpop.f32.mrb[166].mxu0  ;;  %v2964_v23 = vpop.f32.mrb[166].mxu1 }
 0x28f   : > { %v3879_v38 = vpack.c.bf16 %v3111_v9, %v3110_v34  ;;  %v2535_v26 = vmax.f32 %v2434_v42, 0.0  ;;  %v3063_v17 = vmax.f32 %v2962_v2, 0.0  ;;  %v2437_v27 = vadd.f32 %v5495_v44, %v2436_v12  ;;  %v4391_v28 = vpop.f32.mrb[167].mxu0  ;;  %v4507_v21 = vpop.f32.mrb[167].mxu1 }
 0x290   : > { %v2965_v46 = vadd.f32 %v5495_v44, %v2964_v23 }
 0x291   : > { %3935 = vst [vmem:[%s5542_s30 + $0x78] sm:$0xff] %v3879_v38   ;;  %v2584_v31 = vmax.f32 %v5424_v57, %v2535_v26  ;;  %v2536_v19 = vmax.f32 %v2437_v27, 0.0 }
 0x292   : > { %v3064_v4 = vmax.f32 %v2965_v46, 0.0 }
 0x293   : > { %v3112_v36 = vmax.f32 %v2584_v31, %v3063_v17  ;;  %v2585_v10 = vmax.f32 %v5430_v61, %v2536_v19 }
 0x294   : > { %v2441_v22 = vpop.f32.mrb[168].mxu0  ;;  %v2969_v5 = vpop.f32.mrb[168].mxu1 }
 0x295   : > { %v3113_v11 = vmax.f32 %v2585_v10, %v3064_v4  ;;  %v2442_v7 = vadd.f32 %v5495_v44, %v2441_v22  ;;  %v2970_v3 = vadd.f32 %v5495_v44, %v2969_v5  ;;  %v4394_v49 = vpop.f32.mrb[169].mxu0  ;;  %v4510_v14 = vpop.f32.mrb[169].mxu1 }
 0x296   : > { %v2444_v6 = vpop.f32.mrb[170].mxu0  ;;  %v2972_v13 = vpop.f32.mrb[170].mxu1 }
 0x297   : > { %v3884_v20 = vpack.c.bf16 %v3113_v11, %v3112_v36  ;;  %v2537_v60 = vmax.f32 %v2442_v7, 0.0  ;;  %v3065_v57 = vmax.f32 %v2970_v3, 0.0  ;;  %v2445_v50 = vadd.f32 %v5495_v44, %v2444_v6  ;;  %v4395_v37 = vpop.f32.mrb[171].mxu0  ;;  %v4511_v61 = vpop.f32.mrb[171].mxu1 }
 0x298   : > { %v2973_v51 = vadd.f32 %v5495_v44, %v2972_v13 }
 0x299   : > { %3936 = vst [vmem:[%s5542_s30 + $0x80] sm:$0xff] %v3884_v20   ;;  %v2586_v54 = vmax.f32 %v5438_v30, %v2537_v60  ;;  %v2538_v15 = vmax.f32 %v2445_v50, 0.0 }
 0x29a   : > { %v3066_v53 = vmax.f32 %v2973_v51, 0.0 }
 0x29b   : > { %v3114_v59 = vmax.f32 %v2586_v54, %v3065_v57  ;;  %v2587_v55 = vmax.f32 %v5444_v40, %v2538_v15 }
 0x29c   : > { %v2449_v62 = vpop.f32.mrb[172].mxu0  ;;  %v2977_v43 = vpop.f32.mrb[172].mxu1 }
 0x29d   : > { %v3115_v25 = vmax.f32 %v2587_v55, %v3066_v53  ;;  %v2450_v29 = vadd.f32 %v5495_v44, %v2449_v62  ;;  %v2978_v47 = vadd.f32 %v5495_v44, %v2977_v43  ;;  %v4398_v56 = vpop.f32.mrb[173].mxu0  ;;  %v4514_v45 = vpop.f32.mrb[173].mxu1 }
 0x29e   : > { %v2452_v63 = vpop.f32.mrb[174].mxu0  ;;  %v2980_v34 = vpop.f32.mrb[174].mxu1 }
 0x29f   : > { %v3889_v32 = vpack.c.bf16 %v3115_v25, %v3114_v59  ;;  %v2539_v39 = vmax.f32 %v2450_v29, 0.0  ;;  %v3067_v30 = vmax.f32 %v2978_v47, 0.0  ;;  %v2453_v41 = vadd.f32 %v5495_v44, %v2452_v63  ;;  %v4399_v48 = vpop.f32.mrb[175].mxu0  ;;  %v4515_v40 = vpop.f32.mrb[175].mxu1 }
 0x2a0   : > { %v2981_v9 = vadd.f32 %v5495_v44, %v2980_v34 }
 0x2a1   : > { %3937 = vst [vmem:[%s5542_s30 + $0x88] sm:$0xff] %v3889_v32   ;;  %v2588_v42 = vmax.f32 %v5452_v18, %v2539_v39  ;;  %v2540_v2 = vmax.f32 %v2453_v41, 0.0 }
 0x2a2   : > { %v3068_v12 = vmax.f32 %v2981_v9, 0.0 }
 0x2a3   : > { %v3116_v16 = vmax.f32 %v2588_v42, %v3067_v30  ;;  %v2589_v33 = vmax.f32 %v5458_v24, %v2540_v2 }
 0x2a4   : > { %v2457_v23 = vpop.f32.mrb[176].mxu0  ;;  %v2985_v38 = vpop.f32.mrb[176].mxu1 }
 0x2a5   : > { %v3117_v26 = vmax.f32 %v2589_v33, %v3068_v12  ;;  %v2458_v17 = vadd.f32 %v5495_v44, %v2457_v23  ;;  %v2986_v27 = vadd.f32 %v5495_v44, %v2985_v38  ;;  %v4402_v28 = vpop.f32.mrb[177].mxu0  ;;  %v4518_v21 = vpop.f32.mrb[177].mxu1  ;;  %v5732_v23 = vld [vmem:[#allocation3_spill] sm:$0xff] }
 0x2a6   : > { %v2460_v46 = vpop.f32.mrb[178].mxu0  ;;  %v2988_v31 = vpop.f32.mrb[178].mxu1 }
 0x2a7   : > { %v3894_v19 = vpack.c.bf16 %v3117_v26, %v3116_v16  ;;  %v2541_v36 = vmax.f32 %v2458_v17, 0.0  ;;  %v3069_v18 = vmax.f32 %v2986_v27, 0.0  ;;  %v2461_v10 = vadd.f32 %v5495_v44, %v2460_v46  ;;  %v4403_v4 = vpop.f32.mrb[179].mxu0  ;;  %v4519_v24 = vpop.f32.mrb[179].mxu1 }
 0x2a8   : > { %v2989_v22 = vadd.f32 %v5495_v44, %v2988_v31 }
 0x2a9   : > { %3938 = vst [vmem:[%s5542_s30 + $0x90] sm:$0xff] %v3894_v19   ;;  %v2590_v5 = vmax.f32 %v5466_v1, %v2541_v36  ;;  %v2542_v11 = vmax.f32 %v2461_v10, 0.0 }
 0x2aa   : > { %v3070_v49 = vmax.f32 %v2989_v22, 0.0 }
 0x2ab   : > { %v3118_v7 = vmax.f32 %v2590_v5, %v3069_v18  ;;  %v2591_v3 = vmax.f32 %v5472_v8, %v2542_v11  ;;  %v5680_v8 = vld [vmem:[%s5725_s2] ss:$0 sm:$0xff] }
 0x2ac   : > { %v2465_v14 = vpop.f32.mrb[180].mxu0  ;;  %v2993_v6 = vpop.f32.mrb[180].mxu1 }
 0x2ad   : > { %v3119_v13 = vmax.f32 %v2591_v3, %v3070_v49  ;;  %v2466_v20 = vadd.f32 %v5495_v44, %v2465_v14  ;;  %v2994_v60 = vadd.f32 %v5495_v44, %v2993_v6  ;;  %v4406_v57 = vpop.f32.mrb[181].mxu0  ;;  %v4522_v50 = vpop.f32.mrb[181].mxu1  ;;  %v5733_v14 = vld [vmem:[#allocation4_spill] sm:$0xff] }
 0x2ae   : > { %v2468_v37 = vpop.f32.mrb[182].mxu0  ;;  %v2996_v61 = vpop.f32.mrb[182].mxu1 }
 0x2af   : > { %v3899_v51 = vpack.c.bf16 %v3119_v13, %v3118_v7  ;;  %v2543_v54 = vmax.f32 %v2466_v20, 0.0  ;;  %v3071_v1 = vmax.f32 %v2994_v60, 0.0  ;;  %v2469_v15 = vadd.f32 %v5680_v8, %v2468_v37  ;;  %v4407_v59 = vpop.f32.mrb[183].mxu0  ;;  %v4523_v55 = vpop.f32.mrb[183].mxu1 }
 0x2b0   : > { %v2997_v53 = vadd.f32 %v5680_v8, %v2996_v61 }
 0x2b1   : > { %3939 = vst [vmem:[%s5542_s30 + $0x98] sm:$0xff] %v3899_v51   ;;  %v2592_v44 = vmax.f32 %v5480_v58, %v2543_v54  ;;  %v2544_v62 = vmax.f32 %v2469_v15, 0.0 }
 0x2b2   : > { %v3072_v29 = vmax.f32 %v2997_v53, 0.0 }
 0x2b3   : > { %v3120_v43 = vmax.f32 %v2592_v44, %v3071_v1  ;;  %v2593_v25 = vmax.f32 %v5486_v0, %v2544_v62 }
 0x2b4   : > { %v2473_v47 = vpop.f32.mrb[184].mxu0  ;;  %v3001_v56 = vpop.f32.mrb[184].mxu1 }
 0x2b5   : > { %v3121_v45 = vmax.f32 %v2593_v25, %v3072_v29  ;;  %v2474_v63 = vadd.f32 %v5680_v8, %v2473_v47  ;;  %v3002_v34 = vadd.f32 %v5680_v8, %v3001_v56  ;;  %v4410_v32 = vpop.f32.mrb[185].mxu0  ;;  %v4526_v39 = vpop.f32.mrb[185].mxu1  ;;  %v5735_v56 = vld [vmem:[#allocation6_spill] sm:$0xff] }
 0x2b6   : > { %v2476_v30 = vpop.f32.mrb[186].mxu0  ;;  %v3004_v41 = vpop.f32.mrb[186].mxu1 }
 0x2b7   : > { %v3904_v48 = vpack.c.bf16 %v3121_v45, %v3120_v43  ;;  %v2545_v40 = vmax.f32 %v2474_v63, 0.0  ;;  %v3073_v58 = vmax.f32 %v3002_v34, 0.0  ;;  %v2477_v9 = vadd.f32 %v5680_v8, %v2476_v30  ;;  %v4411_v42 = vpop.f32.mrb[187].mxu0  ;;  %v4527_v0 = vpop.f32.mrb[187].mxu1  ;;  %v5734_v43 = vld [vmem:[#allocation5_spill] sm:$0xff] }
 0x2b8   : > { %v3005_v2 = vadd.f32 %v5680_v8, %v3004_v41 }
 0x2b9   : > { %3940 = vst [vmem:[%s5542_s30 + $0xa0] sm:$0xff] %v3904_v48   ;;  %v2594_v16 = vmax.f32 %v5499_v52, %v2545_v40  ;;  %v2546_v33 = vmax.f32 %v2477_v9, 0.0 }
 0x2ba   : > { %v3074_v26 = vmax.f32 %v3005_v2, 0.0 }
 0x2bb   : > { %v3122_v12 = vmax.f32 %v2594_v16, %v3073_v58  ;;  %v2595_v38 = vmax.f32 %v5732_v23, %v2546_v33 }
 0x2bc   : > { %v2481_v17 = vpop.f32.mrb[188].mxu0  ;;  %v3009_v27 = vpop.f32.mrb[188].mxu1 }
 0x2bd   : > { %v3123_v28 = vmax.f32 %v2595_v38, %v3074_v26  ;;  %v2482_v21 = vadd.f32 %v5680_v8, %v2481_v17  ;;  %v3010_v46 = vadd.f32 %v5680_v8, %v3009_v27  ;;  %v4414_v31 = vpop.f32.mrb[189].mxu0  ;;  %v4530_v19 = vpop.f32.mrb[189].mxu1 }
 0x2be   : > { %v2484_v36 = vpop.f32.mrb[190].mxu0  ;;  %v3012_v18 = vpop.f32.mrb[190].mxu1 }
 0x2bf   : > { %v3909_v10 = vpack.c.bf16 %v3123_v28, %v3122_v12  ;;  %v2547_v4 = vmax.f32 %v2482_v21, 0.0  ;;  %v3075_v52 = vmax.f32 %v3010_v46, 0.0  ;;  %v2485_v24 = vadd.f32 %v5680_v8, %v2484_v36  ;;  %v4415_v22 = vpop.f32.mrb[191].mxu0  ;;  %v4531_v5 = vpop.f32.mrb[191].mxu1  ;;  %v5736_v12 = vld [vmem:[#allocation7_spill] sm:$0xff] }
 0x2c0   : > { %v3013_v11 = vadd.f32 %v5680_v8, %v3012_v18 }
 0x2c1   : > { %3941 = vst [vmem:[%s5542_s30 + $0xa8] sm:$0xff] %v3909_v10   ;;  %v2596_v7 = vmax.f32 %v5513_v35, %v2547_v4  ;;  %v2548_v3 = vmax.f32 %v2485_v24, 0.0 }
 0x2c2   : > { %v3076_v13 = vmax.f32 %v3013_v11, 0.0 }
 0x2c3   : > { %v3124_v49 = vmax.f32 %v2596_v7, %v3075_v52  ;;  %v2597_v6 = vmax.f32 %v5733_v14, %v2548_v3 }
 0x2c4   : > { %v2489_v20 = vpop.f32.mrb[192].mxu0  ;;  %v3017_v60 = vpop.f32.mrb[192].mxu1 }
 0x2c5   : > { %v3125_v57 = vmax.f32 %v2597_v6, %v3076_v13  ;;  %v2490_v50 = vadd.f32 %v5680_v8, %v2489_v20  ;;  %v3018_v37 = vadd.f32 %v5680_v8, %v3017_v60  ;;  %v4418_v61 = vpop.f32.mrb[193].mxu0  ;;  %v4534_v51 = vpop.f32.mrb[193].mxu1 }
 0x2c6   : > { %v2492_v54 = vpop.f32.mrb[194].mxu0  ;;  %v3020_v1 = vpop.f32.mrb[194].mxu1 }
 0x2c7   : > { %v3914_v15 = vpack.c.bf16 %v3125_v57, %v3124_v49  ;;  %v2549_v59 = vmax.f32 %v2490_v50, 0.0  ;;  %v3077_v35 = vmax.f32 %v3018_v37, 0.0  ;;  %v2493_v55 = vadd.f32 %v5680_v8, %v2492_v54  ;;  %v4419_v53 = vpop.f32.mrb[195].mxu0  ;;  %v4535_v44 = vpop.f32.mrb[195].mxu1 }
 0x2c8   : > { %v3021_v62 = vadd.f32 %v5680_v8, %v3020_v1 }
 0x2c9   : > { %3942 = vst [vmem:[%s5542_s30 + $0xb0] sm:$0xff] %v3914_v15   ;;  %v2598_v25 = vmax.f32 %v5734_v43, %v2549_v59  ;;  %v2550_v29 = vmax.f32 %v2493_v55, 0.0 }
 0x2ca   : > { %v3078_v63 = vmax.f32 %v3021_v62, 0.0 }
 0x2cb   : > { %v3126_v47 = vmax.f32 %v2598_v25, %v3077_v35  ;;  %v2599_v45 = vmax.f32 %v5735_v56, %v2550_v29 }
 0x2cc   : > { %v2497_v34 = vpop.f32.mrb[196].mxu0  ;;  %v3025_v32 = vpop.f32.mrb[196].mxu1 }
 0x2cd   : > { %v3127_v39 = vmax.f32 %v2599_v45, %v3078_v63  ;;  %v2498_v30 = vadd.f32 %v5680_v8, %v2497_v34  ;;  %v3026_v41 = vadd.f32 %v5680_v8, %v3025_v32  ;;  %v4422_v48 = vpop.f32.mrb[197].mxu0  ;;  %v4538_v40 = vpop.f32.mrb[197].mxu1 }
 0x2ce   : > { %v2500_v58 = vpop.f32.mrb[198].mxu0  ;;  %v3028_v9 = vpop.f32.mrb[198].mxu1 }
 0x2cf   : > { %v3919_v42 = vpack.c.bf16 %v3127_v39, %v3126_v47  ;;  %v2551_v0 = vmax.f32 %v2498_v30, 0.0  ;;  %v3079_v2 = vmax.f32 %v3026_v41, 0.0  ;;  %v4423_v16 = vpop.f32.mrb[199].mxu0  ;;  %v4539_v33 = vpop.f32.mrb[199].mxu1 }
 0x2d1   : > { %3943 = vst [vmem:[%s5542_s30 + $0xb8] sm:$0xff] %v3919_v42   ;;  %v2600_v23 = vmax.f32 %v5736_v12, %v2551_v0 }
 0x2d3   : > { %v3128_v38 = vmax.f32 %v2600_v23, %v3079_v2 }
 0x2d5   : > { %v3800_v26 = vpack.c.bf16 %v3128_v38, %v3128_v38 }
 0x2d7   : > { %3374 = vst [vmem:[%s5542_s30 + $0xc0] sm:$0xf] %v3800_v26 }
 0x2d8 PF: > { %p10_p9 = scmp.ge.s32.totalorder %s4741_s16, 6   ;;  %s5737_s12 = smov %s4696_s13 }
 0x2d9   : > { %s5738_s13 = smov %s4750_s19  ;;  %s5739_s14 = smov %s4741_s16 }
 0x2da   :  { %12 = sbr.rel (!%p10_p9) target bundleno = 2 (0x2), region = 111 }

// kernel: lenet_forward.3
= control target key start
LH: loop header
LB: loop body
LE: loop exit
PB: predicated region body
PF: predicated region fallthrough
CT: control target
= control target key end

     0   :  { %vm6779_vm0 = vmmov 0   ;;  %s8419_s1 = inlined_call_operand.vmem [shape: bf16[256,128], index: 1, kind: input, shape index: {}]   ;;  %s8420_s0 = inlined_call_operand.vmem [shape: bf16[4,200,256], index: 0, kind: input, shape index: {}]   ;;  %s8421_s3 = inlined_call_operand.vmem [shape: bf16[25,128,128], index: 3, kind: input, shape index: {}]   ;;  %s8422_s2 = inlined_call_operand.vmem [shape: f32[1,128], index: 2, kind: input, shape index: {}]   ;;  %s8423_s5 = inlined_call_operand.vmem [shape: bf16[128,128], index: 5, kind: input, shape index: {}]   ;;  %s8424_s7 = inlined_call_operand.vmem [shape: bf16[128,128], index: 7, kind: input, shape index: {}]   ;;  %s8425_s4 = inlined_call_operand.vmem [shape: f32[1,128], index: 4, kind: input, shape index: {}]   ;;  %s8426_s6 = inlined_call_operand.vmem [shape: f32[1,128], index: 6, kind: input, shape index: {}]   ;;  %s8427_s8 = inlined_call_operand.vmem [shape: f32[1,128], index: 8, kind: input, shape index: {}]   ;;  %s8428_s9 = inlined_call_operand.vmem [shape: f32[8,128], index: 9, kind: output, shape index: {}]  }
   0x1   :  { %v6393_v0 = vld [vmem:[%s8419_s1 + $0x40] sm:$0xff]   ;;  %v6395_v2 = vld [vmem:[%s8419_s1 + $0x48] sm:$0xff]   ;;  %v6847_v4 = vld [vmem:[%s8419_s1 + $0x50] sm:$0xff]  }
   0x2   :  { %v6394_v1 = vld [vmem:[%s8419_s1] sm:$0xff]   ;;  %5232 = vmatprep.subr.bf16.mxu0 %v6393_v0  ;;  %5326 = vmatprep.subr.bf16.mxu1 %v6393_v0  ;;  %v6842_v3 = vld [vmem:[%s8419_s1 + $0x8] sm:$0xff]   ;;  %v6854_v5 = vld [vmem:[%s8419_s1 + $0x10] sm:$0xff]  }
   0x3   :  { %5233 = vmatpush3.bf16.msra.mxu0 %v6394_v1  ;;  %5327 = vmatpush3.bf16.msra.mxu1 %v6394_v1  ;;  %v6861_v6 = vld [vmem:[%s8419_s1 + $0x58] sm:$0xff]   ;;  %v6875_v8 = vld [vmem:[%s8419_s1 + $0x60] sm:$0xff]   ;;  %v6889_v10 = vld [vmem:[%s8419_s1 + $0x68] sm:$0xff]  }
   0x4   :  { %5234 = vmatprep.subr.bf16.mxu0 %v6395_v2  ;;  %5328 = vmatprep.subr.bf16.mxu1 %v6395_v2  ;;  %v6868_v7 = vld [vmem:[%s8419_s1 + $0x18] sm:$0xff]   ;;  %v6882_v9 = vld [vmem:[%s8419_s1 + $0x20] sm:$0xff]   ;;  %v6414_v12 = vld [vmem:[%s8420_s0 + $0xcc] ss:$8 sps:$4 sm:$0xff]  }
   0x5   :  { %v6411_v11 = vld [vmem:[%s8420_s0 + $0x4] ss:$8 sps:$4 sm:$0xff]   ;;  %v6909_v14 = vld [vmem:[%s8419_s1 + $0x70] sm:$0xff]   ;;  %666 = vmatprep.mubr.bf16.mxu1 %v6414_v12  ;;  %v6923_v16 = vld [vmem:[%s8419_s1 + $0x78] sm:$0xff]  }
   0x6   :  { %v6902_v13 = vld [vmem:[%s8419_s1 + $0x28] sm:$0xff]   ;;  %352 = vmatprep.mubr.bf16.mxu0 %v6411_v11  ;;  %v6916_v15 = vld [vmem:[%s8419_s1 + $0x30] sm:$0xff]   ;;  %v6930_v17 = vld [vmem:[%s8419_s1 + $0x38] sm:$0xff]  }
   0x7   :  { %5235 = vmatpush3.bf16.msra.mxu0 %v6842_v3  ;;  %5329 = vmatpush3.bf16.msra.mxu1 %v6842_v3  ;;  %v6409_v18 = vld [vmem:[%s8420_s0] ss:$8 sps:$4 sm:$0xff]   ;;  %v6415_v20 = vld [vmem:[%s8420_s0 + $0x14] ss:$8 sps:$4 sm:$0xff]   ;;  %v6419_v22 = vld [vmem:[%s8420_s0 + $0x10] ss:$8 sps:$4 sm:$0xff]  }
   0x8   :  { %5236 = vmatprep.subr.bf16.mxu0 %v6847_v4  ;;  %5330 = vmatprep.subr.bf16.mxu1 %v6847_v4  ;;  %v6412_v19 = vld [vmem:[%s8420_s0 + $0xc8] ss:$8 sps:$4 sm:$0xff]   ;;  %v6417_v21 = vld [vmem:[%s8420_s0 + $0xdc] ss:$8 sps:$4 sm:$0xff]   ;;  %v6420_v23 = vld [vmem:[%s8420_s0 + $0xd8] ss:$8 sps:$4 sm:$0xff]  }
   0x9   :  { %v6421_v24 = vld [vmem:[%s8420_s0 + $0x24] ss:$8 sps:$4 sm:$0xff]   ;;  %v6425_v26 = vld [vmem:[%s8420_s0 + $0x20] ss:$8 sps:$4 sm:$0xff]   ;;  %v6427_v28 = vld [vmem:[%s8420_s0 + $0x34] ss:$8 sps:$4 sm:$0xff]  }
   0xa   :  { %v6423_v25 = vld [vmem:[%s8420_s0 + $0xec] ss:$8 sps:$4 sm:$0xff]   ;;  %v6426_v27 = vld [vmem:[%s8420_s0 + $0xe8] ss:$8 sps:$4 sm:$0xff]   ;;  %v6429_v29 = vld [vmem:[%s8420_s0 + $0xfc] ss:$8 sps:$4 sm:$0xff]  }
   0xb   :  { %5237 = vmatpush3.bf16.msra.mxu0 %v6854_v5  ;;  %5331 = vmatpush3.bf16.msra.mxu1 %v6854_v5  ;;  %v6431_v30 = vld [vmem:[%s8420_s0 + $0x30] ss:$8 sps:$4 sm:$0xff]   ;;  %v6433_v32 = vld [vmem:[%s8420_s0 + $0x44] ss:$8 sps:$4 sm:$0xff]   ;;  %v6437_v34 = vld [vmem:[%s8420_s0 + $0x40] ss:$8 sps:$4 sm:$0xff]  }
   0xc   :  { %5238 = vmatprep.subr.bf16.mxu0 %v6861_v6  ;;  %5332 = vmatprep.subr.bf16.mxu1 %v6861_v6  ;;  %v6432_v31 = vld [vmem:[%s8420_s0 + $0xf8] ss:$8 sps:$4 sm:$0xff]   ;;  %v6435_v33 = vld [vmem:[%s8420_s0 + $0x10c] ss:$8 sps:$4 sm:$0xff]   ;;  %v6438_v35 = vld [vmem:[%s8420_s0 + $0x108] ss:$8 sps:$4 sm:$0xff]  }
   0xd   :  { %v6439_v36 = vld [vmem:[%s8420_s0 + $0x54] ss:$8 sps:$4 sm:$0xff]   ;;  %v6443_v38 = vld [vmem:[%s8420_s0 + $0x50] ss:$8 sps:$4 sm:$0xff]   ;;  %v6445_v40 = vld [vmem:[%s8420_s0 + $0x64] ss:$8 sps:$4 sm:$0xff]  }
   0xe   :  { %v6441_v37 = vld [vmem:[%s8420_s0 + $0x11c] ss:$8 sps:$4 sm:$0xff]   ;;  %v6444_v39 = vld [vmem:[%s8420_s0 + $0x118] ss:$8 sps:$4 sm:$0xff]   ;;  %v6447_v41 = vld [vmem:[%s8420_s0 + $0x12c] ss:$8 sps:$4 sm:$0xff]  }
   0xf   :  { %5239 = vmatpush3.bf16.msra.mxu0 %v6868_v7  ;;  %5333 = vmatpush3.bf16.msra.mxu1 %v6868_v7  ;;  %v6449_v42 = vld [vmem:[%s8420_s0 + $0x60] ss:$8 sps:$4 sm:$0xff]   ;;  %v6451_v44 = vld [vmem:[%s8420_s0 + $0x74] ss:$8 sps:$4 sm:$0xff]   ;;  %v6455_v46 = vld [vmem:[%s8420_s0 + $0x70] ss:$8 sps:$4 sm:$0xff]  }
  0x10   :  { %5240 = vmatprep.subr.bf16.mxu0 %v6875_v8  ;;  %5334 = vmatprep.subr.bf16.mxu1 %v6875_v8  ;;  %v6450_v43 = vld [vmem:[%s8420_s0 + $0x128] ss:$8 sps:$4 sm:$0xff]   ;;  %v6453_v45 = vld [vmem:[%s8420_s0 + $0x13c] ss:$8 sps:$4 sm:$0xff]   ;;  %v6456_v47 = vld [vmem:[%s8420_s0 + $0x138] ss:$8 sps:$4 sm:$0xff]  }
  0x11   :  { %v6457_v48 = vld [vmem:[%s8420_s0 + $0x84] ss:$8 sps:$4 sm:$0xff]   ;;  %v6461_v50 = vld [vmem:[%s8420_s0 + $0x80] ss:$8 sps:$4 sm:$0xff]   ;;  %v6463_v52 = vld [vmem:[%s8420_s0 + $0x94] ss:$8 sps:$4 sm:$0xff]  }
  0x12   :  { %v6459_v49 = vld [vmem:[%s8420_s0 + $0x14c] ss:$8 sps:$4 sm:$0xff]   ;;  %v6462_v51 = vld [vmem:[%s8420_s0 + $0x148] ss:$8 sps:$4 sm:$0xff]   ;;  %v6465_v53 = vld [vmem:[%s8420_s0 + $0x15c] ss:$8 sps:$4 sm:$0xff]  }
  0x13   :  { %5241 = vmatpush3.bf16.msra.mxu0 %v6882_v9  ;;  %5335 = vmatpush3.bf16.msra.mxu1 %v6882_v9  ;;  %v6467_v54 = vld [vmem:[%s8420_s0 + $0x90] ss:$8 sps:$4 sm:$0xff]   ;;  %v6469_v56 = vld [vmem:[%s8420_s0 + $0xa4] ss:$8 sps:$4 sm:$0xff]   ;;  %v6473_v58 = vld [vmem:[%s8420_s0 + $0xa0] ss:$8 sps:$4 sm:$0xff]  }
  0x14   :  { %5242 = vmatprep.subr.bf16.mxu0 %v6889_v10  ;;  %5336 = vmatprep.subr.bf16.mxu1 %v6889_v10  ;;  %v6468_v55 = vld [vmem:[%s8420_s0 + $0x158] ss:$8 sps:$4 sm:$0xff]   ;;  %v6471_v57 = vld [vmem:[%s8420_s0 + $0x16c] ss:$8 sps:$4 sm:$0xff]   ;;  %v6474_v59 = vld [vmem:[%s8420_s0 + $0x168] ss:$8 sps:$4 sm:$0xff]  }
  0x15   :  { %v6475_v60 = vld [vmem:[%s8420_s0 + $0xb4] ss:$8 sps:$4 sm:$0xff]   ;;  %v90_v62 = vld [vmem:[%s8420_s0 + $0xc0] sm:$0xff]  ;;  %v4500_v63 = vld [vmem:[%s8420_s0 + $0x188] sm:$0xff] }
  0x16   :  { %v6477_v61 = vld [vmem:[%s8420_s0 + $0x17c] ss:$8 sps:$4 sm:$0xff]   ;;  %v6494_v11 = vld [vmem:[%s8420_s0 + $0x26c] ss:$8 sps:$4 sm:$0xff]   ;;  %v6493_v12 = vld [vmem:[%s8420_s0 + $0x1a0] ss:$8 sps:$4 sm:$0xff]  }
  0x17   :  { %5243 = vmatpush3.bf16.msra.mxu0 %v6902_v13  ;;  %5337 = vmatpush3.bf16.msra.mxu1 %v6902_v13 }
  0x18   :  { %5244 = vmatprep.subr.bf16.mxu0 %v6909_v14  ;;  %5338 = vmatprep.subr.bf16.mxu1 %v6909_v14 }
  0x1b   :  { %5245 = vmatpush3.bf16.msra.mxu0 %v6916_v15  ;;  %5339 = vmatpush3.bf16.msra.mxu1 %v6916_v15 }
  0x1c   :  { %5246 = vmatprep.subr.bf16.mxu0 %v6923_v16  ;;  %5340 = vmatprep.subr.bf16.mxu1 %v6923_v16 }
  0x1f   :  { %5247 = vmatpush3.bf16.msra.mxu0 %v6930_v17  ;;  %5341 = vmatpush3.bf16.msra.mxu1 %v6930_v17 }
  0x20   :  { %5420 = vmatprep.subr.bf16.mxu0 %v6393_v0  ;;  %5514 = vmatprep.subr.bf16.mxu1 %v6393_v0  ;;  %v6479_v0 = vld [vmem:[%s8420_s0 + $0xb0] ss:$8 sps:$4 sm:$0xff]  }
  0x22   :  { %353 = vmatmul.mubr.bf16.vlgmr.msra.gmra.mrb[0].mxu0 %v6409_v18  ;;  %667 = vmatmul.mubr.bf16.vlgmr.msra.gmra.mrb[0].mxu1 %v6412_v19  ;;  %v6499_v18 = vld [vmem:[%s8420_s0 + $0x1b0] ss:$8 sps:$4 sm:$0xff]  }
  0x23   :  { %5421 = vmatpush3.bf16.msra.mxu0 %v6394_v1  ;;  %5515 = vmatpush3.bf16.msra.mxu1 %v6394_v1  ;;  %v6480_v1 = vld [vmem:[%s8420_s0 + $0x178] ss:$8 sps:$4 sm:$0xff]  }
  0x24   :  { %360 = vmatprep.mubr.bf16.mxu0 %v6415_v20  ;;  %674 = vmatprep.mubr.bf16.mxu1 %v6417_v21  ;;  %v6502_v19 = vld [vmem:[%s8420_s0 + $0x278] ss:$8 sps:$4 sm:$0xff]   ;;  %v6503_v20 = vld [vmem:[%s8420_s0 + $0x1c4] ss:$8 sps:$4 sm:$0xff]  }
  0x25   :  { %5422 = vmatprep.subr.bf16.mxu0 %v6395_v2  ;;  %5516 = vmatprep.subr.bf16.mxu1 %v6395_v2  ;;  %v4459_v2 = vcombine.high %v90_v62, %v90_v62  ;;  %v6506_v21 = vld [vmem:[%s8420_s0 + $0x28c] ss:$8 sps:$4 sm:$0xff]  }
  0x27   :  { %5423 = vmatpush3.bf16.msra.mxu0 %v6842_v3  ;;  %5517 = vmatpush3.bf16.msra.mxu1 %v6842_v3  ;;  %v4526_v3 = vcombine.high %v4500_v63, %v4500_v63 }
  0x28   :  { %5424 = vmatprep.subr.bf16.mxu0 %v6847_v4  ;;  %5518 = vmatprep.subr.bf16.mxu1 %v6847_v4  ;;  %v4458_v4 = vcombine.low %v90_v62, %v90_v62  ;;  %v6554_v62 = vld [vmem:[%s8420_s0 + $0x30c] ss:$8 sps:$4 sm:$0xff]  }
  0x2a   :  { %361 = vmatmul.mubr.bf16.gmra.mrb[4].mxu0 %v6419_v22  ;;  %675 = vmatmul.mubr.bf16.gmra.mrb[4].mxu1 %v6420_v23  ;;  %v6562_v22 = vld [vmem:[%s8421_s3 + $0x48] sm:$0xff]  }
  0x2b   :  { %368 = vmatprep.mubr.bf16.mxu0 %v6421_v24  ;;  %682 = vmatprep.mubr.bf16.mxu1 %v6423_v25  ;;  %v6505_v23 = vld [vmem:[%s8420_s0 + $0x1c0] ss:$8 sps:$4 sm:$0xff]   ;;  %v6509_v25 = vld [vmem:[%s8420_s0 + $0x1d4] ss:$8 sps:$4 sm:$0xff]  }
  0x2c   :  { %5425 = vmatpush3.bf16.msra.mxu0 %v6854_v5  ;;  %5519 = vmatpush3.bf16.msra.mxu1 %v6854_v5  ;;  %v4525_v5 = vcombine.low %v4500_v63, %v4500_v63  ;;  %v6508_v24 = vld [vmem:[%s8420_s0 + $0x288] ss:$8 sps:$4 sm:$0xff]  }
  0x2d   :  { %5426 = vmatprep.subr.bf16.mxu0 %v6861_v6  ;;  %5520 = vmatprep.subr.bf16.mxu1 %v6861_v6  ;;  %v6487_v6 = vld [vmem:[%s8420_s0 + $0x194] ss:$8 sps:$4 sm:$0xff]  }
  0x2e   :  { %v4551_v63 = vld [vmem:[%s8420_s0 + $0x250] sm:$0xff] }
  0x30   :  { %5427 = vmatpush3.bf16.msra.mxu0 %v6868_v7  ;;  %5521 = vmatpush3.bf16.msra.mxu1 %v6868_v7  ;;  %v6490_v7 = vld [vmem:[%s8420_s0 + $0x25c] ss:$8 sps:$4 sm:$0xff]  }
  0x31   :  { %5428 = vmatprep.subr.bf16.mxu0 %v6875_v8  ;;  %5522 = vmatprep.subr.bf16.mxu1 %v6875_v8  ;;  %v6485_v8 = vld [vmem:[%s8420_s0 + $0x190] ss:$8 sps:$4 sm:$0xff]  }
  0x32   :  { %369 = vmatmul.mubr.bf16.gmra.mrb[8].mxu0 %v6425_v26  ;;  %683 = vmatmul.mubr.bf16.gmra.mrb[8].mxu1 %v6426_v27  ;;  %v6512_v26 = vld [vmem:[%s8420_s0 + $0x29c] ss:$8 sps:$4 sm:$0xff]   ;;  %v6511_v27 = vld [vmem:[%s8420_s0 + $0x1d0] ss:$8 sps:$4 sm:$0xff]  }
  0x33   :  { %376 = vmatprep.mubr.bf16.mxu0 %v6427_v28  ;;  %690 = vmatprep.mubr.bf16.mxu1 %v6429_v29  ;;  %v6514_v28 = vld [vmem:[%s8420_s0 + $0x298] ss:$8 sps:$4 sm:$0xff]   ;;  %v6515_v29 = vld [vmem:[%s8420_s0 + $0x1e4] ss:$8 sps:$4 sm:$0xff]  }
  0x34   :  { %5429 = vmatpush3.bf16.msra.mxu0 %v6882_v9  ;;  %5523 = vmatpush3.bf16.msra.mxu1 %v6882_v9  ;;  %v6488_v9 = vld [vmem:[%s8420_s0 + $0x258] ss:$8 sps:$4 sm:$0xff]  }
  0x35   :  { %5430 = vmatprep.subr.bf16.mxu0 %v6889_v10  ;;  %5524 = vmatprep.subr.bf16.mxu1 %v6889_v10  ;;  %v6491_v10 = vld [vmem:[%s8420_s0 + $0x1a4] ss:$8 sps:$4 sm:$0xff]  }
  0x38   :  { %5431 = vmatpush3.bf16.msra.mxu0 %v6902_v13  ;;  %5525 = vmatpush3.bf16.msra.mxu1 %v6902_v13  ;;  %v6496_v13 = vld [vmem:[%s8420_s0 + $0x268] ss:$8 sps:$4 sm:$0xff]  }
  0x39   :  { %5432 = vmatprep.subr.bf16.mxu0 %v6909_v14  ;;  %5526 = vmatprep.subr.bf16.mxu1 %v6909_v14  ;;  %v6778_v14 = vmov 0.0  }
  0x3a   :  { %377 = vmatmul.mubr.bf16.gmra.mrb[12].mxu0 %v6431_v30  ;;  %691 = vmatmul.mubr.bf16.gmra.mrb[12].mxu1 %v6432_v31  ;;  %v6518_v30 = vld [vmem:[%s8420_s0 + $0x2ac] ss:$8 sps:$4 sm:$0xff]  }
  0x3b   :  { %384 = vmatprep.mubr.bf16.mxu0 %v6433_v32  ;;  %698 = vmatprep.mubr.bf16.mxu1 %v6435_v33  ;;  %v6563_v31 = vld [vmem:[%s8421_s3 + $0x50] sm:$0xff]   ;;  %v6517_v32 = vld [vmem:[%s8420_s0 + $0x1e0] ss:$8 sps:$4 sm:$0xff]  }
  0x3c   :  { %5433 = vmatpush3.bf16.msra.mxu0 %v6916_v15  ;;  %5527 = vmatpush3.bf16.msra.mxu1 %v6916_v15  ;;  %v6497_v15 = vld [vmem:[%s8420_s0 + $0x1b4] ss:$8 sps:$4 sm:$0xff]   ;;  %v6520_v33 = vld [vmem:[%s8420_s0 + $0x2a8] ss:$8 sps:$4 sm:$0xff]  }
  0x3d   :  { %5434 = vmatprep.subr.bf16.mxu0 %v6923_v16  ;;  %5528 = vmatprep.subr.bf16.mxu1 %v6923_v16  ;;  %v6500_v16 = vld [vmem:[%s8420_s0 + $0x27c] ss:$8 sps:$4 sm:$0xff]  }
  0x40   :  { %5435 = vmatpush3.bf16.msra.mxu0 %v6930_v17  ;;  %5529 = vmatpush3.bf16.msra.mxu1 %v6930_v17  ;;  %v6561_v17 = vld [vmem:[%s8421_s3 + $0x40] sm:$0xff]  }
  0x41   :  { %5851 = vmatprep.subr.bf16.mxu0 %v6778_v14  ;;  %5871 = vmatprep.subr.bf16.mxu1 %v6778_v14 }
  0x42   :  { %385 = vmatmul.mubr.bf16.gmra.mrb[16].mxu0 %v6437_v34  ;;  %699 = vmatmul.mubr.bf16.gmra.mrb[16].mxu1 %v6438_v35  ;;  %v6521_v34 = vld [vmem:[%s8420_s0 + $0x1f4] ss:$8 sps:$4 sm:$0xff]  }
  0x43   :  { %392 = vmatprep.mubr.bf16.mxu0 %v6439_v36  ;;  %706 = vmatprep.mubr.bf16.mxu1 %v6441_v37  ;;  %v6524_v35 = vld [vmem:[%s8420_s0 + $0x2bc] ss:$8 sps:$4 sm:$0xff]   ;;  %v6523_v37 = vld [vmem:[%s8420_s0 + $0x1f0] ss:$8 sps:$4 sm:$0xff]  }
  0x44   :  { %v6564_v36 = vld [vmem:[%s8421_s3] sm:$0xff]  }
  0x4a   :  { %393 = vmatmul.mubr.bf16.gmra.mrb[20].mxu0 %v6443_v38  ;;  %707 = vmatmul.mubr.bf16.gmra.mrb[20].mxu1 %v6444_v39  ;;  %v6526_v38 = vld [vmem:[%s8420_s0 + $0x2b8] ss:$8 sps:$4 sm:$0xff]   ;;  %v6527_v39 = vld [vmem:[%s8420_s0 + $0x204] ss:$8 sps:$4 sm:$0xff]  }
  0x4b   :  { %400 = vmatprep.mubr.bf16.mxu0 %v6445_v40  ;;  %714 = vmatprep.mubr.bf16.mxu1 %v6447_v41  ;;  %v6530_v40 = vld [vmem:[%s8420_s0 + $0x2cc] ss:$8 sps:$4 sm:$0xff]   ;;  %v6565_v41 = vld [vmem:[%s8421_s3 + $0x58] sm:$0xff]  }
  0x52   :  { %401 = vmatmul.mubr.bf16.gmra.mrb[24].mxu0 %v6449_v42  ;;  %715 = vmatmul.mubr.bf16.gmra.mrb[24].mxu1 %v6450_v43  ;;  %v6566_v42 = vld [vmem:[%s8421_s3 + $0x8] sm:$0xff]  }
  0x53   :  { %408 = vmatprep.mubr.bf16.mxu0 %v6451_v44  ;;  %722 = vmatprep.mubr.bf16.mxu1 %v6453_v45  ;;  %v6529_v43 = vld [vmem:[%s8420_s0 + $0x200] ss:$8 sps:$4 sm:$0xff]   ;;  %v6533_v45 = vld [vmem:[%s8420_s0 + $0x214] ss:$8 sps:$4 sm:$0xff]  }
  0x54   :  { %v6532_v44 = vld [vmem:[%s8420_s0 + $0x2c8] ss:$8 sps:$4 sm:$0xff]  }
  0x5a   :  { %409 = vmatmul.mubr.bf16.gmra.mrb[28].mxu0 %v6455_v46  ;;  %723 = vmatmul.mubr.bf16.gmra.mrb[28].mxu1 %v6456_v47  ;;  %v6536_v46 = vld [vmem:[%s8420_s0 + $0x2dc] ss:$8 sps:$4 sm:$0xff]  }
  0x5b   :  { %416 = vmatprep.mubr.bf16.mxu0 %v6457_v48  ;;  %730 = vmatprep.mubr.bf16.mxu1 %v6459_v49  ;;  %v6567_v47 = vld [vmem:[%s8421_s3 + $0x60] sm:$0xff]   ;;  %v6535_v48 = vld [vmem:[%s8420_s0 + $0x210] ss:$8 sps:$4 sm:$0xff]  }
  0x5c   :  { %v6538_v49 = vld [vmem:[%s8420_s0 + $0x2d8] ss:$8 sps:$4 sm:$0xff]  }
  0x62   :  { %417 = vmatmul.mubr.bf16.gmra.mrb[32].mxu0 %v6461_v50  ;;  %731 = vmatmul.mubr.bf16.gmra.mrb[32].mxu1 %v6462_v51  ;;  %v6539_v50 = vld [vmem:[%s8420_s0 + $0x224] ss:$8 sps:$4 sm:$0xff]  }
  0x63   :  { %424 = vmatprep.mubr.bf16.mxu0 %v6463_v52  ;;  %738 = vmatprep.mubr.bf16.mxu1 %v6465_v53  ;;  %v6542_v51 = vld [vmem:[%s8420_s0 + $0x2ec] ss:$8 sps:$4 sm:$0xff]   ;;  %v6541_v53 = vld [vmem:[%s8420_s0 + $0x220] ss:$8 sps:$4 sm:$0xff]  }
  0x64   :  { %v6568_v52 = vld [vmem:[%s8421_s3 + $0x10] sm:$0xff]  }
  0x6a   :  { %425 = vmatmul.mubr.bf16.gmra.mrb[36].mxu0 %v6467_v54  ;;  %739 = vmatmul.mubr.bf16.gmra.mrb[36].mxu1 %v6468_v55  ;;  %v6544_v54 = vld [vmem:[%s8420_s0 + $0x2e8] ss:$8 sps:$4 sm:$0xff]   ;;  %v6545_v55 = vld [vmem:[%s8420_s0 + $0x234] ss:$8 sps:$4 sm:$0xff]  }
  0x6b   :  { %432 = vmatprep.mubr.bf16.mxu0 %v6469_v56  ;;  %746 = vmatprep.mubr.bf16.mxu1 %v6471_v57  ;;  %v6548_v56 = vld [vmem:[%s8420_s0 + $0x2fc] ss:$8 sps:$4 sm:$0xff]   ;;  %v6569_v57 = vld [vmem:[%s8421_s3 + $0x68] sm:$0xff]  }
  0x72   :  { %433 = vmatmul.mubr.bf16.gmra.mrb[40].mxu0 %v6473_v58  ;;  %747 = vmatmul.mubr.bf16.gmra.mrb[40].mxu1 %v6474_v59  ;;  %v6570_v58 = vld [vmem:[%s8421_s3 + $0x18] sm:$0xff]  }
  0x73   :  { %440 = vmatprep.mubr.bf16.mxu0 %v6475_v60  ;;  %754 = vmatprep.mubr.bf16.mxu1 %v6477_v61  ;;  %v6547_v59 = vld [vmem:[%s8420_s0 + $0x230] ss:$8 sps:$4 sm:$0xff]   ;;  %v6551_v61 = vld [vmem:[%s8420_s0 + $0x244] ss:$8 sps:$4 sm:$0xff]  }
  0x74   :  { %v6550_v60 = vld [vmem:[%s8420_s0 + $0x2f8] ss:$8 sps:$4 sm:$0xff]  }
  0x7a   :  { %441 = vmatmul.mubr.bf16.gmra.mrb[44].mxu0 %v6479_v0  ;;  %755 = vmatmul.mubr.bf16.gmra.mrb[44].mxu1 %v6480_v1  ;;  %v4602_v0 = vld [vmem:[%s8420_s0 + $0x318] sm:$0xff]  ;;  %v6572_v1 = vld [vmem:[%s8421_s3 + $0x20] sm:$0xff]  }
  0x7b   :  { %448 = vmatprep.mubr.bf16.mxu0 %v4459_v2  ;;  %762 = vmatprep.mubr.bf16.mxu1 %v4526_v3  ;;  %v6553_v2 = vld [vmem:[%s8420_s0 + $0x240] ss:$8 sps:$4 sm:$0xff]  }
  0x7c   :  { %v6556_v3 = vld [vmem:[%s8420_s0 + $0x308] ss:$8 sps:$4 sm:$0xff]  }
  0x82   :  { %449 = vmatmul.mubr.bf16.gmra.mrb[48].mxu0 %v4458_v4  ;;  %763 = vmatmul.mubr.bf16.gmra.mrb[48].mxu1 %v4525_v5  ;;  %v6571_v4 = vld [vmem:[%s8421_s3 + $0x70] sm:$0xff]   ;;  %v4577_v5 = vcombine.high %v4551_v63, %v4551_v63 }
  0x83   :  { %1005 = vmatprep.mubr.bf16.mxu0 %v6487_v6  ;;  %1344 = vmatprep.mubr.bf16.mxu1 %v6490_v7  ;;  %v4628_v6 = vcombine.high %v4602_v0, %v4602_v0  ;;  %v6573_v7 = vld [vmem:[%s8421_s3 + $0x28] sm:$0xff]  }
  0x8a   :  { %1006 = vmatmul.mubr.bf16.vlgmr.msra.gmra.mrb[52].mxu0 %v6485_v8  ;;  %1345 = vmatmul.mubr.bf16.vlgmr.msra.gmra.mrb[52].mxu1 %v6488_v9  ;;  %v6575_v8 = vld [vmem:[%s8421_s3 + $0x30] sm:$0xff]   ;;  %v4576_v9 = vcombine.low %v4551_v63, %v4551_v63 }
  0x8b   :  { %1013 = vmatprep.mubr.bf16.mxu0 %v6491_v10  ;;  %1352 = vmatprep.mubr.bf16.mxu1 %v6494_v11  ;;  %v4627_v10 = vcombine.low %v4602_v0, %v4602_v0  ;;  %v6576_v11 = vld [vmem:[%s8421_s3 + $0x38] sm:$0xff]  }
  0x8c   :  { %5852 = vmatpush3.bf16.msra.mxu0 %v6561_v17  ;;  %5872 = vmatpush3.bf16.msra.mxu1 %v6564_v36 }
  0x8d   :  { %5853 = vmatprep.subr.bf16.mxu0 %v6778_v14  ;;  %5873 = vmatprep.subr.bf16.mxu1 %v6778_v14 }
  0x90   :  { %5854 = vmatpush3.bf16.msra.mxu0 %v6562_v22  ;;  %5874 = vmatpush3.bf16.msra.mxu1 %v6566_v42 }
  0x91   :  { %5855 = vmatprep.subr.bf16.mxu0 %v6778_v14  ;;  %5875 = vmatprep.subr.bf16.mxu1 %v6778_v14 }
  0x92   :  { %1014 = vmatmul.mubr.bf16.gmra.mrb[56].mxu0 %v6493_v12  ;;  %1353 = vmatmul.mubr.bf16.gmra.mrb[56].mxu1 %v6496_v13  ;;  %v6574_v12 = vld [vmem:[%s8421_s3 + $0x78] sm:$0xff]  }
  0x93   :  { %1021 = vmatprep.mubr.bf16.mxu0 %v6497_v15  ;;  %1360 = vmatprep.mubr.bf16.mxu1 %v6500_v16  ;;  %v7329_v16 = vld [vmem:[%s8422_s2] ss:$0 sm:$0xff] }
  0x94   :  { %5856 = vmatpush3.bf16.msra.mxu0 %v6563_v31  ;;  %5876 = vmatpush3.bf16.msra.mxu1 %v6568_v52 }
  0x95   :  { %5857 = vmatprep.subr.bf16.mxu0 %v6778_v14  ;;  %5877 = vmatprep.subr.bf16.mxu1 %v6778_v14 }
  0x98   :  { %5858 = vmatpush3.bf16.msra.mxu0 %v6565_v41  ;;  %5878 = vmatpush3.bf16.msra.mxu1 %v6570_v58 }
  0x99   :  { %5859 = vmatprep.subr.bf16.mxu0 %v6778_v14  ;;  %5879 = vmatprep.subr.bf16.mxu1 %v6778_v14 }
  0x9a   :  { %1022 = vmatmul.mubr.bf16.gmra.mrb[60].mxu0 %v6499_v18  ;;  %1361 = vmatmul.mubr.bf16.gmra.mrb[60].mxu1 %v6502_v19 }
  0x9b   :  { %1029 = vmatprep.mubr.bf16.mxu0 %v6503_v20  ;;  %1368 = vmatprep.mubr.bf16.mxu1 %v6506_v21 }
  0x9c   :  { %5860 = vmatpush3.bf16.msra.mxu0 %v6567_v47  ;;  %5880 = vmatpush3.bf16.msra.mxu1 %v6572_v1 }
  0x9d   :  { %5861 = vmatprep.subr.bf16.mxu0 %v6778_v14  ;;  %5881 = vmatprep.subr.bf16.mxu1 %v6778_v14 }
  0xa0   :  { %5862 = vmatpush3.bf16.msra.mxu0 %v6569_v57  ;;  %5882 = vmatpush3.bf16.msra.mxu1 %v6573_v7 }
  0xa1   :  { %5863 = vmatprep.subr.bf16.mxu0 %v6778_v14  ;;  %5883 = vmatprep.subr.bf16.mxu1 %v6778_v14 }
  0xa2   :  { %1030 = vmatmul.mubr.bf16.gmra.mrb[64].mxu0 %v6505_v23  ;;  %1369 = vmatmul.mubr.bf16.gmra.mrb[64].mxu1 %v6508_v24 }
  0xa3   :  { %1037 = vmatprep.mubr.bf16.mxu0 %v6509_v25  ;;  %1376 = vmatprep.mubr.bf16.mxu1 %v6512_v26 }
  0xa4   :  { %5864 = vmatpush3.bf16.msra.mxu0 %v6571_v4  ;;  %5884 = vmatpush3.bf16.msra.mxu1 %v6575_v8 }
  0xa5   :  { %5865 = vmatprep.subr.bf16.mxu0 %v6778_v14  ;;  %5885 = vmatprep.subr.bf16.mxu1 %v6778_v14 }
  0xa8   :  { %5886 = vmatpush3.bf16.msra.mxu1 %v6576_v11  ;;  %5866 = vmatpush3.bf16.msra.mxu0 %v6574_v12 }
  0xa9   :  { %5911 = vmatprep.subr.bf16.mxu1 %v6778_v14  ;;  %5891 = vmatprep.subr.bf16.mxu0 %v6778_v14 }
  0xaa   :  { %1038 = vmatmul.mubr.bf16.gmra.mrb[68].mxu0 %v6511_v27  ;;  %1377 = vmatmul.mubr.bf16.gmra.mrb[68].mxu1 %v6514_v28 }
  0xab   :  { %1045 = vmatprep.mubr.bf16.mxu0 %v6515_v29  ;;  %1384 = vmatprep.mubr.bf16.mxu1 %v6518_v30 }
  0xb2   :  { %1046 = vmatmul.mubr.bf16.gmra.mrb[72].mxu0 %v6517_v32  ;;  %1385 = vmatmul.mubr.bf16.gmra.mrb[72].mxu1 %v6520_v33 }
  0xb3   :  { %1053 = vmatprep.mubr.bf16.mxu0 %v6521_v34  ;;  %1392 = vmatprep.mubr.bf16.mxu1 %v6524_v35 }
  0xba   :  { %1054 = vmatmul.mubr.bf16.gmra.mrb[76].mxu0 %v6523_v37  ;;  %1393 = vmatmul.mubr.bf16.gmra.mrb[76].mxu1 %v6526_v38 }
  0xbb   :  { %1061 = vmatprep.mubr.bf16.mxu0 %v6527_v39  ;;  %1400 = vmatprep.mubr.bf16.mxu1 %v6530_v40 }
  0xc2   :  { %1062 = vmatmul.mubr.bf16.gmra.mrb[80].mxu0 %v6529_v43  ;;  %1401 = vmatmul.mubr.bf16.gmra.mrb[80].mxu1 %v6532_v44 }
  0xc3   :  { %1069 = vmatprep.mubr.bf16.mxu0 %v6533_v45  ;;  %1408 = vmatprep.mubr.bf16.mxu1 %v6536_v46 }
  0xca   :  { %1070 = vmatmul.mubr.bf16.gmra.mrb[84].mxu0 %v6535_v48  ;;  %1409 = vmatmul.mubr.bf16.gmra.mrb[84].mxu1 %v6538_v49 }
  0xcb   :  { %1077 = vmatprep.mubr.bf16.mxu0 %v6539_v50  ;;  %1416 = vmatprep.mubr.bf16.mxu1 %v6542_v51 }
  0xd2   :  { %1078 = vmatmul.mubr.bf16.gmra.mrb[88].mxu0 %v6541_v53  ;;  %1417 = vmatmul.mubr.bf16.gmra.mrb[88].mxu1 %v6544_v54 }
  0xd3   :  { %1085 = vmatprep.mubr.bf16.mxu0 %v6545_v55  ;;  %1424 = vmatprep.mubr.bf16.mxu1 %v6548_v56 }
  0xda   :  { %1086 = vmatmul.mubr.bf16.gmra.mrb[92].mxu0 %v6547_v59  ;;  %1425 = vmatmul.mubr.bf16.gmra.mrb[92].mxu1 %v6550_v60 }
  0xdb   :  { %1093 = vmatprep.mubr.bf16.mxu0 %v6551_v61  ;;  %1432 = vmatprep.mubr.bf16.mxu1 %v6554_v62 }
  0xe2   :  { %1094 = vmatmul.mubr.bf16.gmra.mrb[96].mxu0 %v6553_v2  ;;  %1433 = vmatmul.mubr.bf16.gmra.mrb[96].mxu1 %v6556_v3 }
  0xe3   :  { %1101 = vmatprep.mubr.bf16.mxu0 %v4577_v5  ;;  %1440 = vmatprep.mubr.bf16.mxu1 %v4628_v6 }
  0xea   :  { %1102 = vmatmul.mubr.bf16.gmra.mrb[100].mxu0 %v4576_v9  ;;  %1441 = vmatmul.mubr.bf16.gmra.mrb[100].mxu1 %v4627_v10 }
  0xeb   :  { %5887 = vmatprep.mubr.msk.bf16.mxu1 %vm6779_vm0, %v6778_v14  ;;  %5867 = vmatprep.mubr.msk.bf16.mxu0 %vm6779_vm0, %v6778_v14 }
  0xf5   :  { %v5248_v13 = vpop.f32.mrb[0].mxu0  ;;  %v5342_v15 = vpop.f32.mrb[0].mxu1 }
  0xf6   :  { %v5249_v17 = vpop.f32.mrb[1].mxu0  ;;  %v5343_v18 = vpop.f32.mrb[1].mxu1 }
  0xf7   :  { %v5250_v19 = vadd.f32 %v5249_v17, %v5248_v13  ;;  %v5344_v20 = vadd.f32 %v5343_v18, %v5342_v15  ;;  %v5251_v21 = vpop.f32.mrb[2].mxu0  ;;  %v5345_v22 = vpop.f32.mrb[2].mxu1 }
  0xf8   :  { %v5252_v23 = vpop.f32.mrb[3].mxu0  ;;  %v5346_v24 = vpop.f32.mrb[3].mxu1 }
  0xf9   :  { %v355_v25 = vadd.f32 %v5250_v19, %v7329_v16  ;;  %v669_v26 = vadd.f32 %v5344_v20, %v7329_v16  ;;  %v5253_v27 = vadd.f32 %v5252_v23, %v5251_v21  ;;  %v5347_v28 = vadd.f32 %v5346_v24, %v5345_v22 }
  0xfb   :  { %v456_v29 = vmax.f32 %v355_v25, 0.0  ;;  %v770_v30 = vmax.f32 %v669_v26, 0.0  ;;  %v358_v31 = vadd.f32 %v5253_v27, %v7329_v16  ;;  %v672_v32 = vadd.f32 %v5347_v28, %v7329_v16 }
  0xfd   :  { %v7335_v33 = vmax.f32 %v456_v29, %v770_v30  ;;  %v457_v34 = vmax.f32 %v358_v31, 0.0  ;;  %v771_v35 = vmax.f32 %v672_v32, 0.0  ;;  %v5254_v36 = vpop.f32.mrb[4].mxu0  ;;  %v5348_v37 = vpop.f32.mrb[4].mxu1 }
  0xfe   :  { %v5255_v38 = vpop.f32.mrb[5].mxu0  ;;  %v5349_v39 = vpop.f32.mrb[5].mxu1 }
  0xff   :  { %v7337_v40 = vmax.f32 %v457_v34, %v771_v35  ;;  %v5256_v41 = vadd.f32 %v5255_v38, %v5254_v36  ;;  %v5350_v42 = vadd.f32 %v5349_v39, %v5348_v37  ;;  %v5257_v43 = vpop.f32.mrb[6].mxu0  ;;  %v5351_v44 = vpop.f32.mrb[6].mxu1 }
 0x100   :  { %v5258_v45 = vpop.f32.mrb[7].mxu0  ;;  %v5352_v46 = vpop.f32.mrb[7].mxu1 }
 0x101   :  { %v363_v47 = vadd.f32 %v5256_v41, %v7329_v16  ;;  %v677_v48 = vadd.f32 %v5350_v42, %v7329_v16  ;;  %v5259_v49 = vadd.f32 %v5258_v45, %v5257_v43  ;;  %v5353_v50 = vadd.f32 %v5352_v46, %v5351_v44 }
 0x103   :  { %v458_v51 = vmax.f32 %v363_v47, 0.0  ;;  %v772_v52 = vmax.f32 %v677_v48, 0.0  ;;  %v366_v53 = vadd.f32 %v5259_v49, %v7329_v16  ;;  %v680_v54 = vadd.f32 %v5353_v50, %v7329_v16 }
 0x105   :  { %v7343_v55 = vmax.f32 %v458_v51, %v772_v52  ;;  %v459_v56 = vmax.f32 %v366_v53, 0.0  ;;  %v773_v57 = vmax.f32 %v680_v54, 0.0  ;;  %v5260_v58 = vpop.f32.mrb[8].mxu0  ;;  %v5354_v59 = vpop.f32.mrb[8].mxu1 }
 0x106   :  { %v5261_v60 = vpop.f32.mrb[9].mxu0  ;;  %v5355_v61 = vpop.f32.mrb[9].mxu1 }
 0x107   :  { %v7345_v62 = vmax.f32 %v459_v56, %v773_v57  ;;  %v5262_v63 = vadd.f32 %v5261_v60, %v5260_v58  ;;  %v5356_v0 = vadd.f32 %v5355_v61, %v5354_v59  ;;  %v5263_v1 = vpop.f32.mrb[10].mxu0  ;;  %v5357_v2 = vpop.f32.mrb[10].mxu1 }
 0x108   :  { %v5264_v3 = vpop.f32.mrb[11].mxu0  ;;  %v5358_v4 = vpop.f32.mrb[11].mxu1 }
 0x109   :  { %v371_v5 = vadd.f32 %v5262_v63, %v7329_v16  ;;  %v685_v6 = vadd.f32 %v5356_v0, %v7329_v16  ;;  %v5265_v7 = vadd.f32 %v5264_v3, %v5263_v1  ;;  %v5359_v8 = vadd.f32 %v5358_v4, %v5357_v2 }
 0x10b   :  { %v460_v9 = vmax.f32 %v371_v5, 0.0  ;;  %v774_v10 = vmax.f32 %v685_v6, 0.0  ;;  %v374_v11 = vadd.f32 %v5265_v7, %v7329_v16  ;;  %v688_v12 = vadd.f32 %v5359_v8, %v7329_v16 }
 0x10d   :  { %v7351_v13 = vmax.f32 %v460_v9, %v774_v10  ;;  %v461_v15 = vmax.f32 %v374_v11, 0.0  ;;  %v775_v17 = vmax.f32 %v688_v12, 0.0  ;;  %v5266_v18 = vpop.f32.mrb[12].mxu0  ;;  %v5360_v19 = vpop.f32.mrb[12].mxu1 }
 0x10e   :  { %v5267_v20 = vpop.f32.mrb[13].mxu0  ;;  %v5361_v21 = vpop.f32.mrb[13].mxu1 }
 0x10f   :  { %v7353_v22 = vmax.f32 %v461_v15, %v775_v17  ;;  %v5268_v23 = vadd.f32 %v5267_v20, %v5266_v18  ;;  %v5362_v24 = vadd.f32 %v5361_v21, %v5360_v19  ;;  %v5269_v25 = vpop.f32.mrb[14].mxu0  ;;  %v5363_v26 = vpop.f32.mrb[14].mxu1 }
 0x110   :  { %v5270_v27 = vpop.f32.mrb[15].mxu0  ;;  %v5364_v28 = vpop.f32.mrb[15].mxu1 }
 0x111   :  { %v379_v29 = vadd.f32 %v5268_v23, %v7329_v16  ;;  %v693_v30 = vadd.f32 %v5362_v24, %v7329_v16  ;;  %v5271_v31 = vadd.f32 %v5270_v27, %v5269_v25  ;;  %v5365_v32 = vadd.f32 %v5364_v28, %v5363_v26 }
 0x113   :  { %v462_v34 = vmax.f32 %v379_v29, 0.0  ;;  %v776_v35 = vmax.f32 %v693_v30, 0.0  ;;  %v382_v36 = vadd.f32 %v5271_v31, %v7329_v16  ;;  %v696_v37 = vadd.f32 %v5365_v32, %v7329_v16 }
 0x115   :  { %v7359_v38 = vmax.f32 %v462_v34, %v776_v35  ;;  %v463_v39 = vmax.f32 %v382_v36, 0.0  ;;  %v777_v41 = vmax.f32 %v696_v37, 0.0  ;;  %v5272_v42 = vpop.f32.mrb[16].mxu0  ;;  %v5366_v43 = vpop.f32.mrb[16].mxu1 }
 0x116   :  { %v5273_v44 = vpop.f32.mrb[17].mxu0  ;;  %v5367_v45 = vpop.f32.mrb[17].mxu1 }
 0x117   :  { %v7361_v46 = vmax.f32 %v463_v39, %v777_v41  ;;  %v5274_v47 = vadd.f32 %v5273_v44, %v5272_v42  ;;  %v5368_v48 = vadd.f32 %v5367_v45, %v5366_v43  ;;  %v5275_v49 = vpop.f32.mrb[18].mxu0  ;;  %v5369_v50 = vpop.f32.mrb[18].mxu1 }
 0x118   :  { %v5276_v51 = vpop.f32.mrb[19].mxu0  ;;  %v5370_v52 = vpop.f32.mrb[19].mxu1 }
 0x119   :  { %v387_v53 = vadd.f32 %v5274_v47, %v7329_v16  ;;  %v701_v54 = vadd.f32 %v5368_v48, %v7329_v16  ;;  %v5277_v56 = vadd.f32 %v5276_v51, %v5275_v49  ;;  %v5371_v57 = vadd.f32 %v5370_v52, %v5369_v50 }
 0x11b   :  { %v464_v58 = vmax.f32 %v387_v53, 0.0  ;;  %v778_v59 = vmax.f32 %v701_v54, 0.0  ;;  %v390_v60 = vadd.f32 %v5277_v56, %v7329_v16  ;;  %v704_v61 = vadd.f32 %v5371_v57, %v7329_v16 }
 0x11d   :  { %v7367_v63 = vmax.f32 %v464_v58, %v778_v59  ;;  %v465_v0 = vmax.f32 %v390_v60, 0.0  ;;  %v779_v1 = vmax.f32 %v704_v61, 0.0  ;;  %v5278_v2 = vpop.f32.mrb[20].mxu0  ;;  %v5372_v3 = vpop.f32.mrb[20].mxu1 }
 0x11e   :  { %v5279_v4 = vpop.f32.mrb[21].mxu0  ;;  %v5373_v5 = vpop.f32.mrb[21].mxu1 }
 0x11f   :  { %v7369_v6 = vmax.f32 %v465_v0, %v779_v1  ;;  %v5280_v7 = vadd.f32 %v5279_v4, %v5278_v2  ;;  %v5374_v8 = vadd.f32 %v5373_v5, %v5372_v3  ;;  %v5281_v9 = vpop.f32.mrb[22].mxu0  ;;  %v5375_v10 = vpop.f32.mrb[22].mxu1 }
 0x120   :  { %v5282_v11 = vpop.f32.mrb[23].mxu0  ;;  %v5376_v12 = vpop.f32.mrb[23].mxu1 }
 0x121   :  { %v395_v15 = vadd.f32 %v5280_v7, %v7329_v16  ;;  %v709_v17 = vadd.f32 %v5374_v8, %v7329_v16  ;;  %v5283_v18 = vadd.f32 %v5282_v11, %v5281_v9  ;;  %v5377_v19 = vadd.f32 %v5376_v12, %v5375_v10 }
 0x123   :  { %v466_v20 = vmax.f32 %v395_v15, 0.0  ;;  %v780_v21 = vmax.f32 %v709_v17, 0.0  ;;  %v398_v23 = vadd.f32 %v5283_v18, %v7329_v16  ;;  %v712_v24 = vadd.f32 %v5377_v19, %v7329_v16 }
 0x125   :  { %v7375_v25 = vmax.f32 %v466_v20, %v780_v21  ;;  %v467_v26 = vmax.f32 %v398_v23, 0.0  ;;  %v781_v27 = vmax.f32 %v712_v24, 0.0  ;;  %v5284_v28 = vpop.f32.mrb[24].mxu0  ;;  %v5378_v29 = vpop.f32.mrb[24].mxu1 }
 0x126   :  { %v5285_v30 = vpop.f32.mrb[25].mxu0  ;;  %v5379_v31 = vpop.f32.mrb[25].mxu1 }
 0x127   :  { %v7377_v32 = vmax.f32 %v467_v26, %v781_v27  ;;  %v5286_v34 = vadd.f32 %v5285_v30, %v5284_v28  ;;  %v5380_v35 = vadd.f32 %v5379_v31, %v5378_v29  ;;  %v5287_v36 = vpop.f32.mrb[26].mxu0  ;;  %v5381_v37 = vpop.f32.mrb[26].mxu1 }
 0x128   :  { %v5288_v39 = vpop.f32.mrb[27].mxu0  ;;  %v5382_v41 = vpop.f32.mrb[27].mxu1 }
 0x129   :  { %v403_v42 = vadd.f32 %v5286_v34, %v7329_v16  ;;  %v717_v43 = vadd.f32 %v5380_v35, %v7329_v16  ;;  %v5289_v44 = vadd.f32 %v5288_v39, %v5287_v36  ;;  %v5383_v45 = vadd.f32 %v5382_v41, %v5381_v37 }
 0x12b   :  { %v468_v47 = vmax.f32 %v403_v42, 0.0  ;;  %v782_v48 = vmax.f32 %v717_v43, 0.0  ;;  %v406_v49 = vadd.f32 %v5289_v44, %v7329_v16  ;;  %v720_v50 = vadd.f32 %v5383_v45, %v7329_v16 }
 0x12d   :  { %v7383_v51 = vmax.f32 %v468_v47, %v782_v48  ;;  %v469_v52 = vmax.f32 %v406_v49, 0.0  ;;  %v783_v53 = vmax.f32 %v720_v50, 0.0  ;;  %v5290_v54 = vpop.f32.mrb[28].mxu0  ;;  %v5384_v56 = vpop.f32.mrb[28].mxu1 }
 0x12e   :  { %v5291_v57 = vpop.f32.mrb[29].mxu0  ;;  %v5385_v58 = vpop.f32.mrb[29].mxu1 }
 0x12f   :  { %v7385_v59 = vmax.f32 %v469_v52, %v783_v53  ;;  %v5292_v60 = vadd.f32 %v5291_v57, %v5290_v54  ;;  %v5386_v61 = vadd.f32 %v5385_v58, %v5384_v56  ;;  %v5293_v0 = vpop.f32.mrb[30].mxu0  ;;  %v5387_v1 = vpop.f32.mrb[30].mxu1 }
 0x130   :  { %v5294_v2 = vpop.f32.mrb[31].mxu0  ;;  %v5388_v3 = vpop.f32.mrb[31].mxu1 }
 0x131   :  { %v411_v4 = vadd.f32 %v5292_v60, %v7329_v16  ;;  %v725_v5 = vadd.f32 %v5386_v61, %v7329_v16  ;;  %v5295_v7 = vadd.f32 %v5294_v2, %v5293_v0  ;;  %v5389_v8 = vadd.f32 %v5388_v3, %v5387_v1 }
 0x133   :  { %v470_v9 = vmax.f32 %v411_v4, 0.0  ;;  %v784_v10 = vmax.f32 %v725_v5, 0.0  ;;  %v414_v11 = vadd.f32 %v5295_v7, %v7329_v16  ;;  %v728_v12 = vadd.f32 %v5389_v8, %v7329_v16 }
 0x135   :  { %v7391_v15 = vmax.f32 %v470_v9, %v784_v10  ;;  %v471_v17 = vmax.f32 %v414_v11, 0.0  ;;  %v785_v18 = vmax.f32 %v728_v12, 0.0  ;;  %v5296_v19 = vpop.f32.mrb[32].mxu0  ;;  %v5390_v20 = vpop.f32.mrb[32].mxu1 }
 0x136   :  { %v5297_v21 = vpop.f32.mrb[33].mxu0  ;;  %v5391_v23 = vpop.f32.mrb[33].mxu1 }
 0x137   :  { %v7393_v24 = vmax.f32 %v471_v17, %v785_v18  ;;  %v5298_v26 = vadd.f32 %v5297_v21, %v5296_v19  ;;  %v5392_v27 = vadd.f32 %v5391_v23, %v5390_v20  ;;  %v5299_v28 = vpop.f32.mrb[34].mxu0  ;;  %v5393_v29 = vpop.f32.mrb[34].mxu1 }
 0x138   :  { %v5300_v30 = vpop.f32.mrb[35].mxu0  ;;  %v5394_v31 = vpop.f32.mrb[35].mxu1 }
 0x139   :  { %v419_v34 = vadd.f32 %v5298_v26, %v7329_v16  ;;  %v733_v35 = vadd.f32 %v5392_v27, %v7329_v16  ;;  %v5301_v36 = vadd.f32 %v5300_v30, %v5299_v28  ;;  %v5395_v37 = vadd.f32 %v5394_v31, %v5393_v29 }
 0x13b   :  { %v472_v39 = vmax.f32 %v419_v34, 0.0  ;;  %v786_v41 = vmax.f32 %v733_v35, 0.0  ;;  %v422_v42 = vadd.f32 %v5301_v36, %v7329_v16  ;;  %v736_v43 = vadd.f32 %v5395_v37, %v7329_v16 }
 0x13d   :  { %v7399_v44 = vmax.f32 %v472_v39, %v786_v41  ;;  %v473_v45 = vmax.f32 %v422_v42, 0.0  ;;  %v787_v47 = vmax.f32 %v736_v43, 0.0  ;;  %v5302_v48 = vpop.f32.mrb[36].mxu0  ;;  %v5396_v49 = vpop.f32.mrb[36].mxu1 }
 0x13e   :  { %v5303_v50 = vpop.f32.mrb[37].mxu0  ;;  %v5397_v52 = vpop.f32.mrb[37].mxu1 }
 0x13f   :  { %v7401_v53 = vmax.f32 %v473_v45, %v787_v47  ;;  %v5304_v54 = vadd.f32 %v5303_v50, %v5302_v48  ;;  %v5398_v56 = vadd.f32 %v5397_v52, %v5396_v49  ;;  %v5305_v57 = vpop.f32.mrb[38].mxu0  ;;  %v5399_v58 = vpop.f32.mrb[38].mxu1 }
 0x140   :  { %v5306_v60 = vpop.f32.mrb[39].mxu0  ;;  %v5400_v61 = vpop.f32.mrb[39].mxu1 }
 0x141   :  { %v427_v0 = vadd.f32 %v5304_v54, %v7329_v16  ;;  %v741_v1 = vadd.f32 %v5398_v56, %v7329_v16  ;;  %v5307_v2 = vadd.f32 %v5306_v60, %v5305_v57  ;;  %v5401_v3 = vadd.f32 %v5400_v61, %v5399_v58 }
 0x143   :  { %v474_v4 = vmax.f32 %v427_v0, 0.0  ;;  %v788_v5 = vmax.f32 %v741_v1, 0.0  ;;  %v430_v7 = vadd.f32 %v5307_v2, %v7329_v16  ;;  %v744_v8 = vadd.f32 %v5401_v3, %v7329_v16 }
 0x145   :  { %v7407_v9 = vmax.f32 %v474_v4, %v788_v5  ;;  %v475_v10 = vmax.f32 %v430_v7, 0.0  ;;  %v789_v11 = vmax.f32 %v744_v8, 0.0  ;;  %v5308_v12 = vpop.f32.mrb[40].mxu0  ;;  %v5402_v17 = vpop.f32.mrb[40].mxu1 }
 0x146   :  { %v5309_v18 = vpop.f32.mrb[41].mxu0  ;;  %v5403_v19 = vpop.f32.mrb[41].mxu1 }
 0x147   :  { %v7409_v20 = vmax.f32 %v475_v10, %v789_v11  ;;  %v5310_v21 = vadd.f32 %v5309_v18, %v5308_v12  ;;  %v5404_v23 = vadd.f32 %v5403_v19, %v5402_v17  ;;  %v5311_v26 = vpop.f32.mrb[42].mxu0  ;;  %v5405_v27 = vpop.f32.mrb[42].mxu1 }
 0x148   :  { %v5312_v28 = vpop.f32.mrb[43].mxu0  ;;  %v5406_v29 = vpop.f32.mrb[43].mxu1 }
 0x149   :  { %v435_v30 = vadd.f32 %v5310_v21, %v7329_v16  ;;  %v749_v31 = vadd.f32 %v5404_v23, %v7329_v16  ;;  %v5313_v34 = vadd.f32 %v5312_v28, %v5311_v26  ;;  %v5407_v35 = vadd.f32 %v5406_v29, %v5405_v27 }
 0x14b   :  { %v476_v36 = vmax.f32 %v435_v30, 0.0  ;;  %v790_v37 = vmax.f32 %v749_v31, 0.0  ;;  %v438_v39 = vadd.f32 %v5313_v34, %v7329_v16  ;;  %v752_v41 = vadd.f32 %v5407_v35, %v7329_v16 }
 0x14d   :  { %v7415_v42 = vmax.f32 %v476_v36, %v790_v37  ;;  %v477_v43 = vmax.f32 %v438_v39, 0.0  ;;  %v791_v45 = vmax.f32 %v752_v41, 0.0  ;;  %v5314_v47 = vpop.f32.mrb[44].mxu0  ;;  %v5408_v48 = vpop.f32.mrb[44].mxu1 }
 0x14e   :  { %v5315_v49 = vpop.f32.mrb[45].mxu0  ;;  %v5409_v50 = vpop.f32.mrb[45].mxu1 }
 0x14f   :  { %v7417_v52 = vmax.f32 %v477_v43, %v791_v45  ;;  %v5316_v54 = vadd.f32 %v5315_v49, %v5314_v47  ;;  %v5410_v56 = vadd.f32 %v5409_v50, %v5408_v48  ;;  %v5317_v57 = vpop.f32.mrb[46].mxu0  ;;  %v5411_v58 = vpop.f32.mrb[46].mxu1 }
 0x150   :  { %v5318_v60 = vpop.f32.mrb[47].mxu0  ;;  %v5412_v61 = vpop.f32.mrb[47].mxu1 }
 0x151   :  { %v443_v0 = vadd.f32 %v5316_v54, %v7329_v16  ;;  %v757_v1 = vadd.f32 %v5410_v56, %v7329_v16  ;;  %v5319_v2 = vadd.f32 %v5318_v60, %v5317_v57  ;;  %v5413_v3 = vadd.f32 %v5412_v61, %v5411_v58 }
 0x153   :  { %v478_v4 = vmax.f32 %v443_v0, 0.0  ;;  %v792_v5 = vmax.f32 %v757_v1, 0.0  ;;  %v446_v7 = vadd.f32 %v5319_v2, %v7329_v16  ;;  %v760_v8 = vadd.f32 %v5413_v3, %v7329_v16 }
 0x155   :  { %v7423_v10 = vmax.f32 %v478_v4, %v792_v5  ;;  %v479_v11 = vmax.f32 %v446_v7, 0.0  ;;  %v793_v12 = vmax.f32 %v760_v8, 0.0  ;;  %v5320_v17 = vpop.f32.mrb[48].mxu0  ;;  %v5414_v18 = vpop.f32.mrb[48].mxu1 }
 0x156   :  { %v5321_v19 = vpop.f32.mrb[49].mxu0  ;;  %v5415_v21 = vpop.f32.mrb[49].mxu1 }
 0x157   :  { %v7425_v23 = vmax.f32 %v479_v11, %v793_v12  ;;  %v5322_v26 = vadd.f32 %v5321_v19, %v5320_v17  ;;  %v5416_v27 = vadd.f32 %v5415_v21, %v5414_v18  ;;  %v5323_v28 = vpop.f32.mrb[50].mxu0  ;;  %v5417_v29 = vpop.f32.mrb[50].mxu1 }
 0x158   :  { %v5324_v30 = vpop.f32.mrb[51].mxu0  ;;  %v5418_v31 = vpop.f32.mrb[51].mxu1 }
 0x159   :  { %v451_v34 = vadd.f32 %v5322_v26, %v7329_v16  ;;  %v765_v35 = vadd.f32 %v5416_v27, %v7329_v16 }
 0x15b   :  { %v480_v36 = vmax.f32 %v451_v34, 0.0  ;;  %v794_v37 = vmax.f32 %v765_v35, 0.0 }
 0x15d   :  { %v7429_v39 = vmax.f32 %v480_v36, %v794_v37  ;;  %v5436_v41 = vpop.f32.mrb[52].mxu0  ;;  %v5530_v43 = vpop.f32.mrb[52].mxu1 }
 0x15e   :  { %v5437_v45 = vpop.f32.mrb[53].mxu0  ;;  %v5531_v47 = vpop.f32.mrb[53].mxu1 }
 0x15f   :  { %v5438_v48 = vadd.f32 %v5437_v45, %v5436_v41  ;;  %v5532_v49 = vadd.f32 %v5531_v47, %v5530_v43  ;;  %v5439_v50 = vpop.f32.mrb[54].mxu0  ;;  %v5533_v54 = vpop.f32.mrb[54].mxu1  ;;  %v6577_v41 = vld [vmem:[%s8421_s3 + $0xc0] sm:$0xff]  }
 0x160   :  { %v5440_v56 = vpop.f32.mrb[55].mxu0  ;;  %v5534_v57 = vpop.f32.mrb[55].mxu1 }
 0x161   :  { %v1008_v58 = vadd.f32 %v5438_v48, %v7329_v16  ;;  %v1347_v60 = vadd.f32 %v5532_v49, %v7329_v16  ;;  %v5441_v61 = vadd.f32 %v5440_v56, %v5439_v50  ;;  %v5535_v0 = vadd.f32 %v5534_v57, %v5533_v54  ;;  %v6578_v49 = vld [vmem:[%s8421_s3 + $0x80] sm:$0xff]  }
 0x163   :  { %v1109_v1 = vmax.f32 %v1008_v58, 0.0  ;;  %v1448_v2 = vmax.f32 %v1347_v60, 0.0  ;;  %v1011_v3 = vadd.f32 %v5441_v61, %v7329_v16  ;;  %v1350_v4 = vadd.f32 %v5535_v0, %v7329_v16 }
 0x165   :  { %v1134_v5 = vmax.f32 %v7335_v33, %v1109_v1  ;;  %v1110_v7 = vmax.f32 %v1011_v3, 0.0  ;;  %v5442_v8 = vpop.f32.mrb[56].mxu0  ;;  %v5536_v11 = vpop.f32.mrb[56].mxu1  ;;  %v1449_v12 = vmax.f32 %v1350_v4, 0.0  ;;  %v6579_v1 = vld [vmem:[%s8421_s3 + $0xc8] sm:$0xff]  }
 0x166   :  { %v5443_v17 = vpop.f32.mrb[57].mxu0  ;;  %v5537_v18 = vpop.f32.mrb[57].mxu1 }
 0x167   :  { %v1473_v19 = vmax.f32 %v1134_v5, %v1448_v2  ;;  %v1135_v21 = vmax.f32 %v7337_v40, %v1110_v7  ;;  %v5444_v26 = vadd.f32 %v5443_v17, %v5442_v8  ;;  %v5445_v27 = vpop.f32.mrb[58].mxu0  ;;  %v5538_v28 = vadd.f32 %v5537_v18, %v5536_v11  ;;  %v5539_v29 = vpop.f32.mrb[58].mxu1 }
 0x168   :  { %v5446_v30 = vpop.f32.mrb[59].mxu0  ;;  %v5540_v31 = vpop.f32.mrb[59].mxu1 }
 0x169   :  { %v1474_v34 = vmax.f32 %v1135_v21, %v1449_v12  ;;  %v1016_v35 = vadd.f32 %v5444_v26, %v7329_v16  ;;  %v5447_v36 = vadd.f32 %v5446_v30, %v5445_v27  ;;  %v1355_v33 = vadd.f32 %v5538_v28, %v7329_v16  ;;  %v6580_v12 = vld [vmem:[%s8421_s3 + $0x88] sm:$0xff]   ;;  %v6581_v26 = vld [vmem:[%s8421_s3 + $0xd0] sm:$0xff]  }
 0x16a   :  { %v5541_v37 = vadd.f32 %v5540_v31, %v5539_v29 }
 0x16b   :  { %v1498_v43 = vpack.c.bf16 %v1474_v34, %v1473_v19  ;;  %v1111_v45 = vmax.f32 %v1016_v35, 0.0  ;;  %v1019_v40 = vadd.f32 %v5447_v36, %v7329_v16  ;;  %v1450_v47 = vmax.f32 %v1355_v33, 0.0  ;;  %v6582_v34 = vld [vmem:[%s8421_s3 + $0x90] sm:$0xff]  }
 0x16c   :  { %v1358_v48 = vadd.f32 %v5541_v37, %v7329_v16 }
 0x16d   :  { %v1545_v50 = vrot.slane %v1498_v43, 4  ;;  %v1136_v54 = vmax.f32 %v7343_v55, %v1111_v45  ;;  %v1112_v56 = vmax.f32 %v1019_v40, 0.0  ;;  %v5448_v57 = vpop.f32.mrb[60].mxu0  ;;  %5888 = vmatmul.mubr.bf16.vlgmr.msra.gmra.mrb[104].mxu1 %v1498_v43  ;;  %v5542_v58 = vpop.f32.mrb[60].mxu1  ;;  %v6583_v40 = vld [vmem:[%s8421_s3 + $0xd8] sm:$0xff]  }
 0x16e   :  { %v1451_v60 = vmax.f32 %v1358_v48, 0.0  ;;  %5912 = vmatpush3.bf16.msra.mxu1 %v6577_v41  ;;  %v5449_v61 = vpop.f32.mrb[61].mxu0  ;;  %v5543_v0 = vpop.f32.mrb[61].mxu1  ;;  %5927 = vmatprep.mubr.msk.bf16.mxu1 %vm6779_vm0, %v6778_v14 }
 0x16f   :  { %v1137_v2 = vmax.f32 %v7345_v62, %v1112_v56  ;;  %v1475_v3 = vmax.f32 %v1136_v54, %v1450_v47  ;;  %v5450_v4 = vadd.f32 %v5449_v61, %v5448_v57  ;;  %v5451_v55 = vpop.f32.mrb[62].mxu0  ;;  %5868 = vmatmul.mubr.bf16.vlgmr.msra.gmra.mrb[104].mxu0 %v1545_v50  ;;  %v5544_v5 = vadd.f32 %v5543_v0, %v5542_v58  ;;  %v5545_v7 = vpop.f32.mrb[62].mxu1  ;;  %v6584_v58 = vld [vmem:[%s8421_s3 + $0x98] sm:$0xff]  }
 0x170   :  { %5892 = vmatpush3.bf16.msra.mxu0 %v6578_v49  ;;  %v5452_v8 = vpop.f32.mrb[63].mxu0  ;;  %5913 = vmatprep.subr.bf16.mxu1 %v6778_v14  ;;  %v5546_v11 = vpop.f32.mrb[63].mxu1 }
 0x171   :  { %v1476_v17 = vmax.f32 %v1137_v2, %v1451_v60  ;;  %v1024_v18 = vadd.f32 %v5450_v4, %v7329_v16  ;;  %v5453_v19 = vadd.f32 %v5452_v8, %v5451_v55  ;;  %v1363_v62 = vadd.f32 %v5544_v5, %v7329_v16  ;;  %5893 = vmatprep.subr.bf16.mxu0 %v6778_v14  ;;  %v6585_v2 = vld [vmem:[%s8421_s3 + $0xe0] sm:$0xff]  }
 0x172   :  { %5914 = vmatpush3.bf16.msra.mxu1 %v6579_v1  ;;  %v5547_v21 = vadd.f32 %v5546_v11, %v5545_v7  ;;  %5907 = vmatprep.mubr.msk.bf16.mxu0 %vm6779_vm0, %v6778_v14  ;;  %v7497_v7 = vld [vmem:[%s8422_s2] ss:$0 sm:$0xff] }
 0x173   :  { %v7466_v27 = vpack.c.bf16 %v1476_v17, %v1475_v3  ;;  %v1113_v28 = vmax.f32 %v1024_v18, 0.0  ;;  %v1027_v29 = vadd.f32 %v5453_v19, %v7329_v16  ;;  %v1452_v30 = vmax.f32 %v1363_v62, 0.0  ;;  %5915 = vmatprep.subr.bf16.mxu1 %v6778_v14  ;;  %v6586_v11 = vld [vmem:[%s8421_s3 + $0xa0] sm:$0xff]  }
 0x174   :  { %v1366_v31 = vadd.f32 %v5547_v21, %v7329_v16  ;;  %5894 = vmatpush3.bf16.msra.mxu0 %v6580_v12 }
 0x175   :  { %v1138_v35 = vmax.f32 %v7351_v13, %v1113_v28  ;;  %v1114_v36 = vmax.f32 %v1027_v29, 0.0  ;;  %v5454_v33 = vpop.f32.mrb[64].mxu0  ;;  %5895 = vmatprep.subr.bf16.mxu0 %v6778_v14  ;;  %v5548_v37 = vpop.f32.mrb[64].mxu1 }
 0x176   :  { %v1453_v41 = vmax.f32 %v1366_v31, 0.0  ;;  %5916 = vmatpush3.bf16.msra.mxu1 %v6581_v26  ;;  %v5455_v43 = vpop.f32.mrb[65].mxu0  ;;  %v5549_v45 = vpop.f32.mrb[65].mxu1  ;;  %v6587_v26 = vld [vmem:[%s8421_s3 + $0xe8] sm:$0xff]  }
 0x177   :  { %v1139_v47 = vmax.f32 %v7353_v22, %v1114_v36  ;;  %v1477_v48 = vmax.f32 %v1138_v35, %v1452_v30  ;;  %v5456_v49 = vadd.f32 %v5455_v43, %v5454_v33  ;;  %v5457_v50 = vpop.f32.mrb[66].mxu0  ;;  %v5550_v54 = vadd.f32 %v5549_v45, %v5548_v37  ;;  %5917 = vmatprep.subr.bf16.mxu1 %v6778_v14  ;;  %v5551_v13 = vpop.f32.mrb[66].mxu1  ;;  %v6588_v33 = vld [vmem:[%s8421_s3 + $0xa8] sm:$0xff]  }
 0x178   :  { %5896 = vmatpush3.bf16.msra.mxu0 %v6582_v34  ;;  %v5458_v56 = vpop.f32.mrb[67].mxu0  ;;  %v5552_v57 = vpop.f32.mrb[67].mxu1 }
 0x179   :  { %v1478_v60 = vmax.f32 %v1139_v47, %v1453_v41  ;;  %v1032_v61 = vadd.f32 %v5456_v49, %v7329_v16  ;;  %v5459_v0 = vadd.f32 %v5458_v56, %v5457_v50  ;;  %v1371_v22 = vadd.f32 %v5550_v54, %v7329_v16  ;;  %5897 = vmatprep.subr.bf16.mxu0 %v6778_v14 }
 0x17a   :  { %5918 = vmatpush3.bf16.msra.mxu1 %v6583_v40  ;;  %v5553_v1 = vadd.f32 %v5552_v57, %v5551_v13  ;;  %v6589_v40 = vld [vmem:[%s8421_s3 + $0xf0] sm:$0xff]  }
 0x17b   :  { %v7490_v3 = vpack.c.bf16 %v1478_v60, %v1477_v48  ;;  %v1115_v4 = vmax.f32 %v1032_v61, 0.0  ;;  %v1035_v55 = vadd.f32 %v5459_v0, %v7329_v16  ;;  %v1454_v5 = vmax.f32 %v1371_v22, 0.0  ;;  %5919 = vmatprep.subr.bf16.mxu1 %v6778_v14  ;;  %v6590_v13 = vld [vmem:[%s8421_s3 + $0xb0] sm:$0xff]  }
 0x17c   :  { %v1374_v8 = vadd.f32 %v7497_v7, %v5553_v1  ;;  %5898 = vmatpush3.bf16.msra.mxu0 %v6584_v58  ;;  %v6591_v1 = vld [vmem:[%s8421_s3 + $0xf8] sm:$0xff]  }
 0x17d   :  { %v1140_v12 = vmax.f32 %v7359_v38, %v1115_v4  ;;  %v1116_v17 = vmax.f32 %v1035_v55, 0.0  ;;  %v5460_v18 = vpop.f32.mrb[68].mxu0  ;;  %5899 = vmatprep.subr.bf16.mxu0 %v6778_v14  ;;  %v5554_v16 = vpop.f32.mrb[68].mxu1 }
 0x17e   :  { %v1455_v19 = vmax.f32 %v1374_v8, 0.0  ;;  %5920 = vmatpush3.bf16.msra.mxu1 %v6585_v2  ;;  %v5461_v62 = vpop.f32.mrb[69].mxu0  ;;  %v5555_v21 = vpop.f32.mrb[69].mxu1 }
 0x17f   :  { %v1141_v28 = vmax.f32 %v7361_v46, %v1116_v17  ;;  %v1479_v29 = vmax.f32 %v1140_v12, %v1454_v5  ;;  %v5462_v30 = vadd.f32 %v5461_v62, %v5460_v18  ;;  %v5463_v31 = vpop.f32.mrb[70].mxu0  ;;  %v5556_v34 = vadd.f32 %v5555_v21, %v5554_v16  ;;  %5921 = vmatprep.subr.bf16.mxu1 %v6778_v14  ;;  %v5557_v38 = vpop.f32.mrb[70].mxu1  ;;  %v6592_v17 = vld [vmem:[%s8421_s3 + $0xb8] sm:$0xff]  }
 0x180   :  { %5900 = vmatpush3.bf16.msra.mxu0 %v6586_v11  ;;  %v5464_v35 = vpop.f32.mrb[71].mxu0  ;;  %v5558_v36 = vpop.f32.mrb[71].mxu1  ;;  %v1847_v21 = vrot.slane %v7466_v27, 4 }
 0x181   :  { %v1480_v37 = vmax.f32 %v1141_v28, %v1455_v19  ;;  %v1040_v41 = vadd.f32 %v7497_v7, %v5462_v30  ;;  %v5465_v43 = vadd.f32 %v5464_v35, %v5463_v31  ;;  %v1379_v46 = vadd.f32 %v7497_v7, %v5556_v34  ;;  %5901 = vmatprep.subr.bf16.mxu0 %v6778_v14 }
 0x182   :  { %5922 = vmatpush3.bf16.msra.mxu1 %v6587_v26  ;;  %v5559_v45 = vadd.f32 %v5558_v36, %v5557_v38  ;;  %v6593_v26 = vld [vmem:[%s8421_s3 + $0x140] sm:$0xff]  }
 0x183   :  { %v7519_v47 = vpack.c.bf16 %v1480_v37, %v1479_v29  ;;  %v1117_v48 = vmax.f32 %v1040_v41, 0.0  ;;  %v1043_v49 = vadd.f32 %v7497_v7, %v5465_v43  ;;  %v1456_v50 = vmax.f32 %v1379_v46, 0.0  ;;  %5923 = vmatprep.subr.bf16.mxu1 %v6778_v14  ;;  %v6594_v38 = vld [vmem:[%s8421_s3 + $0x100] sm:$0xff]  }
 0x184   :  { %v1382_v54 = vadd.f32 %v7497_v7, %v5559_v45  ;;  %5902 = vmatpush3.bf16.msra.mxu0 %v6588_v33  ;;  %v6595_v45 = vld [vmem:[%s8421_s3 + $0x148] sm:$0xff]  }
 0x185   :  { %v1142_v56 = vmax.f32 %v7367_v63, %v1117_v48  ;;  %v1118_v57 = vmax.f32 %v1043_v49, 0.0  ;;  %v5466_v58 = vpop.f32.mrb[72].mxu0  ;;  %5903 = vmatprep.subr.bf16.mxu0 %v6778_v14  ;;  %v5560_v60 = vpop.f32.mrb[72].mxu1 }
 0x186   :  { %v1457_v61 = vmax.f32 %v1382_v54, 0.0  ;;  %5924 = vmatpush3.bf16.msra.mxu1 %v6589_v40  ;;  %v5467_v0 = vpop.f32.mrb[73].mxu0  ;;  %v5561_v22 = vpop.f32.mrb[73].mxu1 }
 0x187   :  { %v1143_v2 = vmax.f32 %v7369_v6, %v1118_v57  ;;  %v1481_v4 = vmax.f32 %v1142_v56, %v1456_v50  ;;  %v5468_v55 = vadd.f32 %v5467_v0, %v5466_v58  ;;  %v5469_v5 = vpop.f32.mrb[74].mxu0  ;;  %v5562_v8 = vadd.f32 %v5561_v22, %v5560_v60  ;;  %5925 = vmatprep.subr.bf16.mxu1 %v6778_v14  ;;  %v5563_v63 = vpop.f32.mrb[74].mxu1  ;;  %v6596_v57 = vld [vmem:[%s8421_s3 + $0x108] sm:$0xff]   ;;  %v6597_v0 = vld [vmem:[%s8421_s3 + $0x150] sm:$0xff]  }
 0x188   :  { %5904 = vmatpush3.bf16.msra.mxu0 %v6590_v13  ;;  %v5470_v11 = vpop.f32.mrb[75].mxu0  ;;  %v5564_v12 = vpop.f32.mrb[75].mxu1 }
 0x189   :  { %v1482_v18 = vmax.f32 %v1143_v2, %v1457_v61  ;;  %v1048_v16 = vadd.f32 %v7497_v7, %v5468_v55  ;;  %v5471_v19 = vadd.f32 %v5470_v11, %v5469_v5  ;;  %v1387_v6 = vadd.f32 %v7497_v7, %v5562_v8  ;;  %5905 = vmatprep.subr.bf16.mxu0 %v6778_v14  ;;  %v6598_v5 = vld [vmem:[%s8421_s3 + $0x110] sm:$0xff]  }
 0x18a   :  { %5926 = vmatpush3.bf16.msra.mxu1 %v6591_v1  ;;  %v5565_v62 = vadd.f32 %v5564_v12, %v5563_v63 }
 0x18b   :  { %v7544_v28 = vpack.c.bf16 %v1482_v18, %v1481_v4  ;;  %v1119_v29 = vmax.f32 %v1048_v16, 0.0  ;;  %v1051_v30 = vadd.f32 %v7497_v7, %v5471_v19  ;;  %v1458_v31 = vmax.f32 %v1387_v6, 0.0  ;;  %5951 = vmatprep.subr.bf16.mxu1 %v6778_v14  ;;  %v6599_v19 = vld [vmem:[%s8421_s3 + $0x158] sm:$0xff]  }
 0x18c   :  { %v1390_v34 = vadd.f32 %v7497_v7, %v5565_v62  ;;  %5906 = vmatpush3.bf16.msra.mxu0 %v6592_v17 }
 0x18d   :  { %v1144_v35 = vmax.f32 %v7375_v25, %v1119_v29  ;;  %v1120_v36 = vmax.f32 %v1051_v30, 0.0  ;;  %5928 = vmatmul.mubr.bf16.vlgmr.msra.gmra.mrb[108].mxu1 %v1847_v21  ;;  %v5472_v33 = vpop.f32.mrb[76].mxu0  ;;  %5931 = vmatprep.subr.bf16.mxu0 %v6778_v14  ;;  %v5566_v37 = vpop.f32.mrb[76].mxu1 }
 0x18e   :  { %v1459_v41 = vmax.f32 %v1390_v34, 0.0  ;;  %5952 = vmatpush3.bf16.msra.mxu1 %v6593_v26  ;;  %v5473_v43 = vpop.f32.mrb[77].mxu0  ;;  %v5567_v46 = vpop.f32.mrb[77].mxu1  ;;  %5967 = vmatprep.mubr.msk.bf16.mxu1 %vm6779_vm0, %v6778_v14  ;;  %v6600_v34 = vld [vmem:[%s8421_s3 + $0x118] sm:$0xff]  }
 0x18f   :  { %v1145_v40 = vmax.f32 %v7377_v32, %v1120_v36  ;;  %v1483_v25 = vmax.f32 %v1144_v35, %v1458_v31  ;;  %v5474_v48 = vadd.f32 %v5473_v43, %v5472_v33  ;;  %5908 = vmatmul.mubr.bf16.vlgmr.msra.gmra.mrb[108].mxu0 %v7466_v27  ;;  %v5475_v49 = vpop.f32.mrb[78].mxu0  ;;  %v5568_v50 = vadd.f32 %v5567_v46, %v5566_v37  ;;  %v5569_v54 = vpop.f32.mrb[78].mxu1  ;;  %v6601_v37 = vld [vmem:[%s8421_s3 + $0x160] sm:$0xff]  }
 0x190   :  { %5932 = vmatpush3.bf16.msra.mxu0 %v6594_v38  ;;  %v5476_v13 = vpop.f32.mrb[79].mxu0  ;;  %5953 = vmatprep.subr.bf16.mxu1 %v6778_v14  ;;  %v5570_v56 = vpop.f32.mrb[79].mxu1 }
 0x191   :  { %v1484_v58 = vmax.f32 %v1145_v40, %v1459_v41  ;;  %v1056_v60 = vadd.f32 %v7497_v7, %v5474_v48  ;;  %v5477_v32 = vadd.f32 %v5476_v13, %v5475_v49  ;;  %v1395_v61 = vadd.f32 %v7497_v7, %v5568_v50  ;;  %5933 = vmatprep.subr.bf16.mxu0 %v6778_v14 }
 0x192   :  { %5954 = vmatpush3.bf16.msra.mxu1 %v6595_v45  ;;  %v5571_v27 = vadd.f32 %v5570_v56, %v5569_v54  ;;  %5947 = vmatprep.mubr.msk.bf16.mxu0 %vm6779_vm0, %v6778_v14 }
 0x193   :  { %v7573_v22 = vpack.c.bf16 %v1484_v58, %v1483_v25  ;;  %v1121_v1 = vmax.f32 %v1056_v60, 0.0  ;;  %v1059_v2 = vadd.f32 %v7497_v7, %v5477_v32  ;;  %v1460_v4 = vmax.f32 %v1395_v61, 0.0  ;;  %5955 = vmatprep.subr.bf16.mxu1 %v6778_v14  ;;  %v6602_v25 = vld [vmem:[%s8421_s3 + $0x120] sm:$0xff]   ;;  %v6603_v58 = vld [vmem:[%s8421_s3 + $0x168] sm:$0xff]  }
 0x194   :  { %v1398_v55 = vadd.f32 %v7497_v7, %v5571_v27  ;;  %5934 = vmatpush3.bf16.msra.mxu0 %v6596_v57 }
 0x195   :  { %v1146_v8 = vmax.f32 %v7383_v51, %v1121_v1  ;;  %v1122_v63 = vmax.f32 %v1059_v2, 0.0  ;;  %v5478_v11 = vpop.f32.mrb[80].mxu0  ;;  %5935 = vmatprep.subr.bf16.mxu0 %v6778_v14  ;;  %v5572_v12 = vpop.f32.mrb[80].mxu1 }
 0x196   :  { %v1461_v17 = vmax.f32 %v1398_v55, 0.0  ;;  %5956 = vmatpush3.bf16.msra.mxu1 %v6597_v0  ;;  %v5479_v18 = vpop.f32.mrb[81].mxu0  ;;  %v5573_v16 = vpop.f32.mrb[81].mxu1 }
 0x197   :  { %v1147_v6 = vmax.f32 %v7385_v59, %v1122_v63  ;;  %v1485_v62 = vmax.f32 %v1146_v8, %v1460_v4  ;;  %v5480_v21 = vadd.f32 %v5479_v18, %v5478_v11  ;;  %v5481_v26 = vpop.f32.mrb[82].mxu0  ;;  %v5574_v29 = vadd.f32 %v5573_v16, %v5572_v12  ;;  %5957 = vmatprep.subr.bf16.mxu1 %v6778_v14  ;;  %v5575_v51 = vpop.f32.mrb[82].mxu1  ;;  %v6604_v4 = vld [vmem:[%s8421_s3 + $0x128] sm:$0xff]   ;;  %v6605_v11 = vld [vmem:[%s8421_s3 + $0x170] sm:$0xff]  }
 0x198   :  { %5936 = vmatpush3.bf16.msra.mxu0 %v6598_v5  ;;  %v5482_v30 = vpop.f32.mrb[83].mxu0  ;;  %v5576_v31 = vpop.f32.mrb[83].mxu1 }
 0x199   :  { %v1486_v38 = vmax.f32 %v1147_v6, %v1461_v17  ;;  %v1064_v35 = vadd.f32 %v7497_v7, %v5480_v21  ;;  %v5483_v36 = vadd.f32 %v5482_v30, %v5481_v26  ;;  %v1403_v59 = vadd.f32 %v7497_v7, %v5574_v29  ;;  %5937 = vmatprep.subr.bf16.mxu0 %v6778_v14  ;;  %v6606_v6 = vld [vmem:[%s8421_s3 + $0x130] sm:$0xff]  }
 0x19a   :  { %5958 = vmatpush3.bf16.msra.mxu1 %v6599_v19  ;;  %v5577_v33 = vadd.f32 %v5576_v31, %v5575_v51 }
 0x19b   :  { %v7597_v41 = vpack.c.bf16 %v1486_v38, %v1485_v62  ;;  %v1123_v43 = vmax.f32 %v1064_v35, 0.0  ;;  %v1067_v46 = vadd.f32 %v7497_v7, %v5483_v36  ;;  %v1462_v45 = vmax.f32 %v1403_v59, 0.0  ;;  %5959 = vmatprep.subr.bf16.mxu1 %v6778_v14 }
 0x19c   :  { %v1406_v40 = vadd.f32 %v7497_v7, %v5577_v33  ;;  %5938 = vmatpush3.bf16.msra.mxu0 %v6600_v34  ;;  %v6607_v34 = vld [vmem:[%s8421_s3 + $0x178] sm:$0xff]  }
 0x19d   :  { %v1148_v48 = vmax.f32 %v7391_v15, %v1123_v43  ;;  %v1124_v49 = vmax.f32 %v1067_v46, 0.0  ;;  %v5484_v50 = vpop.f32.mrb[84].mxu0  ;;  %5939 = vmatprep.subr.bf16.mxu0 %v6778_v14  ;;  %v5578_v54 = vpop.f32.mrb[84].mxu1  ;;  %v6608_v46 = vld [vmem:[%s8421_s3 + $0x138] sm:$0xff]  }
 0x19e   :  { %v1463_v13 = vmax.f32 %v1406_v40, 0.0  ;;  %5960 = vmatpush3.bf16.msra.mxu1 %v6601_v37  ;;  %v5485_v56 = vpop.f32.mrb[85].mxu0  ;;  %v5579_v57 = vpop.f32.mrb[85].mxu1 }
 0x19f   :  { %v1149_v60 = vmax.f32 %v7393_v24, %v1124_v49  ;;  %v1487_v32 = vmax.f32 %v1148_v48, %v1462_v45  ;;  %v5486_v61 = vadd.f32 %v5485_v56, %v5484_v50  ;;  %v5487_v27 = vpop.f32.mrb[86].mxu0  ;;  %v5580_v0 = vadd.f32 %v5579_v57, %v5578_v54  ;;  %5961 = vmatprep.subr.bf16.mxu1 %v6778_v14  ;;  %v5581_v15 = vpop.f32.mrb[86].mxu1  ;;  %v6609_v50 = vld [vmem:[%s8421_s3 + $0x1c0] sm:$0xff]  }
 0x1a0   :  { %5940 = vmatpush3.bf16.msra.mxu0 %v6602_v25  ;;  %v5488_v1 = vpop.f32.mrb[87].mxu0  ;;  %v5582_v2 = vpop.f32.mrb[87].mxu1  ;;  %v2062_v49 = vrot.slane %v7490_v3, 4 }
 0x1a1   :  { %v1488_v55 = vmax.f32 %v1149_v60, %v1463_v13  ;;  %v1072_v5 = vadd.f32 %v7497_v7, %v5486_v61  ;;  %v5489_v8 = vadd.f32 %v5488_v1, %v5487_v27  ;;  %v1411_v24 = vadd.f32 %v7497_v7, %v5580_v0  ;;  %5941 = vmatprep.subr.bf16.mxu0 %v6778_v14  ;;  %v6610_v60 = vld [vmem:[%s8421_s3 + $0x180] sm:$0xff]  }
 0x1a2   :  { %5962 = vmatpush3.bf16.msra.mxu1 %v6603_v58  ;;  %v5583_v63 = vadd.f32 %v5582_v2, %v5581_v15 }
 0x1a3   :  { %v7621_v12 = vpack.c.bf16 %v1488_v55, %v1487_v32  ;;  %v1125_v17 = vmax.f32 %v1072_v5, 0.0  ;;  %v1075_v18 = vadd.f32 %v7497_v7, %v5489_v8  ;;  %v1464_v16 = vmax.f32 %v1411_v24, 0.0  ;;  %5963 = vmatprep.subr.bf16.mxu1 %v6778_v14 }
 0x1a4   :  { %v1414_v19 = vadd.f32 %v7497_v7, %v5583_v63  ;;  %5942 = vmatpush3.bf16.msra.mxu0 %v6604_v4  ;;  %v6611_v4 = vld [vmem:[%s8421_s3 + $0x1c8] sm:$0xff]  }
 0x1a5   :  { %v1150_v62 = vmax.f32 %v7399_v44, %v1125_v17  ;;  %v1126_v21 = vmax.f32 %v1075_v18, 0.0  ;;  %v5490_v26 = vpop.f32.mrb[88].mxu0  ;;  %5943 = vmatprep.subr.bf16.mxu0 %v6778_v14  ;;  %v5584_v29 = vpop.f32.mrb[88].mxu1  ;;  %v6612_v18 = vld [vmem:[%s8421_s3 + $0x188] sm:$0xff]  }
 0x1a6   :  { %v1465_v51 = vmax.f32 %v1414_v19, 0.0  ;;  %5964 = vmatpush3.bf16.msra.mxu1 %v6605_v11  ;;  %v5491_v30 = vpop.f32.mrb[89].mxu0  ;;  %v5585_v31 = vpop.f32.mrb[89].mxu1 }
 0x1a7   :  { %v1151_v38 = vmax.f32 %v7401_v53, %v1126_v21  ;;  %v1489_v35 = vmax.f32 %v1150_v62, %v1464_v16  ;;  %v5492_v36 = vadd.f32 %v5491_v30, %v5490_v26  ;;  %v5493_v59 = vpop.f32.mrb[90].mxu0  ;;  %v5586_v33 = vadd.f32 %v5585_v31, %v5584_v29  ;;  %5965 = vmatprep.subr.bf16.mxu1 %v6778_v14  ;;  %v5587_v44 = vpop.f32.mrb[90].mxu1  ;;  %v6613_v62 = vld [vmem:[%s8421_s3 + $0x1d0] sm:$0xff]  }
 0x1a8   :  { %5944 = vmatpush3.bf16.msra.mxu0 %v6606_v6  ;;  %v5494_v37 = vpop.f32.mrb[91].mxu0  ;;  %v5588_v43 = vpop.f32.mrb[91].mxu1  ;;  %v6614_v31 = vld [vmem:[%s8421_s3 + $0x190] sm:$0xff]  }
 0x1a9   :  { %v1490_v45 = vmax.f32 %v1151_v38, %v1465_v51  ;;  %v1080_v40 = vadd.f32 %v7497_v7, %v5492_v36  ;;  %v5495_v25 = vadd.f32 %v5494_v37, %v5493_v59  ;;  %v1419_v53 = vadd.f32 %v7497_v7, %v5586_v33  ;;  %5945 = vmatprep.subr.bf16.mxu0 %v6778_v14  ;;  %v6615_v37 = vld [vmem:[%s8421_s3 + $0x1d8] sm:$0xff]  }
 0x1aa   :  { %5966 = vmatpush3.bf16.msra.mxu1 %v6607_v34  ;;  %v5589_v48 = vadd.f32 %v5588_v43, %v5587_v44 }
 0x1ab   :  { %v7646_v54 = vpack.c.bf16 %v1490_v45, %v1489_v35  ;;  %v1127_v13 = vmax.f32 %v1080_v40, 0.0  ;;  %v1083_v56 = vadd.f32 %v7497_v7, %v5495_v25  ;;  %v1466_v57 = vmax.f32 %v1419_v53, 0.0  ;;  %5991 = vmatprep.subr.bf16.mxu1 %v6778_v14 }
 0x1ac   :  { %v1422_v58 = vadd.f32 %v7497_v7, %v5589_v48  ;;  %5946 = vmatpush3.bf16.msra.mxu0 %v6608_v46 }
 0x1ad   :  { %v1152_v32 = vmax.f32 %v7407_v9, %v1127_v13  ;;  %v1128_v61 = vmax.f32 %v1083_v56, 0.0  ;;  %5968 = vmatmul.mubr.bf16.vlgmr.msra.gmra.mrb[112].mxu1 %v2062_v49  ;;  %v5496_v27 = vpop.f32.mrb[92].mxu0  ;;  %5971 = vmatprep.subr.bf16.mxu0 %v6778_v14  ;;  %v5590_v0 = vpop.f32.mrb[92].mxu1  ;;  %v6616_v49 = vld [vmem:[%s8421_s3 + $0x198] sm:$0xff]  }
 0x1ae   :  { %v1467_v15 = vmax.f32 %v1422_v58, 0.0  ;;  %5992 = vmatpush3.bf16.msra.mxu1 %v6609_v50  ;;  %v5497_v1 = vpop.f32.mrb[93].mxu0  ;;  %v5591_v2 = vpop.f32.mrb[93].mxu1  ;;  %6007 = vmatprep.mubr.msk.bf16.mxu1 %vm6779_vm0, %v6778_v14  ;;  %v6617_v58 = vld [vmem:[%s8421_s3 + $0x1e0] sm:$0xff]  }
 0x1af   :  { %v1153_v55 = vmax.f32 %v7409_v20, %v1128_v61  ;;  %v1491_v9 = vmax.f32 %v1152_v32, %v1466_v57  ;;  %v5498_v5 = vadd.f32 %v5497_v1, %v5496_v27  ;;  %5948 = vmatmul.mubr.bf16.vlgmr.msra.gmra.mrb[112].mxu0 %v7490_v3  ;;  %v5499_v8 = vpop.f32.mrb[94].mxu0  ;;  %v5592_v24 = vadd.f32 %v5591_v2, %v5590_v0  ;;  %v5593_v63 = vpop.f32.mrb[94].mxu1 }
 0x1b0   :  { %5972 = vmatpush3.bf16.msra.mxu0 %v6610_v60  ;;  %v5500_v11 = vpop.f32.mrb[95].mxu0  ;;  %5993 = vmatprep.subr.bf16.mxu1 %v6778_v14  ;;  %v5594_v17 = vpop.f32.mrb[95].mxu1 }
 0x1b1   :  { %v1492_v16 = vmax.f32 %v1153_v55, %v1467_v15  ;;  %v1088_v19 = vadd.f32 %v7497_v7, %v5498_v5  ;;  %v5501_v20 = vadd.f32 %v5500_v11, %v5499_v8  ;;  %v1427_v6 = vadd.f32 %v7497_v7, %v5592_v24  ;;  %5973 = vmatprep.subr.bf16.mxu0 %v6778_v14  ;;  %v6618_v15 = vld [vmem:[%s8421_s3 + $0x1a0] sm:$0xff]   ;;  %v6619_v24 = vld [vmem:[%s8421_s3 + $0x1e8] sm:$0xff]  }
 0x1b2   :  { %5994 = vmatpush3.bf16.msra.mxu1 %v6611_v4  ;;  %v5595_v3 = vadd.f32 %v5594_v17, %v5593_v63  ;;  %5987 = vmatprep.mubr.msk.bf16.mxu0 %vm6779_vm0, %v6778_v14 }
 0x1b3   :  { %v7675_v21 = vpack.c.bf16 %v1492_v16, %v1491_v9  ;;  %v1129_v26 = vmax.f32 %v1088_v19, 0.0  ;;  %v1091_v29 = vadd.f32 %v7497_v7, %v5501_v20  ;;  %v1468_v51 = vmax.f32 %v1427_v6, 0.0  ;;  %5995 = vmatprep.subr.bf16.mxu1 %v6778_v14  ;;  %v6620_v19 = vld [vmem:[%s8421_s3 + $0x1a8] sm:$0xff]  }
 0x1b4   :  { %v1430_v30 = vadd.f32 %v7497_v7, %v5595_v3  ;;  %5974 = vmatpush3.bf16.msra.mxu0 %v6612_v18 }
 0x1b5   :  { %v1154_v34 = vmax.f32 %v7415_v42, %v1129_v26  ;;  %v1130_v38 = vmax.f32 %v1091_v29, 0.0  ;;  %v5502_v35 = vpop.f32.mrb[96].mxu0  ;;  %5975 = vmatprep.subr.bf16.mxu0 %v6778_v14  ;;  %v5596_v36 = vpop.f32.mrb[96].mxu1 }
 0x1b6   :  { %v1469_v59 = vmax.f32 %v1430_v30, 0.0  ;;  %5996 = vmatpush3.bf16.msra.mxu1 %v6613_v62  ;;  %v5503_v33 = vpop.f32.mrb[97].mxu0  ;;  %v5597_v44 = vpop.f32.mrb[97].mxu1 }
 0x1b7   :  { %v1155_v43 = vmax.f32 %v7417_v52, %v1130_v38  ;;  %v1493_v46 = vmax.f32 %v1154_v34, %v1468_v51  ;;  %v5504_v45 = vadd.f32 %v5503_v33, %v5502_v35  ;;  %v5505_v40 = vpop.f32.mrb[98].mxu0  ;;  %v5598_v25 = vadd.f32 %v5597_v44, %v5596_v36  ;;  %5997 = vmatprep.subr.bf16.mxu1 %v6778_v14  ;;  %v5599_v42 = vpop.f32.mrb[98].mxu1  ;;  %v6623_v34 = vld [vmem:[%s8421_s3 + $0x1f8] sm:$0xff]   ;;  %v6627_v33 = vld [vmem:[%s8421_s3 + $0x248] sm:$0xff]  }
 0x1b8   :  { %5976 = vmatpush3.bf16.msra.mxu0 %v6614_v31  ;;  %v5506_v53 = vpop.f32.mrb[99].mxu0  ;;  %v5600_v48 = vpop.f32.mrb[99].mxu1  ;;  %v6622_v31 = vld [vmem:[%s8421_s3 + $0x1b0] sm:$0xff]   ;;  %v6624_v35 = vld [vmem:[%s8421_s3 + $0x1b8] sm:$0xff]   ;;  %v2277_v36 = vrot.slane %v7519_v47, 4  ;;  %v6628_v44 = vld [vmem:[%s8421_s3 + $0x208] sm:$0xff]  }
 0x1b9   :  { %v1494_v50 = vmax.f32 %v1155_v43, %v1469_v59  ;;  %v1096_v13 = vadd.f32 %v7497_v7, %v5504_v45  ;;  %v5507_v56 = vadd.f32 %v5506_v53, %v5505_v40  ;;  %v1435_v52 = vadd.f32 %v7497_v7, %v5598_v25  ;;  %5977 = vmatprep.subr.bf16.mxu0 %v6778_v14  ;;  %v6626_v59 = vld [vmem:[%s8421_s3 + $0x200] sm:$0xff]   ;;  %v6631_v43 = vld [vmem:[%s8421_s3 + $0x258] sm:$0xff]   ;;  %v6635_v25 = vld [vmem:[%s8421_s3 + $0x268] sm:$0xff]  }
 0x1ba   :  { %5998 = vmatpush3.bf16.msra.mxu1 %v6615_v37  ;;  %v5601_v57 = vadd.f32 %v5600_v48, %v5599_v42  ;;  %v6629_v37 = vld [vmem:[%s8421_s3 + $0x250] sm:$0xff]   ;;  %v6633_v45 = vld [vmem:[%s8421_s3 + $0x260] sm:$0xff]   ;;  %v6636_v42 = vld [vmem:[%s8421_s3 + $0x228] sm:$0xff]  }
 0x1bb   :  { %v7699_v60 = vpack.c.bf16 %v1494_v50, %v1493_v46  ;;  %v1131_v32 = vmax.f32 %v1096_v13, 0.0  ;;  %v1099_v61 = vadd.f32 %v7497_v7, %v5507_v56  ;;  %v1470_v27 = vmax.f32 %v1435_v52, 0.0  ;;  %5999 = vmatprep.subr.bf16.mxu1 %v6778_v14  ;;  %v6632_v46 = vld [vmem:[%s8421_s3 + $0x218] sm:$0xff]   ;;  %v6634_v40 = vld [vmem:[%s8421_s3 + $0x220] sm:$0xff]   ;;  %v6637_v53 = vld [vmem:[%s8421_s3 + $0x270] sm:$0xff]  }
 0x1bc   :  { %v1438_v0 = vadd.f32 %v7497_v7, %v5601_v57  ;;  %5978 = vmatpush3.bf16.msra.mxu0 %v6616_v49  ;;  %v6638_v48 = vld [vmem:[%s8421_s3 + $0x230] sm:$0xff]   ;;  %v6639_v49 = vld [vmem:[%s8421_s3 + $0x278] sm:$0xff]   ;;  %v6641_v13 = vld [vmem:[%s8421_s3 + $0x2c0] sm:$0xff]   ;;  %v2492_v56 = vrot.slane %v7544_v28, 4 }
 0x1bd   :  { %v1156_v1 = vmax.f32 %v7423_v10, %v1131_v32  ;;  %v1132_v2 = vmax.f32 %v1099_v61, 0.0  ;;  %v5508_v4 = vpop.f32.mrb[100].mxu0  ;;  %5979 = vmatprep.subr.bf16.mxu0 %v6778_v14  ;;  %v5602_v55 = vpop.f32.mrb[100].mxu1  ;;  %v6640_v50 = vld [vmem:[%s8421_s3 + $0x238] sm:$0xff]   ;;  %v6642_v52 = vld [vmem:[%s8421_s3 + $0x280] sm:$0xff]   ;;  %v6643_v57 = vld [vmem:[%s8421_s3 + $0x2c8] sm:$0xff]  }
 0x1be   :  { %v1471_v9 = vmax.f32 %v1438_v0, 0.0  ;;  %6000 = vmatpush3.bf16.msra.mxu1 %v6617_v58  ;;  %v5509_v5 = vpop.f32.mrb[101].mxu0  ;;  %v5603_v8 = vpop.f32.mrb[101].mxu1  ;;  %v6644_v58 = vld [vmem:[%s8421_s3 + $0x288] sm:$0xff]   ;;  %v6645_v32 = vld [vmem:[%s8421_s3 + $0x2d0] sm:$0xff]   ;;  %v6647_v61 = vld [vmem:[%s8421_s3 + $0x2d8] sm:$0xff]  }
 0x1bf   :  { %v1157_v63 = vmax.f32 %v7425_v23, %v1132_v2  ;;  %v1495_v11 = vmax.f32 %v1156_v1, %v1470_v27  ;;  %v5510_v17 = vadd.f32 %v5509_v5, %v5508_v4  ;;  %v5604_v18 = vadd.f32 %v5603_v8, %v5602_v55  ;;  %6001 = vmatprep.subr.bf16.mxu1 %v6778_v14  ;;  %v5511_v10 = vpop.f32.mrb[102].mxu0  ;;  %v5605_v16 = vpop.f32.mrb[102].mxu1  ;;  %v6621_v23 = vld [vmem:[%s8421_s3 + $0x1f0] sm:$0xff]   ;;  %v6648_v27 = vld [vmem:[%s8421_s3 + $0x298] sm:$0xff]   ;;  %v6649_v0 = vld [vmem:[%s8421_s3 + $0x2e0] sm:$0xff]  }
 0x1c0   :  { %5980 = vmatpush3.bf16.msra.mxu0 %v6618_v15  ;;  %v5512_v20 = vpop.f32.mrb[103].mxu0  ;;  %v5606_v6 = vpop.f32.mrb[103].mxu1  ;;  %v6650_v15 = vld [vmem:[%s8421_s3 + $0x2a0] sm:$0xff]   ;;  %v6651_v1 = vld [vmem:[%s8421_s3 + $0x2e8] sm:$0xff]   ;;  %v6653_v4 = vld [vmem:[%s8421_s3 + $0x2f0] sm:$0xff]  }
 0x1c1   :  { %v1496_v3 = vmax.f32 %v1157_v63, %v1471_v9  ;;  %v1104_v62 = vadd.f32 %v7497_v7, %v5510_v17  ;;  %v1443_v26 = vadd.f32 %v7497_v7, %v5604_v18  ;;  %5981 = vmatprep.subr.bf16.mxu0 %v6778_v14  ;;  %v6652_v2 = vld [vmem:[%s8421_s3 + $0x2a8] sm:$0xff]   ;;  %v6654_v55 = vld [vmem:[%s8421_s3 + $0x2b0] sm:$0xff]   ;;  %v6655_v9 = vld [vmem:[%s8421_s3 + $0x2f8] sm:$0xff]  }
 0x1c2   :  { %6002 = vmatpush3.bf16.msra.mxu1 %v6619_v24  ;;  %v6656_v5 = vld [vmem:[%s8421_s3 + $0x2b8] sm:$0xff]   ;;  %v6657_v8 = vld [vmem:[%s8421_s3 + $0x340] sm:$0xff]   ;;  %v2707_v24 = vrot.slane %v7573_v22, 4  ;;  %v6660_v17 = vld [vmem:[%s8421_s3 + $0x308] sm:$0xff]  }
 0x1c3   :  { %v7723_v29 = vpack.c.bf16 %v1496_v3, %v1495_v11  ;;  %v1133_v51 = vmax.f32 %v1104_v62, 0.0  ;;  %v1472_v30 = vmax.f32 %v1443_v26, 0.0  ;;  %6003 = vmatprep.subr.bf16.mxu1 %v6778_v14  ;;  %v6658_v63 = vld [vmem:[%s8421_s3 + $0x300] sm:$0xff]   ;;  %v6659_v11 = vld [vmem:[%s8421_s3 + $0x348] sm:$0xff]   ;;  %v6661_v18 = vld [vmem:[%s8421_s3 + $0x350] sm:$0xff]  }
 0x1c4   :  { %5982 = vmatpush3.bf16.msra.mxu0 %v6620_v19  ;;  %v6663_v10 = vld [vmem:[%s8421_s3 + $0x358] sm:$0xff]   ;;  %v6665_v19 = vld [vmem:[%s8421_s3 + $0x360] sm:$0xff]   ;;  %v6667_v6 = vld [vmem:[%s8421_s3 + $0x368] sm:$0xff]  }
 0x1c5   :  { %v1158_v7 = vmax.f32 %v7429_v39, %v1133_v51  ;;  %5983 = vmatprep.subr.bf16.mxu0 %v6778_v14  ;;  %v6625_v39 = vld [vmem:[%s8421_s3 + $0x240] sm:$0xff]   ;;  %v6664_v16 = vld [vmem:[%s8421_s3 + $0x318] sm:$0xff]   ;;  %v6668_v3 = vld [vmem:[%s8421_s3 + $0x328] sm:$0xff]  }
 0x1c6   :  { %6004 = vmatpush3.bf16.msra.mxu1 %v6621_v23  ;;  %v6666_v20 = vld [vmem:[%s8421_s3 + $0x320] sm:$0xff]   ;;  %v6669_v62 = vld [vmem:[%s8421_s3 + $0x370] sm:$0xff]   ;;  %v6671_v23 = vld [vmem:[%s8421_s3 + $0x378] sm:$0xff]  }
 0x1c7   :  { %v7734_v38 = vmax.f32 %v1158_v7, %v1472_v30  ;;  %6005 = vmatprep.subr.bf16.mxu1 %v6778_v14  ;;  %v6670_v26 = vld [vmem:[%s8421_s3 + $0x330] sm:$0xff]   ;;  %v6672_v51 = vld [vmem:[%s8421_s3 + $0x338] sm:$0xff]   ;;  %v6673_v30 = vld [vmem:[%s8421_s3 + $0x3c0] sm:$0xff]  }
 0x1c8   :  { %5984 = vmatpush3.bf16.msra.mxu0 %v6622_v31  ;;  %v2922_v31 = vrot.slane %v7597_v41, 4  ;;  %v6674_v7 = vld [vmem:[%s8421_s3 + $0x380] sm:$0xff]  }
 0x1c9   :  { %5985 = vmatprep.subr.bf16.mxu0 %v6778_v14 }
 0x1ca   :  { %6006 = vmatpush3.bf16.msra.mxu1 %v6623_v34  ;;  %v6675_v34 = vld [vmem:[%s8421_s3 + $0x3c8] sm:$0xff]  }
 0x1cb   :  { %6031 = vmatprep.subr.bf16.mxu1 %v6778_v14 }
 0x1cc   :  { %5986 = vmatpush3.bf16.msra.mxu0 %v6624_v35  ;;  %v6676_v35 = vld [vmem:[%s8421_s3 + $0x388] sm:$0xff]  }
 0x1cd   :  { %6008 = vmatmul.mubr.bf16.vlgmr.msra.gmra.mrb[116].mxu1 %v2277_v36  ;;  %6011 = vmatprep.subr.bf16.mxu0 %v6778_v14  ;;  %v6679_v36 = vld [vmem:[%s8421_s3 + $0x3d8] sm:$0xff]  }
 0x1ce   :  { %6032 = vmatpush3.bf16.msra.mxu1 %v6625_v39  ;;  %6047 = vmatprep.mubr.msk.bf16.mxu1 %vm6779_vm0, %v6778_v14  ;;  %v6677_v39 = vld [vmem:[%s8421_s3 + $0x3d0] sm:$0xff]  }
 0x1cf   :  { %5988 = vmatmul.mubr.bf16.vlgmr.msra.gmra.mrb[116].mxu0 %v7519_v47  ;;  %6033 = vmatprep.subr.bf16.mxu1 %v6778_v14  ;;  %v6630_v47 = vld [vmem:[%s8421_s3 + $0x210] sm:$0xff]  }
 0x1d0   :  { %6012 = vmatpush3.bf16.msra.mxu0 %v6626_v59  ;;  %6027 = vmatprep.mubr.msk.bf16.mxu0 %vm6779_vm0, %v6778_v14  ;;  %v6680_v59 = vld [vmem:[%s8421_s3 + $0x398] sm:$0xff]  }
 0x1d1   :  { %6013 = vmatprep.subr.bf16.mxu0 %v6778_v14 }
 0x1d2   :  { %6034 = vmatpush3.bf16.msra.mxu1 %v6627_v33  ;;  %v6681_v33 = vld [vmem:[%s8421_s3 + $0x3e0] sm:$0xff]  }
 0x1d3   :  { %6035 = vmatprep.subr.bf16.mxu1 %v6778_v14 }
 0x1d4   :  { %6014 = vmatpush3.bf16.msra.mxu0 %v6628_v44  ;;  %v6682_v44 = vld [vmem:[%s8421_s3 + $0x3a0] sm:$0xff]  }
 0x1d5   :  { %6015 = vmatprep.subr.bf16.mxu0 %v6778_v14 }
 0x1d6   :  { %6036 = vmatpush3.bf16.msra.mxu1 %v6629_v37  ;;  %v6683_v37 = vld [vmem:[%s8421_s3 + $0x3e8] sm:$0xff]  }
 0x1d7   :  { %6037 = vmatprep.subr.bf16.mxu1 %v6778_v14 }
 0x1d8   :  { %6016 = vmatpush3.bf16.msra.mxu0 %v6630_v47 }
 0x1d9   :  { %6017 = vmatprep.subr.bf16.mxu0 %v6778_v14 }
 0x1da   :  { %6038 = vmatpush3.bf16.msra.mxu1 %v6631_v43  ;;  %v6684_v43 = vld [vmem:[%s8421_s3 + $0x3a8] sm:$0xff]  }
 0x1db   :  { %6039 = vmatprep.subr.bf16.mxu1 %v6778_v14 }
 0x1dc   :  { %6018 = vmatpush3.bf16.msra.mxu0 %v6632_v46 }
 0x1dd   :  { %6019 = vmatprep.subr.bf16.mxu0 %v6778_v14 }
 0x1de   :  { %6040 = vmatpush3.bf16.msra.mxu1 %v6633_v45 }
 0x1df   :  { %6041 = vmatprep.subr.bf16.mxu1 %v6778_v14 }
 0x1e0   :  { %6020 = vmatpush3.bf16.msra.mxu0 %v6634_v40 }
 0x1e1   :  { %6021 = vmatprep.subr.bf16.mxu0 %v6778_v14 }
 0x1e2   :  { %6042 = vmatpush3.bf16.msra.mxu1 %v6635_v25  ;;  %v6685_v25 = vld [vmem:[%s8421_s3 + $0x3f0] sm:$0xff]  }
 0x1e3   :  { %6043 = vmatprep.subr.bf16.mxu1 %v6778_v14 }
 0x1e4   :  { %6022 = vmatpush3.bf16.msra.mxu0 %v6636_v42 }
 0x1e5   :  { %6023 = vmatprep.subr.bf16.mxu0 %v6778_v14 }
 0x1e6   :  { %6044 = vmatpush3.bf16.msra.mxu1 %v6637_v53 }
 0x1e7   :  { %6045 = vmatprep.subr.bf16.mxu1 %v6778_v14 }
 0x1e8   :  { %6024 = vmatpush3.bf16.msra.mxu0 %v6638_v48 }
 0x1e9   :  { %6025 = vmatprep.subr.bf16.mxu0 %v6778_v14 }
 0x1ea   :  { %6046 = vmatpush3.bf16.msra.mxu1 %v6639_v49 }
 0x1eb   :  { %6071 = vmatprep.subr.bf16.mxu1 %v6778_v14 }
 0x1ec   :  { %6026 = vmatpush3.bf16.msra.mxu0 %v6640_v50  ;;  %v6686_v50 = vld [vmem:[%s8421_s3 + $0x3b0] sm:$0xff]  }
 0x1ed   :  { %6048 = vmatmul.mubr.bf16.vlgmr.msra.gmra.mrb[120].mxu1 %v2492_v56  ;;  %6051 = vmatprep.subr.bf16.mxu0 %v6778_v14  ;;  %v6687_v56 = vld [vmem:[%s8421_s3 + $0x3f8] sm:$0xff]  }
 0x1ee   :  { %6072 = vmatpush3.bf16.msra.mxu1 %v6641_v13  ;;  %6087 = vmatprep.mubr.msk.bf16.mxu1 %vm6779_vm0, %v6778_v14 }
 0x1ef   :  { %6028 = vmatmul.mubr.bf16.vlgmr.msra.gmra.mrb[120].mxu0 %v7544_v28  ;;  %6073 = vmatprep.subr.bf16.mxu1 %v6778_v14  ;;  %v6646_v28 = vld [vmem:[%s8421_s3 + $0x290] sm:$0xff]  }
 0x1f0   :  { %6052 = vmatpush3.bf16.msra.mxu0 %v6642_v52  ;;  %6067 = vmatprep.mubr.msk.bf16.mxu0 %vm6779_vm0, %v6778_v14  ;;  %v6688_v52 = vld [vmem:[%s8421_s3 + $0x3b8] sm:$0xff]  }
 0x1f1   :  { %6053 = vmatprep.subr.bf16.mxu0 %v6778_v14 }
 0x1f2   :  { %6074 = vmatpush3.bf16.msra.mxu1 %v6643_v57  ;;  %v6689_v57 = vld [vmem:[%s8421_s3 + $0x440] sm:$0xff]  }
 0x1f3   :  { %6075 = vmatprep.subr.bf16.mxu1 %v6778_v14 }
 0x1f4   :  { %6054 = vmatpush3.bf16.msra.mxu0 %v6644_v58  ;;  %v3137_v58 = vrot.slane %v7621_v12, 4 }
 0x1f5   :  { %6055 = vmatprep.subr.bf16.mxu0 %v6778_v14 }
 0x1f6   :  { %6076 = vmatpush3.bf16.msra.mxu1 %v6645_v32  ;;  %v6690_v32 = vld [vmem:[%s8421_s3 + $0x400] sm:$0xff]  }
 0x1f7   :  { %6077 = vmatprep.subr.bf16.mxu1 %v6778_v14 }
 0x1f8   :  { %6056 = vmatpush3.bf16.msra.mxu0 %v6646_v28  ;;  %v6691_v28 = vld [vmem:[%s8421_s3 + $0x448] sm:$0xff]  }
 0x1f9   :  { %6057 = vmatprep.subr.bf16.mxu0 %v6778_v14 }
 0x1fa   :  { %6078 = vmatpush3.bf16.msra.mxu1 %v6647_v61  ;;  %v6692_v61 = vld [vmem:[%s8421_s3 + $0x408] sm:$0xff]  }
 0x1fb   :  { %6079 = vmatprep.subr.bf16.mxu1 %v6778_v14 }
 0x1fc   :  { %6058 = vmatpush3.bf16.msra.mxu0 %v6648_v27  ;;  %v6693_v27 = vld [vmem:[%s8421_s3 + $0x450] sm:$0xff]  }
 0x1fd   :  { %6059 = vmatprep.subr.bf16.mxu0 %v6778_v14 }
 0x1fe   :  { %6080 = vmatpush3.bf16.msra.mxu1 %v6649_v0  ;;  %v6695_v0 = vld [vmem:[%s8421_s3 + $0x458] sm:$0xff]  }
 0x1ff   :  { %6081 = vmatprep.subr.bf16.mxu1 %v6778_v14 }
 0x200   :  { %6060 = vmatpush3.bf16.msra.mxu0 %v6650_v15  ;;  %v6696_v15 = vld [vmem:[%s8421_s3 + $0x418] sm:$0xff]  }
 0x201   :  { %6061 = vmatprep.subr.bf16.mxu0 %v6778_v14 }
 0x202   :  { %6082 = vmatpush3.bf16.msra.mxu1 %v6651_v1  ;;  %v6697_v1 = vld [vmem:[%s8421_s3 + $0x460] sm:$0xff]  }
 0x203   :  { %6083 = vmatprep.subr.bf16.mxu1 %v6778_v14 }
 0x204   :  { %6062 = vmatpush3.bf16.msra.mxu0 %v6652_v2  ;;  %v6698_v2 = vld [vmem:[%s8421_s3 + $0x420] sm:$0xff]  }
 0x205   :  { %6063 = vmatprep.subr.bf16.mxu0 %v6778_v14 }
 0x206   :  { %6084 = vmatpush3.bf16.msra.mxu1 %v6653_v4  ;;  %v6699_v4 = vld [vmem:[%s8421_s3 + $0x468] sm:$0xff]  }
 0x207   :  { %6085 = vmatprep.subr.bf16.mxu1 %v6778_v14 }
 0x208   :  { %6064 = vmatpush3.bf16.msra.mxu0 %v6654_v55 }
 0x209   :  { %6065 = vmatprep.subr.bf16.mxu0 %v6778_v14 }
 0x20a   :  { %6086 = vmatpush3.bf16.msra.mxu1 %v6655_v9  ;;  %v6700_v9 = vld [vmem:[%s8421_s3 + $0x428] sm:$0xff]  }
 0x20b   :  { %6111 = vmatprep.subr.bf16.mxu1 %v6778_v14 }
 0x20c   :  { %6066 = vmatpush3.bf16.msra.mxu0 %v6656_v5 }
 0x20d   :  { %6088 = vmatmul.mubr.bf16.vlgmr.msra.gmra.mrb[124].mxu1 %v2707_v24  ;;  %6091 = vmatprep.subr.bf16.mxu0 %v6778_v14 }
 0x20e   :  { %6112 = vmatpush3.bf16.msra.mxu1 %v6657_v8  ;;  %6127 = vmatprep.mubr.msk.bf16.mxu1 %vm6779_vm0, %v6778_v14 }
 0x20f   :  { %6068 = vmatmul.mubr.bf16.vlgmr.msra.gmra.mrb[124].mxu0 %v7573_v22  ;;  %6113 = vmatprep.subr.bf16.mxu1 %v6778_v14  ;;  %v6662_v22 = vld [vmem:[%s8421_s3 + $0x310] sm:$0xff]  }
 0x210   :  { %6092 = vmatpush3.bf16.msra.mxu0 %v6658_v63  ;;  %6107 = vmatprep.mubr.msk.bf16.mxu0 %vm6779_vm0, %v6778_v14  ;;  %v6701_v63 = vld [vmem:[%s8421_s3 + $0x470] sm:$0xff]  }
 0x211   :  { %6093 = vmatprep.subr.bf16.mxu0 %v6778_v14 }
 0x212   :  { %6114 = vmatpush3.bf16.msra.mxu1 %v6659_v11 }
 0x213   :  { %6115 = vmatprep.subr.bf16.mxu1 %v6778_v14 }
 0x214   :  { %6094 = vmatpush3.bf16.msra.mxu0 %v6660_v17 }
 0x215   :  { %6095 = vmatprep.subr.bf16.mxu0 %v6778_v14 }
 0x216   :  { %6116 = vmatpush3.bf16.msra.mxu1 %v6661_v18 }
 0x217   :  { %6117 = vmatprep.subr.bf16.mxu1 %v6778_v14 }
 0x218   :  { %6096 = vmatpush3.bf16.msra.mxu0 %v6662_v22 }
 0x219   :  { %6097 = vmatprep.subr.bf16.mxu0 %v6778_v14 }
 0x21a   :  { %6118 = vmatpush3.bf16.msra.mxu1 %v6663_v10  ;;  %v6702_v10 = vld [vmem:[%s8421_s3 + $0x430] sm:$0xff]  }
 0x21b   :  { %6119 = vmatprep.subr.bf16.mxu1 %v6778_v14 }
 0x21c   :  { %6098 = vmatpush3.bf16.msra.mxu0 %v6664_v16 }
 0x21d   :  { %6099 = vmatprep.subr.bf16.mxu0 %v6778_v14 }
 0x21e   :  { %6120 = vmatpush3.bf16.msra.mxu1 %v6665_v19 }
 0x21f   :  { %6121 = vmatprep.subr.bf16.mxu1 %v6778_v14 }
 0x220   :  { %6100 = vmatpush3.bf16.msra.mxu0 %v6666_v20  ;;  %v6703_v20 = vld [vmem:[%s8421_s3 + $0x478] sm:$0xff]  }
 0x221   :  { %6101 = vmatprep.subr.bf16.mxu0 %v6778_v14 }
 0x222   :  { %6122 = vmatpush3.bf16.msra.mxu1 %v6667_v6  ;;  %v6704_v6 = vld [vmem:[%s8421_s3 + $0x438] sm:$0xff]  }
 0x223   :  { %6123 = vmatprep.subr.bf16.mxu1 %v6778_v14 }
 0x224   :  { %6102 = vmatpush3.bf16.msra.mxu0 %v6668_v3  ;;  %v6705_v3 = vld [vmem:[%s8421_s3 + $0x4c0] sm:$0xff]  }
 0x225   :  { %6103 = vmatprep.subr.bf16.mxu0 %v6778_v14 }
 0x226   :  { %6124 = vmatpush3.bf16.msra.mxu1 %v6669_v62  ;;  %v3352_v62 = vrot.slane %v7646_v54, 4 }
 0x227   :  { %6125 = vmatprep.subr.bf16.mxu1 %v6778_v14 }
 0x228   :  { %6104 = vmatpush3.bf16.msra.mxu0 %v6670_v26  ;;  %v6706_v26 = vld [vmem:[%s8421_s3 + $0x480] sm:$0xff]  }
 0x229   :  { %6105 = vmatprep.subr.bf16.mxu0 %v6778_v14 }
 0x22a   :  { %6126 = vmatpush3.bf16.msra.mxu1 %v6671_v23  ;;  %v6707_v23 = vld [vmem:[%s8421_s3 + $0x4c8] sm:$0xff]  }
 0x22b   :  { %6151 = vmatprep.subr.bf16.mxu1 %v6778_v14 }
 0x22c   :  { %6106 = vmatpush3.bf16.msra.mxu0 %v6672_v51  ;;  %v6708_v51 = vld [vmem:[%s8421_s3 + $0x488] sm:$0xff]  }
 0x22d   :  { %6128 = vmatmul.mubr.bf16.vlgmr.msra.gmra.mrb[128].mxu1 %v2922_v31  ;;  %6131 = vmatprep.subr.bf16.mxu0 %v6778_v14  ;;  %v6711_v31 = vld [vmem:[%s8421_s3 + $0x4d8] sm:$0xff]  }
 0x22e   :  { %6152 = vmatpush3.bf16.msra.mxu1 %v6673_v30  ;;  %6167 = vmatprep.mubr.msk.bf16.mxu1 %vm6779_vm0, %v6778_v14  ;;  %v6709_v30 = vld [vmem:[%s8421_s3 + $0x4d0] sm:$0xff]  }
 0x22f   :  { %6108 = vmatmul.mubr.bf16.vlgmr.msra.gmra.mrb[128].mxu0 %v7597_v41  ;;  %6153 = vmatprep.subr.bf16.mxu1 %v6778_v14  ;;  %v6678_v41 = vld [vmem:[%s8421_s3 + $0x390] sm:$0xff]  }
 0x230   :  { %6132 = vmatpush3.bf16.msra.mxu0 %v6674_v7  ;;  %6147 = vmatprep.mubr.msk.bf16.mxu0 %vm6779_vm0, %v6778_v14  ;;  %v6712_v7 = vld [vmem:[%s8421_s3 + $0x498] sm:$0xff]  }
 0x231   :  { %6133 = vmatprep.subr.bf16.mxu0 %v6778_v14 }
 0x232   :  { %6154 = vmatpush3.bf16.msra.mxu1 %v6675_v34  ;;  %v6713_v34 = vld [vmem:[%s8421_s3 + $0x4e0] sm:$0xff]  }
 0x233   :  { %6155 = vmatprep.subr.bf16.mxu1 %v6778_v14 }
 0x234   :  { %6134 = vmatpush3.bf16.msra.mxu0 %v6676_v35  ;;  %v6714_v35 = vld [vmem:[%s8421_s3 + $0x4a0] sm:$0xff]  }
 0x235   :  { %6135 = vmatprep.subr.bf16.mxu0 %v6778_v14 }
 0x236   :  { %6156 = vmatpush3.bf16.msra.mxu1 %v6677_v39  ;;  %v6715_v39 = vld [vmem:[%s8421_s3 + $0x4e8] sm:$0xff]  }
 0x237   :  { %6157 = vmatprep.subr.bf16.mxu1 %v6778_v14 }
 0x238   :  { %6136 = vmatpush3.bf16.msra.mxu0 %v6678_v41 }
 0x239   :  { %6137 = vmatprep.subr.bf16.mxu0 %v6778_v14 }
 0x23a   :  { %6158 = vmatpush3.bf16.msra.mxu1 %v6679_v36  ;;  %v6716_v36 = vld [vmem:[%s8421_s3 + $0x4a8] sm:$0xff]  }
 0x23b   :  { %6159 = vmatprep.subr.bf16.mxu1 %v6778_v14 }
 0x23c   :  { %6138 = vmatpush3.bf16.msra.mxu0 %v6680_v59 }
 0x23d   :  { %6139 = vmatprep.subr.bf16.mxu0 %v6778_v14 }
 0x23e   :  { %6160 = vmatpush3.bf16.msra.mxu1 %v6681_v33 }
 0x23f   :  { %6161 = vmatprep.subr.bf16.mxu1 %v6778_v14 }
 0x240   :  { %6140 = vmatpush3.bf16.msra.mxu0 %v6682_v44  ;;  %v1717_v47 = vpop.f32.mrb[104].mxu1 }
 0x241   :  { %v5889_v46 = vpop.f32.mrb[105].mxu1  ;;  %6141 = vmatprep.subr.bf16.mxu0 %v6778_v14 }
 0x242   :  { %6162 = vmatpush3.bf16.msra.mxu1 %v6683_v37  ;;  %v1629_v45 = vpop.f32.mrb[104].mxu0  ;;  %v1720_v40 = vpop.f32.mrb[106].mxu1  ;;  %v6717_v37 = vld [vmem:[%s8421_s3 + $0x4f0] sm:$0xff]  }
 0x243   :  { %v1718_v42 = vadd.f32 %v1717_v47, %v1629_v45  ;;  %v5869_v53 = vpop.f32.mrb[105].mxu0  ;;  %v5890_v48 = vpop.f32.mrb[107].mxu1  ;;  %6163 = vmatprep.subr.bf16.mxu1 %v6778_v14  ;;  %v6718_v40 = vld [vmem:[%s8421_s3 + $0x4b0] sm:$0xff]  }
 0x244   :  { %6142 = vmatpush3.bf16.msra.mxu0 %v6684_v43  ;;  %v1632_v49 = vpop.f32.mrb[106].mxu0  ;;  %v6719_v53 = vld [vmem:[%s8421_s3 + $0x4f8] sm:$0xff]  }
 0x245   :  { %v5870_v13 = vpop.f32.mrb[107].mxu0  ;;  %6143 = vmatprep.subr.bf16.mxu0 %v6778_v14  ;;  %v6720_v48 = vld [vmem:[%s8421_s3 + $0x4b8] sm:$0xff]   ;;  %v6721_v49 = vld [vmem:[%s8421_s3 + $0x540] sm:$0xff]  }
 0x246   :  { %6164 = vmatpush3.bf16.msra.mxu1 %v6685_v25  ;;  %v6722_v13 = vld [vmem:[%s8421_s3 + $0x500] sm:$0xff]  }
 0x247   :  { %6165 = vmatprep.subr.bf16.mxu1 %v6778_v14 }
 0x248   :  { %6144 = vmatpush3.bf16.msra.mxu0 %v6686_v50  ;;  %v3567_v50 = vrot.slane %v7675_v21, 4 }
 0x249   :  { %6145 = vmatprep.subr.bf16.mxu0 %v6778_v14 }
 0x24a   :  { %6166 = vmatpush3.bf16.msra.mxu1 %v6687_v56  ;;  %v6723_v56 = vld [vmem:[%s8421_s3 + $0x548] sm:$0xff]  }
 0x24b   :  { %6191 = vmatprep.subr.bf16.mxu1 %v6778_v14 }
 0x24c   :  { %6146 = vmatpush3.bf16.msra.mxu0 %v6688_v52  ;;  %v6724_v52 = vld [vmem:[%s8421_s3 + $0x508] sm:$0xff]  }
 0x24d   :  { %6168 = vmatmul.mubr.bf16.vlgmr.msra.gmra.mrb[132].mxu1 %v3137_v58  ;;  %6171 = vmatprep.subr.bf16.mxu0 %v6778_v14  ;;  %v6727_v58 = vld [vmem:[%s8421_s3 + $0x558] sm:$0xff]  }
 0x24e   :  { %6192 = vmatpush3.bf16.msra.mxu1 %v6689_v57  ;;  %6207 = vmatprep.mubr.msk.bf16.mxu1 %vm6779_vm0, %v6778_v14  ;;  %v6725_v57 = vld [vmem:[%s8421_s3 + $0x550] sm:$0xff]  }
 0x24f   :  { %6148 = vmatmul.mubr.bf16.vlgmr.msra.gmra.mrb[132].mxu0 %v7621_v12  ;;  %6193 = vmatprep.subr.bf16.mxu1 %v6778_v14  ;;  %v6694_v12 = vld [vmem:[%s8421_s3 + $0x410] sm:$0xff]  }
 0x250   :  { %6172 = vmatpush3.bf16.msra.mxu0 %v6690_v32  ;;  %6187 = vmatprep.mubr.msk.bf16.mxu0 %vm6779_vm0, %v6778_v14  ;;  %v6728_v32 = vld [vmem:[%s8421_s3 + $0x518] sm:$0xff]  }
 0x251   :  { %6173 = vmatprep.subr.bf16.mxu0 %v6778_v14 }
 0x252   :  { %6194 = vmatpush3.bf16.msra.mxu1 %v6691_v28  ;;  %v6729_v28 = vld [vmem:[%s8421_s3 + $0x560] sm:$0xff]  }
 0x253   :  { %6195 = vmatprep.subr.bf16.mxu1 %v6778_v14 }
 0x254   :  { %6174 = vmatpush3.bf16.msra.mxu0 %v6692_v61  ;;  %v6730_v61 = vld [vmem:[%s8421_s3 + $0x520] sm:$0xff]  }
 0x255   :  { %6175 = vmatprep.subr.bf16.mxu0 %v6778_v14 }
 0x256   :  { %6196 = vmatpush3.bf16.msra.mxu1 %v6693_v27  ;;  %v6731_v27 = vld [vmem:[%s8421_s3 + $0x568] sm:$0xff]  }
 0x257   :  { %6197 = vmatprep.subr.bf16.mxu1 %v6778_v14 }
 0x258   :  { %6176 = vmatpush3.bf16.msra.mxu0 %v6694_v12 }
 0x259   :  { %6177 = vmatprep.subr.bf16.mxu0 %v6778_v14 }
 0x25a   :  { %6198 = vmatpush3.bf16.msra.mxu1 %v6695_v0  ;;  %v6732_v0 = vld [vmem:[%s8421_s3 + $0x528] sm:$0xff]  }
 0x25b   :  { %6199 = vmatprep.subr.bf16.mxu1 %v6778_v14 }
 0x25c   :  { %6178 = vmatpush3.bf16.msra.mxu0 %v6696_v15 }
 0x25d   :  { %6179 = vmatprep.subr.bf16.mxu0 %v6778_v14 }
 0x25e   :  { %6200 = vmatpush3.bf16.msra.mxu1 %v6697_v1 }
 0x25f   :  { %6201 = vmatprep.subr.bf16.mxu1 %v6778_v14 }
 0x260   :  { %v1931_v55 = vpop.f32.mrb[108].mxu1  ;;  %6180 = vmatpush3.bf16.msra.mxu0 %v6698_v2 }
 0x261   :  { %v5929_v5 = vpop.f32.mrb[109].mxu1  ;;  %6181 = vmatprep.subr.bf16.mxu0 %v6778_v14 }
 0x262   :  { %v1822_v8 = vpop.f32.mrb[108].mxu0  ;;  %v1934_v24 = vpop.f32.mrb[110].mxu1  ;;  %6202 = vmatpush3.bf16.msra.mxu1 %v6699_v4  ;;  %v6733_v4 = vld [vmem:[%s8421_s3 + $0x570] sm:$0xff]  }
 0x263   :  { %v1828_v11 = vadd.f32 %v1822_v8, %v1718_v42  ;;  %v5909_v17 = vpop.f32.mrb[109].mxu0  ;;  %v5930_v18 = vpop.f32.mrb[111].mxu1  ;;  %6203 = vmatprep.subr.bf16.mxu1 %v6778_v14  ;;  %v6734_v24 = vld [vmem:[%s8421_s3 + $0x530] sm:$0xff]  }
 0x264   :  { %v1825_v22 = vpop.f32.mrb[110].mxu0  ;;  %6182 = vmatpush3.bf16.msra.mxu0 %v6700_v9  ;;  %v6735_v17 = vld [vmem:[%s8421_s3 + $0x578] sm:$0xff]  }
 0x265   :  { %v5910_v16 = vpop.f32.mrb[111].mxu0  ;;  %6183 = vmatprep.subr.bf16.mxu0 %v6778_v14  ;;  %v1937_v19 = vadd.f32 %v1931_v55, %v1828_v11  ;;  %v6736_v18 = vld [vmem:[%s8421_s3 + $0x538] sm:$0xff]   ;;  %v6737_v22 = vld [vmem:[%s8421_s3 + $0x5c0] sm:$0xff]  }
 0x266   :  { %6204 = vmatpush3.bf16.msra.mxu1 %v6701_v63  ;;  %v6738_v16 = vld [vmem:[%s8421_s3 + $0x580] sm:$0xff]  }
 0x267   :  { %6205 = vmatprep.subr.bf16.mxu1 %v6778_v14 }
 0x268   :  { %6184 = vmatpush3.bf16.msra.mxu0 %v6702_v10  ;;  %v3782_v10 = vrot.slane %v7699_v60, 4 }
 0x269   :  { %6185 = vmatprep.subr.bf16.mxu0 %v6778_v14 }
 0x26a   :  { %6206 = vmatpush3.bf16.msra.mxu1 %v6703_v20  ;;  %v6740_v20 = vld [vmem:[%s8421_s3 + $0x588] sm:$0xff]  }
 0x26b   :  { %6231 = vmatprep.subr.bf16.mxu1 %v6778_v14 }
 0x26c   :  { %6186 = vmatpush3.bf16.msra.mxu0 %v6704_v6  ;;  %v6741_v6 = vld [vmem:[%s8421_s3 + $0x5d0] sm:$0xff]  }
 0x26d   :  { %6208 = vmatmul.mubr.bf16.vlgmr.msra.gmra.mrb[136].mxu1 %v3352_v62  ;;  %6211 = vmatprep.subr.bf16.mxu0 %v6778_v14  ;;  %v6744_v62 = vld [vmem:[%s8421_s3 + $0x598] sm:$0xff]  }
 0x26e   :  { %6232 = vmatpush3.bf16.msra.mxu1 %v6705_v3  ;;  %6247 = vmatprep.mubr.msk.bf16.mxu1 %vm6779_vm0, %v6778_v14  ;;  %v6743_v3 = vld [vmem:[%s8421_s3 + $0x5d8] sm:$0xff]  }
 0x26f   :  { %6188 = vmatmul.mubr.bf16.vlgmr.msra.gmra.mrb[136].mxu0 %v7646_v54  ;;  %6233 = vmatprep.subr.bf16.mxu1 %v6778_v14  ;;  %v6710_v54 = vld [vmem:[%s8421_s3 + $0x490] sm:$0xff]  }
 0x270   :  { %6212 = vmatpush3.bf16.msra.mxu0 %v6706_v26  ;;  %6227 = vmatprep.mubr.msk.bf16.mxu0 %vm6779_vm0, %v6778_v14  ;;  %v6745_v26 = vld [vmem:[%s8421_s3 + $0x5e0] sm:$0xff]  }
 0x271   :  { %6213 = vmatprep.subr.bf16.mxu0 %v6778_v14 }
 0x272   :  { %6234 = vmatpush3.bf16.msra.mxu1 %v6707_v23  ;;  %v6746_v23 = vld [vmem:[%s8421_s3 + $0x5a0] sm:$0xff]  }
 0x273   :  { %6235 = vmatprep.subr.bf16.mxu1 %v6778_v14 }
 0x274   :  { %6214 = vmatpush3.bf16.msra.mxu0 %v6708_v51  ;;  %v6747_v51 = vld [vmem:[%s8421_s3 + $0x5e8] sm:$0xff]  }
 0x275   :  { %6215 = vmatprep.subr.bf16.mxu0 %v6778_v14 }
 0x276   :  { %6236 = vmatpush3.bf16.msra.mxu1 %v6709_v30 }
 0x277   :  { %6237 = vmatprep.subr.bf16.mxu1 %v6778_v14 }
 0x278   :  { %6216 = vmatpush3.bf16.msra.mxu0 %v6710_v54  ;;  %v6748_v54 = vld [vmem:[%s8421_s3 + $0x5a8] sm:$0xff]  }
 0x279   :  { %6217 = vmatprep.subr.bf16.mxu0 %v6778_v14 }
 0x27a   :  { %6238 = vmatpush3.bf16.msra.mxu1 %v6711_v31 }
 0x27b   :  { %6239 = vmatprep.subr.bf16.mxu1 %v6778_v14 }
 0x27c   :  { %6218 = vmatpush3.bf16.msra.mxu0 %v6712_v7 }
 0x27d   :  { %6219 = vmatprep.subr.bf16.mxu0 %v6778_v14 }
 0x27e   :  { %6240 = vmatpush3.bf16.msra.mxu1 %v6713_v34 }
 0x27f   :  { %6241 = vmatprep.subr.bf16.mxu1 %v6778_v14 }
 0x280   :  { %v2146_v41 = vpop.f32.mrb[112].mxu1  ;;  %6220 = vmatpush3.bf16.msra.mxu0 %v6714_v35  ;;  %v6749_v35 = vld [vmem:[%s8421_s3 + $0x5f0] sm:$0xff]  }
 0x281   :  { %v5969_v59 = vpop.f32.mrb[113].mxu1  ;;  %6221 = vmatprep.subr.bf16.mxu0 %v6778_v14 }
 0x282   :  { %v2037_v33 = vpop.f32.mrb[112].mxu0  ;;  %v2149_v44 = vpop.f32.mrb[114].mxu1  ;;  %6242 = vmatpush3.bf16.msra.mxu1 %v6715_v39 }
 0x283   :  { %v2043_v47 = vadd.f32 %v2037_v33, %v1937_v19  ;;  %v5949_v43 = vpop.f32.mrb[113].mxu0  ;;  %v5970_v46 = vpop.f32.mrb[115].mxu1  ;;  %6243 = vmatprep.subr.bf16.mxu1 %v6778_v14  ;;  %v6739_v19 = vld [vmem:[%s8421_s3 + $0x5c8] sm:$0xff]   ;;  %v6750_v33 = vld [vmem:[%s8421_s3 + $0x5b0] sm:$0xff]  }
 0x284   :  { %v2040_v45 = vpop.f32.mrb[114].mxu0  ;;  %6222 = vmatpush3.bf16.msra.mxu0 %v6716_v36  ;;  %v6752_v43 = vld [vmem:[%s8421_s3 + $0x5b8] sm:$0xff]   ;;  %v3997_v46 = vrot.slane %v7723_v29, 4 }
 0x285   :  { %v5950_v25 = vpop.f32.mrb[115].mxu0  ;;  %6223 = vmatprep.subr.bf16.mxu0 %v6778_v14  ;;  %v2152_v42 = vadd.f32 %v2146_v41, %v2043_v47  ;;  %v6751_v47 = vld [vmem:[%s8421_s3 + $0x5f8] sm:$0xff]   ;;  %v6753_v45 = vld [vmem:[%s8421_s3 + $0x600] sm:$0xff]  }
 0x286   :  { %6244 = vmatpush3.bf16.msra.mxu1 %v6717_v37  ;;  %v6755_v25 = vld [vmem:[%s8421_s3 + $0x610] sm:$0xff]  }
 0x287   :  { %6245 = vmatprep.subr.bf16.mxu1 %v6778_v14 }
 0x288   :  { %6224 = vmatpush3.bf16.msra.mxu0 %v6718_v40  ;;  %v6754_v40 = vld [vmem:[%s8421_s3 + $0x608] sm:$0xff]  }
 0x289   :  { %6225 = vmatprep.subr.bf16.mxu0 %v6778_v14 }
 0x28a   :  { %6246 = vmatpush3.bf16.msra.mxu1 %v6719_v53 }
 0x28b   :  { %6271 = vmatprep.subr.bf16.mxu1 %v6778_v14 }
 0x28c   :  { %6226 = vmatpush3.bf16.msra.mxu0 %v6720_v48  ;;  %v6758_v48 = vld [vmem:[%s8421_s3 + $0x628] sm:$0xff]  }
 0x28d   :  { %6248 = vmatmul.mubr.bf16.vlgmr.msra.gmra.mrb[140].mxu1 %v3567_v50  ;;  %6251 = vmatprep.subr.bf16.mxu0 %v6778_v14 }
 0x28e   :  { %6272 = vmatpush3.bf16.msra.mxu1 %v6721_v49  ;;  %6287 = vmatprep.mubr.msk.bf16.mxu1 %vm6779_vm0, %v6778_v14 }
 0x28f   :  { %6228 = vmatmul.mubr.bf16.vlgmr.msra.gmra.mrb[140].mxu0 %v7675_v21  ;;  %6273 = vmatprep.subr.bf16.mxu1 %v6778_v14  ;;  %v6726_v21 = vld [vmem:[%s8421_s3 + $0x510] sm:$0xff]  }
 0x290   :  { %6252 = vmatpush3.bf16.msra.mxu0 %v6722_v13  ;;  %6267 = vmatprep.mubr.msk.bf16.mxu0 %vm6779_vm0, %v6778_v14 }
 0x291   :  { %6253 = vmatprep.subr.bf16.mxu0 %v6778_v14 }
 0x292   :  { %6274 = vmatpush3.bf16.msra.mxu1 %v6723_v56 }
 0x293   :  { %6275 = vmatprep.subr.bf16.mxu1 %v6778_v14 }
 0x294   :  { %6254 = vmatpush3.bf16.msra.mxu0 %v6724_v52 }
 0x295   :  { %6255 = vmatprep.subr.bf16.mxu0 %v6778_v14 }
 0x296   :  { %6276 = vmatpush3.bf16.msra.mxu1 %v6725_v57 }
 0x297   :  { %6277 = vmatprep.subr.bf16.mxu1 %v6778_v14 }
 0x298   :  { %6256 = vmatpush3.bf16.msra.mxu0 %v6726_v21 }
 0x299   :  { %6257 = vmatprep.subr.bf16.mxu0 %v6778_v14 }
 0x29a   :  { %6278 = vmatpush3.bf16.msra.mxu1 %v6727_v58  ;;  %v6759_v58 = vld [vmem:[%s8421_s3 + $0x630] sm:$0xff]  }
 0x29b   :  { %6279 = vmatprep.subr.bf16.mxu1 %v6778_v14 }
 0x29c   :  { %6258 = vmatpush3.bf16.msra.mxu0 %v6728_v32 }
 0x29d   :  { %6259 = vmatprep.subr.bf16.mxu0 %v6778_v14 }
 0x29e   :  { %6280 = vmatpush3.bf16.msra.mxu1 %v6729_v28 }
 0x29f   :  { %6281 = vmatprep.subr.bf16.mxu1 %v6778_v14 }
 0x2a0   :  { %v2361_v12 = vpop.f32.mrb[116].mxu1  ;;  %6260 = vmatpush3.bf16.msra.mxu0 %v6730_v61  ;;  %v6760_v61 = vld [vmem:[%s8421_s3 + $0x638] sm:$0xff]  }
 0x2a1   :  { %v6009_v15 = vpop.f32.mrb[117].mxu1  ;;  %6261 = vmatprep.subr.bf16.mxu0 %v6778_v14 }
 0x2a2   :  { %v2252_v1 = vpop.f32.mrb[116].mxu0  ;;  %v2364_v2 = vpop.f32.mrb[118].mxu1  ;;  %6282 = vmatpush3.bf16.msra.mxu1 %v6731_v27  ;;  %v1510_v27 = vpack.c.bf16 %v7734_v38, %v7734_v38 }
 0x2a3   :  { %v2258_v55 = vadd.f32 %v2252_v1, %v2152_v42  ;;  %v5989_v9 = vpop.f32.mrb[117].mxu0  ;;  %v6010_v5 = vpop.f32.mrb[119].mxu1  ;;  %6283 = vmatprep.subr.bf16.mxu1 %v6778_v14  ;;  %v6757_v42 = vld [vmem:[%s8421_s3 + $0x620] sm:$0xff]  }
 0x2a4   :  { %v2255_v8 = vpop.f32.mrb[118].mxu0  ;;  %6262 = vmatpush3.bf16.msra.mxu0 %v6732_v0 }
 0x2a5   :  { %v5990_v63 = vpop.f32.mrb[119].mxu0  ;;  %6263 = vmatprep.subr.bf16.mxu0 %v6778_v14  ;;  %v2367_v11 = vadd.f32 %v2361_v12, %v2258_v55 }
 0x2a6   :  { %6284 = vmatpush3.bf16.msra.mxu1 %v6733_v4 }
 0x2a7   :  { %6285 = vmatprep.subr.bf16.mxu1 %v6778_v14 }
 0x2a8   :  { %6264 = vmatpush3.bf16.msra.mxu0 %v6734_v24 }
 0x2a9   :  { %6265 = vmatprep.subr.bf16.mxu0 %v6778_v14 }
 0x2aa   :  { %6286 = vmatpush3.bf16.msra.mxu1 %v6735_v17 }
 0x2ab   :  { %6311 = vmatprep.subr.bf16.mxu1 %v6778_v14 }
 0x2ac   :  { %6266 = vmatpush3.bf16.msra.mxu0 %v6736_v18 }
 0x2ad   :  { %6288 = vmatmul.mubr.bf16.vlgmr.msra.gmra.mrb[144].mxu1 %v3782_v10  ;;  %6291 = vmatprep.subr.bf16.mxu0 %v6778_v14 }
 0x2ae   :  { %6312 = vmatpush3.bf16.msra.mxu1 %v6737_v22  ;;  %6327 = vmatprep.mubr.msk.bf16.mxu1 %vm6779_vm0, %v6778_v14 }
 0x2af   :  { %6268 = vmatmul.mubr.bf16.vlgmr.msra.gmra.mrb[144].mxu0 %v7699_v60  ;;  %6313 = vmatprep.subr.bf16.mxu1 %v6778_v14  ;;  %v6742_v60 = vld [vmem:[%s8421_s3 + $0x590] sm:$0xff]  }
 0x2b0   :  { %6292 = vmatpush3.bf16.msra.mxu0 %v6738_v16  ;;  %6307 = vmatprep.mubr.msk.bf16.mxu0 %vm6779_vm0, %v6778_v14 }
 0x2b1   :  { %6293 = vmatprep.subr.bf16.mxu0 %v6778_v14 }
 0x2b2   :  { %6314 = vmatpush3.bf16.msra.mxu1 %v6739_v19 }
 0x2b3   :  { %6315 = vmatprep.subr.bf16.mxu1 %v6778_v14 }
 0x2b4   :  { %6294 = vmatpush3.bf16.msra.mxu0 %v6740_v20  ;;  %v6761_v20 = vld [vmem:[%s8423_s5] sm:$0xff]  }
 0x2b5   :  { %6295 = vmatprep.subr.bf16.mxu0 %v6778_v14 }
 0x2b6   :  { %6316 = vmatpush3.bf16.msra.mxu1 %v6741_v6  ;;  %v6762_v6 = vld [vmem:[%s8423_s5 + $0x8] sm:$0xff]  }
 0x2b7   :  { %6317 = vmatprep.subr.bf16.mxu1 %v6778_v14 }
 0x2b8   :  { %6296 = vmatpush3.bf16.msra.mxu0 %v6742_v60  ;;  %v6763_v60 = vld [vmem:[%s8423_s5 + $0x10] sm:$0xff]  }
 0x2b9   :  { %6297 = vmatprep.subr.bf16.mxu0 %v6778_v14 }
 0x2ba   :  { %6318 = vmatpush3.bf16.msra.mxu1 %v6743_v3  ;;  %v6764_v3 = vld [vmem:[%s8423_s5 + $0x18] sm:$0xff]  }
 0x2bb   :  { %6319 = vmatprep.subr.bf16.mxu1 %v6778_v14 }
 0x2bc   :  { %6298 = vmatpush3.bf16.msra.mxu0 %v6744_v62  ;;  %v6765_v62 = vld [vmem:[%s8423_s5 + $0x20] sm:$0xff]  }
 0x2bd   :  { %6299 = vmatprep.subr.bf16.mxu0 %v6778_v14 }
 0x2be   :  { %6320 = vmatpush3.bf16.msra.mxu1 %v6745_v26  ;;  %v6766_v26 = vld [vmem:[%s8423_s5 + $0x28] sm:$0xff]  }
 0x2bf   :  { %6321 = vmatprep.subr.bf16.mxu1 %v6778_v14 }
 0x2c0   :  { %v2576_v30 = vpop.f32.mrb[120].mxu1  ;;  %6300 = vmatpush3.bf16.msra.mxu0 %v6746_v23 }
 0x2c1   :  { %v6049_v31 = vpop.f32.mrb[121].mxu1  ;;  %6301 = vmatprep.subr.bf16.mxu0 %v6778_v14 }
 0x2c2   :  { %v2467_v7 = vpop.f32.mrb[120].mxu0  ;;  %v2579_v34 = vpop.f32.mrb[122].mxu1  ;;  %6322 = vmatpush3.bf16.msra.mxu1 %v6747_v51  ;;  %v6767_v31 = vld [vmem:[%s8423_s5 + $0x30] sm:$0xff]  }
 0x2c3   :  { %v2473_v39 = vadd.f32 %v2467_v7, %v2367_v11  ;;  %v6029_v41 = vpop.f32.mrb[121].mxu0  ;;  %v6050_v36 = vpop.f32.mrb[123].mxu1  ;;  %6323 = vmatprep.subr.bf16.mxu1 %v6778_v14 }
 0x2c4   :  { %v2470_v59 = vpop.f32.mrb[122].mxu0  ;;  %6302 = vmatpush3.bf16.msra.mxu0 %v6748_v54 }
 0x2c5   :  { %v6030_v44 = vpop.f32.mrb[123].mxu0  ;;  %6303 = vmatprep.subr.bf16.mxu0 %v6778_v14  ;;  %v2582_v37 = vadd.f32 %v2576_v30, %v2473_v39  ;;  %v6768_v59 = vld [vmem:[%s8423_s5 + $0x38] sm:$0xff]  }
 0x2c6   :  { %6324 = vmatpush3.bf16.msra.mxu1 %v6749_v35  ;;  %v6770_v44 = vld [vmem:[%s8424_s7 + $0x8] sm:$0xff]  }
 0x2c7   :  { %6325 = vmatprep.subr.bf16.mxu1 %v6778_v14 }
 0x2c8   :  { %6304 = vmatpush3.bf16.msra.mxu0 %v6750_v33  ;;  %v6769_v33 = vld [vmem:[%s8424_s7] sm:$0xff]  }
 0x2c9   :  { %6305 = vmatprep.subr.bf16.mxu0 %v6778_v14 }
 0x2ca   :  { %6326 = vmatpush3.bf16.msra.mxu1 %v6751_v47  ;;  %v6772_v47 = vld [vmem:[%s8424_s7 + $0x18] sm:$0xff]  }
 0x2cb   :  { %6351 = vmatprep.subr.bf16.mxu1 %v6778_v14 }
 0x2cc   :  { %6306 = vmatpush3.bf16.msra.mxu0 %v6752_v43  ;;  %v6773_v43 = vld [vmem:[%s8424_s7 + $0x20] sm:$0xff]  }
 0x2cd   :  { %6328 = vmatmul.mubr.bf16.vlgmr.msra.gmra.mrb[148].mxu1 %v3997_v46  ;;  %6331 = vmatprep.subr.bf16.mxu0 %v6778_v14  ;;  %v6774_v46 = vld [vmem:[%s8424_s7 + $0x28] sm:$0xff]  }
 0x2ce   :  { %6367 = vmatprep.mubr.msk.bf16.mxu1 %vm6779_vm0, %v6778_v14  ;;  %6352 = vmatpush3.bf16.msra.mxu1 %v6761_v20  ;;  %v6775_v20 = vld [vmem:[%s8424_s7 + $0x30] sm:$0xff]  }
 0x2cf   :  { %6308 = vmatmul.mubr.bf16.vlgmr.msra.gmra.mrb[148].mxu0 %v7723_v29  ;;  %v6756_v29 = vld [vmem:[%s8421_s3 + $0x618] sm:$0xff]   ;;  %6353 = vmatprep.subr.bf16.mxu1 %v6778_v14 }
 0x2d0   :  { %6332 = vmatpush3.bf16.msra.mxu0 %v6753_v45  ;;  %6347 = vmatprep.mubr.msk.bf16.mxu0 %vm6779_vm0, %v6778_v14 }
 0x2d1   :  { %6333 = vmatprep.subr.bf16.mxu0 %v6778_v14 }
 0x2d2   :  { %6354 = vmatpush3.bf16.msra.mxu1 %v6762_v6  ;;  %v6776_v6 = vld [vmem:[%s8424_s7 + $0x38] sm:$0xff]  }
 0x2d3   :  { %6355 = vmatprep.subr.bf16.mxu1 %v6778_v14 }
 0x2d4   :  { %6334 = vmatpush3.bf16.msra.mxu0 %v6754_v40 }
 0x2d5   :  { %6335 = vmatprep.subr.bf16.mxu0 %v6778_v14 }
 0x2d6   :  { %6356 = vmatpush3.bf16.msra.mxu1 %v6763_v60  ;;  %v5214_v60 = vld [vmem:[%s8426_s6] ss:$0 sm:$0xff] }
 0x2d7   :  { %6357 = vmatprep.subr.bf16.mxu1 %v6778_v14 }
 0x2d8   :  { %6336 = vmatpush3.bf16.msra.mxu0 %v6755_v25 }
 0x2d9   :  { %6337 = vmatprep.subr.bf16.mxu0 %v6778_v14 }
 0x2da   :  { %6358 = vmatpush3.bf16.msra.mxu1 %v6764_v3 }
 0x2db   :  { %6359 = vmatprep.subr.bf16.mxu1 %v6778_v14 }
 0x2dc   :  { %6338 = vmatpush3.bf16.msra.mxu0 %v6756_v29 }
 0x2dd   :  { %6339 = vmatprep.subr.bf16.mxu0 %v6778_v14 }
 0x2de   :  { %6360 = vmatpush3.bf16.msra.mxu1 %v6765_v62 }
 0x2df   :  { %6361 = vmatprep.subr.bf16.mxu1 %v6778_v14 }
 0x2e0   :  { %v2791_v53 = vpop.f32.mrb[124].mxu1  ;;  %6340 = vmatpush3.bf16.msra.mxu0 %v6757_v42 }
 0x2e1   :  { %v6089_v49 = vpop.f32.mrb[125].mxu1  ;;  %6341 = vmatprep.subr.bf16.mxu0 %v6778_v14 }
 0x2e2   :  { %v2682_v50 = vpop.f32.mrb[124].mxu0  ;;  %v2794_v13 = vpop.f32.mrb[126].mxu1  ;;  %6362 = vmatpush3.bf16.msra.mxu1 %v6766_v26 }
 0x2e3   :  { %v2688_v56 = vadd.f32 %v2682_v50, %v2582_v37  ;;  %v6069_v52 = vpop.f32.mrb[125].mxu0  ;;  %v6090_v57 = vpop.f32.mrb[127].mxu1  ;;  %6363 = vmatprep.subr.bf16.mxu1 %v6778_v14  ;;  %v6771_v37 = vld [vmem:[%s8424_s7 + $0x10] sm:$0xff]  }
 0x2e4   :  { %v2685_v21 = vpop.f32.mrb[126].mxu0  ;;  %6342 = vmatpush3.bf16.msra.mxu0 %v6758_v48 }
 0x2e5   :  { %v6070_v32 = vpop.f32.mrb[127].mxu0  ;;  %6343 = vmatprep.subr.bf16.mxu0 %v6778_v14  ;;  %v2797_v28 = vadd.f32 %v2791_v53, %v2688_v56 }
 0x2e6   :  { %6364 = vmatpush3.bf16.msra.mxu1 %v6767_v31 }
 0x2e7   :  { %6365 = vmatprep.subr.bf16.mxu1 %v6778_v14 }
 0x2e8   :  { %6344 = vmatpush3.bf16.msra.mxu0 %v6759_v58 }
 0x2e9   :  { %6345 = vmatprep.subr.bf16.mxu0 %v6778_v14 }
 0x2ea   :  { %6366 = vmatpush3.bf16.msra.mxu1 %v6768_v59 }
 0x2ec   :  { %6346 = vmatpush3.bf16.msra.mxu0 %v6760_v61 }
 0x2ed   :  { %6371 = vmatprep.subr.bf16.mxu0 %v6778_v14 }
 0x2ef   :  { %6348 = vmatmul.mubr.bf16.vlgmr.msra.gmra.mrb[152].mxu0 %v1510_v27 }
 0x2f0   :  { %6387 = vmatprep.mubr.msk.bf16.mxu0 %vm6779_vm0, %v6778_v14  ;;  %6372 = vmatpush3.bf16.msra.mxu0 %v6769_v33 }
 0x2f1   :  { %6373 = vmatprep.subr.bf16.mxu0 %v6778_v14 }
 0x2f4   :  { %6374 = vmatpush3.bf16.msra.mxu0 %v6770_v44 }
 0x2f5   :  { %6375 = vmatprep.subr.bf16.mxu0 %v6778_v14 }
 0x2f8   :  { %6376 = vmatpush3.bf16.msra.mxu0 %v6771_v37 }
 0x2f9   :  { %6377 = vmatprep.subr.bf16.mxu0 %v6778_v14 }
 0x2fc   :  { %6378 = vmatpush3.bf16.msra.mxu0 %v6772_v47 }
 0x2fd   :  { %6379 = vmatprep.subr.bf16.mxu0 %v6778_v14 }
 0x300   :  { %v3006_v12 = vpop.f32.mrb[128].mxu1  ;;  %6380 = vmatpush3.bf16.msra.mxu0 %v6773_v43 }
 0x301   :  { %v6129_v0 = vpop.f32.mrb[129].mxu1  ;;  %6381 = vmatprep.subr.bf16.mxu0 %v6778_v14 }
 0x302   :  { %v2897_v15 = vpop.f32.mrb[128].mxu0  ;;  %v3009_v1 = vpop.f32.mrb[130].mxu1 }
 0x303   :  { %v2903_v2 = vadd.f32 %v2897_v15, %v2797_v28  ;;  %v6109_v4 = vpop.f32.mrb[129].mxu0  ;;  %v6130_v55 = vpop.f32.mrb[131].mxu1 }
 0x304   :  { %v2900_v9 = vpop.f32.mrb[130].mxu0  ;;  %6382 = vmatpush3.bf16.msra.mxu0 %v6774_v46 }
 0x305   :  { %v6110_v5 = vpop.f32.mrb[131].mxu0  ;;  %v3012_v8 = vadd.f32 %v3006_v12, %v2903_v2  ;;  %6383 = vmatprep.subr.bf16.mxu0 %v6778_v14 }
 0x308   :  { %6384 = vmatpush3.bf16.msra.mxu0 %v6775_v20 }
 0x309   :  { %6385 = vmatprep.subr.bf16.mxu0 %v6778_v14  ;;  %v5223_v14 = vld [vmem:[%s8427_s8] ss:$0 sm:$0xff] }
 0x30c   :  { %6386 = vmatpush3.bf16.msra.mxu0 %v6776_v6 }
 0x320   :  { %v3221_v24 = vpop.f32.mrb[132].mxu1 }
 0x321   :  { %v6169_v63 = vpop.f32.mrb[133].mxu1 }
 0x322   :  { %v3112_v11 = vpop.f32.mrb[132].mxu0  ;;  %v3224_v38 = vpop.f32.mrb[134].mxu1 }
 0x323   :  { %v3118_v17 = vadd.f32 %v3112_v11, %v3012_v8  ;;  %v6149_v18 = vpop.f32.mrb[133].mxu0  ;;  %v6170_v22 = vpop.f32.mrb[135].mxu1  ;;  %v5213_v11 = vld [vmem:[%s8425_s4] ss:$0 sm:$0xff] }
 0x324   :  { %v3115_v10 = vpop.f32.mrb[134].mxu0 }
 0x325   :  { %v6150_v16 = vpop.f32.mrb[135].mxu0  ;;  %v3227_v19 = vadd.f32 %v3221_v24, %v3118_v17 }
 0x340   :  { %v3436_v23 = vpop.f32.mrb[136].mxu1 }
 0x341   :  { %v6209_v51 = vpop.f32.mrb[137].mxu1 }
 0x342   :  { %v3327_v30 = vpop.f32.mrb[136].mxu0  ;;  %v3439_v54 = vpop.f32.mrb[138].mxu1 }
 0x343   :  { %v3333_v7 = vadd.f32 %v3327_v30, %v3227_v19  ;;  %v6189_v34 = vpop.f32.mrb[137].mxu0  ;;  %v6210_v35 = vpop.f32.mrb[139].mxu1 }
 0x344   :  { %v3330_v39 = vpop.f32.mrb[138].mxu0 }
 0x345   :  { %v6190_v41 = vpop.f32.mrb[139].mxu0  ;;  %v3442_v36 = vadd.f32 %v3436_v23, %v3333_v7 }
 0x360   :  { %v3651_v45 = vpop.f32.mrb[140].mxu1 }
 0x361   :  { %v6249_v40 = vpop.f32.mrb[141].mxu1 }
 0x362   :  { %v3542_v25 = vpop.f32.mrb[140].mxu0  ;;  %v3654_v29 = vpop.f32.mrb[142].mxu1 }
 0x363   :  { %v3548_v42 = vadd.f32 %v3542_v25, %v3442_v36  ;;  %v6229_v53 = vpop.f32.mrb[141].mxu0  ;;  %v6250_v48 = vpop.f32.mrb[143].mxu1 }
 0x364   :  { %v3545_v49 = vpop.f32.mrb[142].mxu0 }
 0x365   :  { %v6230_v50 = vpop.f32.mrb[143].mxu0  ;;  %v3657_v13 = vadd.f32 %v3651_v45, %v3548_v42 }
 0x380   :  { %v3866_v56 = vpop.f32.mrb[144].mxu1 }
 0x381   :  { %v6289_v52 = vpop.f32.mrb[145].mxu1 }
 0x382   :  { %v3757_v57 = vpop.f32.mrb[144].mxu0  ;;  %v3869_v21 = vpop.f32.mrb[146].mxu1 }
 0x383   :  { %v3763_v58 = vadd.f32 %v3757_v57, %v3657_v13  ;;  %v6269_v32 = vpop.f32.mrb[145].mxu0  ;;  %v6290_v28 = vpop.f32.mrb[147].mxu1 }
 0x384   :  { %v3760_v61 = vpop.f32.mrb[146].mxu0 }
 0x385   :  { %v6270_v27 = vpop.f32.mrb[147].mxu0  ;;  %v3872_v12 = vadd.f32 %v3866_v56, %v3763_v58 }
 0x3a0   :  { %v4081_v0 = vpop.f32.mrb[148].mxu1 }
 0x3a1   :  { %v6329_v15 = vpop.f32.mrb[149].mxu1 }
 0x3a2   :  { %v3972_v1 = vpop.f32.mrb[148].mxu0  ;;  %v4084_v2 = vpop.f32.mrb[150].mxu1 }
 0x3a3   :  { %v3978_v4 = vadd.f32 %v3972_v1, %v3872_v12  ;;  %v6309_v55 = vpop.f32.mrb[149].mxu0  ;;  %v6330_v9 = vpop.f32.mrb[151].mxu1 }
 0x3a4   :  { %v3975_v5 = vpop.f32.mrb[150].mxu0 }
 0x3a5   :  { %v6310_v8 = vpop.f32.mrb[151].mxu0  ;;  %v4087_v24 = vadd.f32 %v4081_v0, %v3978_v4 }
 0x3c2   :  { %v4187_v63 = vpop.f32.mrb[152].mxu0 }
 0x3c3   :  { %v4193_v38 = vadd.f32 %v4187_v63, %v4087_v24  ;;  %v6349_v17 = vpop.f32.mrb[153].mxu0 }
 0x3c4   :  { %v4190_v18 = vpop.f32.mrb[154].mxu0 }
 0x3c5   :  { %v4201_v22 = vadd.f32 %v5213_v11, %v4193_v38  ;;  %v6350_v10 = vpop.f32.mrb[155].mxu0 }
 0x3c7   :  { %v4202_v16 = vmax.f32 %v4201_v22, 0.0 }
 0x3c9   :  { %v4203_v19 = vpack.c.bf16 %v4202_v16, %v4202_v16 }
 0x3cb   :  { %6368 = vmatmul.mubr.bf16.vlgmr.msra.gmra.mrb[152].mxu1 %v4203_v19 }
 0x49e   :  { %v4309_v3 = vpop.f32.mrb[152].mxu1 }
 0x49f   :  { %v4310_v62 = vadd.f32 %v5214_v60, %v4309_v3  ;;  %v6369_v26 = vpop.f32.mrb[153].mxu1 }
 0x4a0   :  { %v4312_v23 = vpop.f32.mrb[154].mxu1 }
 0x4a1   :  { %v4315_v51 = vmax.f32 %v4310_v62, 0.0  ;;  %v6370_v30 = vpop.f32.mrb[155].mxu1 }
 0x4a3   :  { %v4316_v54 = vpack.c.bf16 %v4315_v51, %v4315_v51 }
 0x4a5   :  { %6388 = vmatmul.mubr.bf16.vlgmr.msra.gmra.mrb[156].mxu0 %v4316_v54 }
 0x578   :  { %v4422_v31 = vpop.f32.mrb[156].mxu0 }
 0x579   :  { %v4423_v7 = vadd.f32 %v5223_v14, %v4422_v31  ;;  %v6389_v34 = vpop.f32.mrb[157].mxu0 }
 0x57a   :  { %v4425_v35 = vpop.f32.mrb[158].mxu0 }
 0x57b   :  { %4428 = vst [vmem:[%s8428_s9] sm:$0xff] %v4423_v7  ;;  %v6390_v39 = vpop.f32.mrb[159].mxu0 }

</bundles_post_ra>
